<compile_context>
chip_gen: v7x
topology: tpu7x:2x2x1
jax: 0.10.0
libtpu: 0.0.40
codegen_flags: <defaults>
</compile_context>

<pallas_src>
import functools
import math

import jax
import jax.numpy as jnp
from jax import lax
from jax.experimental import pallas as pl
from jax.experimental.pallas import tpu as pltpu

_SQRT2 = math.sqrt(2.0)
_VMEM = pl.BlockSpec(memory_space=pltpu.MemorySpace.VMEM)

# Set True to use the tanh GELU (EUP transcendental slot, faster); default is
# the exact erf GELU matching torch.nn.GELU(approximate='none').
_USE_TANH_GELU = False


def _gelu(x):
    if _USE_TANH_GELU:
        return jax.nn.gelu(x, approximate=True)
    return 0.5 * x * (1.0 + lax.erf(x * (1.0 / _SQRT2)))


def _round_up(n, m):
    return -(-n // m) * m


@functools.lru_cache(maxsize=None)
def _vmem_limit_bytes():
    """75% of physical VMEM: ~96 MiB on v5e/v6e (128 MiB), ~48 MiB on v7x (64 MiB)."""
    cap = 64 * 1024 * 1024
    try:
        info = pltpu.get_tpu_info()
        cap = int(getattr(info, "vmem_capacity_bytes", cap))
    except Exception:
        pass
    return int(cap * 3 // 4)


def _cparams(*semantics):
    return pltpu.CompilerParams(
        dimension_semantics=semantics if semantics else None,
        vmem_limit_bytes=_vmem_limit_bytes())


def _cspec(shape):
    """BlockSpec for a grid-invariant (weight/bias) input: full-array block,
    constant index map -> fetched once, not re-DMA'd per grid step."""
    nd = len(shape)
    return pl.BlockSpec(shape, lambda *_, _nd=nd: (0,) * _nd)


# ----------------------------------------------------------------------------
# Patch-embed / downsample GEMM (row-tiled, remainder-safe, bf16 MXU inputs)
# ----------------------------------------------------------------------------
def _gemm_kernel(x_ref, w_ref, o_ref):
    o_ref[...] = jnp.dot(x_ref[...], w_ref[...],
                         preferred_element_type=jnp.float32)


def gemm(x, w, *, row_cap=1024):
    M, K = x.shape
    K2, N = w.shape
    assert K == K2
    tm = min(row_cap, _round_up(M, 8))
    Mp = _round_up(M, tm)
    xb = x.astype(jnp.bfloat16)
    if Mp != M:
        xb = jnp.pad(xb, ((0, Mp - M), (0, 0)))
    out = pl.pallas_call(
        _gemm_kernel,
        out_shape=jax.ShapeDtypeStruct((Mp, N), jnp.float32),
        grid=(Mp // tm,),
        in_specs=[pl.BlockSpec((tm, K), lambda i: (i, 0)),
                  pl.BlockSpec((K, N), lambda i: (0, 0))],
        out_specs=pl.BlockSpec((tm, N), lambda i: (i, 0)),
        compiler_params=_cparams("parallel"),
    )(xb, w.astype(jnp.bfloat16))
    return out[:M] if Mp != M else out


# ----------------------------------------------------------------------------
# Fused CaterpillarBlock kernel:
#   localMix -> globalMix -> +residual -> channelMix (LN/fc1/GELU/fc2) -> +residual
# ----------------------------------------------------------------------------
def _block_kernel(x_ref,
                  lbn_s_ref, lbn_b_ref, wdir_ref, bdir_ref,
                  wft_ref, wfb_ref, wfr_ref, wfl_ref, wfc_ref, bfuse_ref,
                  gbn_s_ref, gbn_b_ref, wh_ref, bh_ref, ww_ref, bw_ref,
                  wgo_ref, wgh_ref, wgw_ref,
                  lng_ref, lnb_ref, w1_ref, b1_ref, w2_ref, b2_ref,
                  o_ref, *, H, W, C, C5, step, ln_eps):
    f32, bf16 = jnp.float32, jnp.bfloat16
    x = x_ref[0]                                            # (H, W, C) f32

    # ===== localMix: BN+GELU -> 5 direction 1x1 convs as ONE (C,C) GEMM =====
    a = _gelu(x * lbn_s_ref[...] + lbn_b_ref[...])
    y = jnp.dot(a.reshape(H * W, C).astype(bf16), wdir_ref[...],
                preferred_element_type=f32) + bdir_ref[...]
    y = y.reshape(H, W, C)            # output channels stacked [t|b|r|l|c]

    # Shifts from the reference (pad + narrow); the zeroed border rows/cols
    # contain exact zeros, including the direction-conv bias contribution.
    zero_row = jnp.zeros((1, W, C5), f32)
    zero_rows = jnp.zeros((step, W, C5), f32)
    zero_col = jnp.zeros((H, 1, C5), f32)
    zero_cols = jnp.zeros((H, step, C5), f32)
    xt = jnp.concatenate([y[1:, :, 0:C5], zero_row], axis=0)          # up 1
    xb = jnp.concatenate([zero_rows, y[:H - step, :, C5:2 * C5]], axis=0)
    xr = jnp.concatenate([zero_cols, y[:, :W - step, 2 * C5:3 * C5]], axis=1)
    xl = jnp.concatenate([y[:, 1:, 3 * C5:4 * C5], zero_col], axis=1)  # left 1
    xc = y[:, :, 4 * C5:5 * C5]

    # Split fuse weight: accumulate five partial GEMMs instead of a lane concat.
    def fdot(z, wref):
        return jnp.dot(z.reshape(H * W, C5).astype(bf16), wref[...],
                       preferred_element_type=f32)

    lm = (fdot(xt, wft_ref) + fdot(xb, wfb_ref) + fdot(xr, wfr_ref)
          + fdot(xl, wfl_ref) + fdot(xc, wfc_ref) + bfuse_ref[...])
    lm = lm.reshape(H, W, C)

    # ===== globalMix: BN+GELU -> sparse MLP (split fuse weights) ============
    a2 = _gelu(lm * gbn_s_ref[...] + gbn_b_ref[...])        # (H, W, C) f32
    a2b = a2.astype(bf16)
    a2f = a2b.reshape(H * W, C)

    # identity path
    gm = jnp.dot(a2f, wgo_ref[...], preferred_element_type=f32)

    # h-path: mix along W (proj_h), bias indexed by output-W.
    # TODO(synk): a single (W,W)@(W,H*C) GEMM on a transposed view would raise
    # MXU K-occupancy further; kept as the proven batched dot_general (bf16).
    whb = jnp.broadcast_to(wh_ref[...][None], (H, W, W))
    xh = lax.dot_general(whb, a2b, (((2,), (1,)), ((0,), (0,))),
                         preferred_element_type=f32) + bh_ref[...]
    gm = gm + jnp.dot(xh.reshape(H * W, C).astype(bf16), wgh_ref[...],
                      preferred_element_type=f32)

    # w-path: mix along H (proj_w) as one lane-dense GEMM, bias by output-H.
    xw = jnp.dot(ww_ref[...], a2b.reshape(H, W * C),
                 preferred_element_type=f32).reshape(H, W, C) + bw_ref[...]
    gm = gm + jnp.dot(xw.reshape(H * W, C).astype(bf16), wgw_ref[...],
                      preferred_element_type=f32)

    # residual 1: x = globalMix(localMix(x)) + x
    x1 = gm.reshape(H, W, C) + x

    # ===== channelMix (FeedForward_LN) fused in the epilogue ================
    xf = x1.reshape(H * W, C)
    mu = jnp.mean(xf, axis=-1, keepdims=True)
    xcen = xf - mu
    var = jnp.mean(xcen * xcen, axis=-1, keepdims=True)
    yn = xcen * lax.rsqrt(var + ln_eps) * lng_ref[...] + lnb_ref[...]
    h = _gelu(jnp.dot(yn.astype(bf16), w1_ref[...],
                      preferred_element_type=f32) + b1_ref[...])
    cm = jnp.dot(h.astype(bf16), w2_ref[...],
                 preferred_element_type=f32) + b2_ref[...]

    # residual 2: x = channelMix(x) + x
    o_ref[0] = (cm + xf).reshape(H, W, C)


def block_forward(x, lp, gp, cp, *, step, ln_eps=1e-5):
    B, H, W, C = x.shape
    assert H == W
    assert C % 5 == 0
    C5 = C // 5
    bf16, f32 = jnp.bfloat16, jnp.float32

    fw = lp["fuse_w"]                 # (C, C)   rows ordered [t|b|r|l|c]
    gf = gp["fuse_w"]                 # (3C, C)  rows ordered [o|h|w]
    args = (
        x.astype(f32),
        # localMix
        lp["bn_scale"].reshape(1, 1, C), lp["bn_shift"].reshape(1, 1, C),
        lp["dir_w"].astype(bf16), lp["dir_b"].reshape(1, C),
        fw[0 * C5:1 * C5].astype(bf16), fw[1 * C5:2 * C5].astype(bf16),
        fw[2 * C5:3 * C5].astype(bf16), fw[3 * C5:4 * C5].astype(bf16),
        fw[4 * C5:5 * C5].astype(bf16),
        lp["fuse_b"].reshape(1, C),
        # globalMix
        gp["bn_scale"].reshape(1, 1, C), gp["bn_shift"].reshape(1, 1, C),
        gp["proj_h_w"].astype(bf16), gp["proj_h_b"].reshape(1, W, 1),
        gp["proj_w_w"].astype(bf16), gp["proj_w_b"].reshape(H, 1, 1),
        gf[0:C].astype(bf16), gf[C:2 * C].astype(bf16), gf[2 * C:3 * C].astype(bf16),
        # channelMix
        cp["ln_g"].reshape(1, C), cp["ln_b"].reshape(1, C),
        cp["fc1_w"].astype(bf16), cp["fc1_b"].reshape(1, 3 * C),
        cp["fc2_w"].astype(bf16), cp["fc2_b"].reshape(1, C),
    )
    kernel = functools.partial(_block_kernel, H=H, W=W, C=C, C5=C5,
                               step=step, ln_eps=ln_eps)
    in_specs = [pl.BlockSpec((1, H, W, C), lambda i: (i, 0, 0, 0))]
    in_specs += [_cspec(a.shape) for a in args[1:]]
    return pl.pallas_call(
        kernel,
        out_shape=jax.ShapeDtypeStruct((B, H, W, C), jnp.float32),
        grid=(B,),
        in_specs=in_specs,
        out_specs=pl.BlockSpec((1, H, W, C), lambda i: (i, 0, 0, 0)),
        compiler_params=_cparams("parallel"),
    )(*args)


# ----------------------------------------------------------------------------
# Head: spatial mean + Linear (final eval-BN affine folded into the weights)
# ----------------------------------------------------------------------------
def _head_kernel(x_ref, w_ref, b_ref, o_ref):
    pooled = jnp.mean(x_ref[...], axis=1)                    # (B, C) f32
    o_ref[...] = jnp.dot(pooled.astype(jnp.bfloat16), w_ref[...],
                         preferred_element_type=jnp.float32) + b_ref[...]


def head_forward(x, norm_scale, norm_shift, head_w, head_b):
    B, H, W, C = x.shape
    N = head_w.shape[1]
    # Fold eval-BN affine into the head Linear: mean((x*s+b)) @ W + bias
    #   = mean(x) @ (diag(s) W) + (b @ W + bias)
    w_fold = (norm_scale[:, None] * head_w).astype(jnp.bfloat16)
    b_fold = (head_b + norm_shift @ head_w).reshape(1, N).astype(jnp.float32)
    x3 = x.reshape(B, H * W, C).astype(jnp.float32)
    return pl.pallas_call(
        _head_kernel,
        out_shape=jax.ShapeDtypeStruct((B, N), jnp.float32),
        in_specs=[_VMEM] * 3,
        out_specs=_VMEM,
        compiler_params=_cparams(),
    )(x3, w_fold, b_fold)


# ----------------------------------------------------------------------------
# Model glue (JAX reshapes only; all compute is in the kernels above)
# ----------------------------------------------------------------------------
def patchify_conv(x, w_torch, stride):
    """Conv2d(k=stride, s=stride, bias=False) as patch extraction + GEMM.
    x: (B,H,W,C) NHWC, w_torch: (Cout, Cin, k, k) PyTorch layout."""
    B, H, W, C = x.shape
    k = stride
    Ho, Wo = H // k, W // k
    xp = (x.reshape(B, Ho, k, Wo, k, C)
            .transpose(0, 1, 3, 2, 4, 5)
            .reshape(B * Ho * Wo, k * k * C))
    cout = w_torch.shape[0]
    wm = jnp.transpose(w_torch, (2, 3, 1, 0)).reshape(k * k * C, cout)
    return gemm(xp, wm).reshape(B, Ho, Wo, cout)


def caterpillar_forward(params, x_nchw, *, cfg):
    """cfg holds all STATIC Python ints (patch_size, per-stage step/stride)."""
    x = jnp.transpose(x_nchw, (0, 2, 3, 1)).astype(jnp.float32)  # NCHW -> NHWC
    x = patchify_conv(x, params["patch_w"], cfg["patch_size"])
    for sidx, scfg in enumerate(cfg["stages"]):
        sp = params["stages"][sidx]
        if scfg["down_stride"] is not None:
            x = patchify_conv(x, sp["down_w"], scfg["down_stride"])
        for blk in sp["blocks"]:
            # drop_path / dropout are Identity (rates = 0)
            x = block_forward(x, blk["local"], blk["global"], blk["channel"],
                              step=scfg["step"])
    return head_forward(x, params["norm_scale"], params["norm_shift"],
                        params["head_w"], params["head_b"])


# ----------------------------------------------------------------------------
# Deterministic parameter construction (arrays only — no Python ints inside!)
# ----------------------------------------------------------------------------
class KeyGen:
    def __init__(self, key):
        self._key = key

    def __call__(self):
        self._key, sub = jax.random.split(self._key)
        return sub


def _nrm(kg, shape, scale=0.02):
    return scale * jax.random.normal(kg(), shape, jnp.float32)


def _bn_params(kg, c):
    gamma = 1.0 + _nrm(kg, (c,), 0.1)
    beta = _nrm(kg, (c,), 0.1)
    rmean = _nrm(kg, (c,), 0.1)
    rvar = 1.0 + 0.1 * jax.nn.sigmoid(_nrm(kg, (c,), 1.0))
    scale = gamma / jnp.sqrt(rvar + 1e-5)
    shift = beta - rmean * scale
    return scale, shift


def _lin(kg, cin, cout, bias=True):
    w = _nrm(kg, (cin, cout))
    b = _nrm(kg, (cout,)) if bias else None
    return w, b


def make_params(key, *, in_chans, patch_size, embed_dim, depth, down_stride,
                num_patch0, num_classes):
    kg = KeyGen(key)
    params = {"patch_w": _nrm(kg, (embed_dim[0], in_chans, patch_size, patch_size))}
    stages = []
    num_patch = num_patch0
    for i in range(len(depth)):
        stage = {"down_w": None, "blocks": []}
        if i > 0:
            num_patch = num_patch // down_stride[i]
            stage["down_w"] = _nrm(kg, (embed_dim[i], embed_dim[i - 1],
                                        down_stride[i], down_stride[i]))
        C = embed_dim[i]
        assert C % 5 == 0, "channels must be divisible by 5 for the NP5 mixer"
        for _ in range(depth[i]):
            # ---- localMix: 5 direction convs fused into one (C, C) weight
            #      output-channel order [t | b | r | l | c] ----
            lm = {}
            lm["bn_scale"], lm["bn_shift"] = _bn_params(kg, C)
            lm["dir_w"], lm["dir_b"] = _lin(kg, C, C)
            lm["fuse_w"], lm["fuse_b"] = _lin(kg, C, C)       # rows [t|b|r|l|c]
            # ---- globalMix ----
            gm = {}
            gm["bn_scale"], gm["bn_shift"] = _bn_params(kg, C)
            gm["proj_h_w"] = _nrm(kg, (num_patch, num_patch))   # torch (out,in)
            gm["proj_h_b"] = _nrm(kg, (num_patch,))
            gm["proj_w_w"] = _nrm(kg, (num_patch, num_patch))
            gm["proj_w_b"] = _nrm(kg, (num_patch,))
            gm["fuse_w"], _ = _lin(kg, 3 * C, C, bias=False)    # rows [o|h|w]
            # ---- channelMix ----
            cm = {}
            cm["ln_g"] = 1.0 + _nrm(kg, (C,), 0.1)
            cm["ln_b"] = _nrm(kg, (C,), 0.1)
            cm["fc1_w"], cm["fc1_b"] = _lin(kg, C, 3 * C)
            cm["fc2_w"], cm["fc2_b"] = _lin(kg, 3 * C, C)
            stage["blocks"].append({"local": lm, "global": gm, "channel": cm})
        stages.append(stage)
    params["stages"] = stages
    params["norm_scale"], params["norm_shift"] = _bn_params(kg, embed_dim[-1])
    params["head_w"], params["head_b"] = _lin(kg, embed_dim[-1], num_classes)
    return params


# ----------------------------------------------------------------------------
if __name__ == "__main__":
    # Small synthetic configuration consistent with the module:
    #   img 16x16, patch 4 -> 4x4 grid; two stages, embed dims divisible by 5.
    IMG, IN_CH, PATCH = 16, 3, 4
    EMBED = [20, 40]
    DEPTH = [1, 1]
    DOWN = [4, 2]          # DOWN[0] must equal PATCH (matching the assert)
    STEP = [1, 1]
    NUM_CLASSES = 10
    NUM_PATCH0 = IMG // PATCH

    # STATIC config (Python ints) — kept OUT of the traced params pytree.
    cfg = {
        "patch_size": PATCH,
        "stages": tuple(
            {"step": STEP[i], "down_stride": (DOWN[i] if i > 0 else None)}
            for i in range(len(DEPTH))),
    }

    params = make_params(jax.random.PRNGKey(0),
                         in_chans=IN_CH, patch_size=PATCH, embed_dim=EMBED,
                         depth=DEPTH, down_stride=DOWN,
                         num_patch0=NUM_PATCH0, num_classes=NUM_CLASSES)

    x = jax.random.normal(jax.random.PRNGKey(0), (2, IN_CH, IMG, IMG),
                          jnp.float32)

    fwd = jax.jit(functools.partial(caterpillar_forward, cfg=cfg))
    logits = fwd(params, x)
    jax.block_until_ready(logits)
    assert logits.shape == (2, NUM_CLASSES)
    assert bool(jnp.all(jnp.isfinite(logits)))
    print("KERNEL_OK")
</pallas_src>

<mosaic_0001>
module attributes {stable_mosaic.version = 11 : i64} {
  func.func @_gemm_kernel(%arg0: i32, %arg1: memref<32x48xbf16, #tpu.memory_space<vmem>>, %arg2: memref<48x20xbf16, #tpu.memory_space<vmem>>, %arg3: memref<32x20xf32, #tpu.memory_space<vmem>>) attributes {dimension_semantics = [#tpu.dimension_semantics<parallel>], iteration_bounds = array<i64: 1>, scalar_prefetch = 0 : i64, scratch_operands = 0 : i64, tpu.core_type = #tpu.core_type<tc>, window_params = [{transform_indices = @transform_0, window_bounds = array<i64: 32, 48>}, {pipeline_mode = #tpu.pipeline_mode<synchronous>, transform_indices = @transform_1, window_bounds = array<i64: 48, 20>}, {transform_indices = @transform_2, window_bounds = array<i64: 32, 20>}]} {
    %c0 = arith.constant 0 : index
    %c0_0 = arith.constant 0 : index
    %0 = vector.load %arg1[%c0, %c0_0] : memref<32x48xbf16, #tpu.memory_space<vmem>>, vector<32x48xbf16>
    %c0_1 = arith.constant 0 : index
    %c0_2 = arith.constant 0 : index
    %1 = vector.load %arg2[%c0_1, %c0_2] : memref<48x20xbf16, #tpu.memory_space<vmem>>, vector<48x20xbf16>
    %cst = arith.constant dense<0.000000e+00> : vector<32x20xf32>
    %2 = tpu.matmul %0, %1, %cst {dimension_numbers = #tpu.dot_dimension_numbers<[1], [0], [0], [1], [0, 0, 1, 1], [], []>} : vector<32x48xbf16>, vector<48x20xbf16>, vector<32x20xf32> -> vector<32x20xf32>
    %c0_3 = arith.constant 0 : index
    %c0_4 = arith.constant 0 : index
    %3 = vector.load %arg3[%c0_3, %c0_4] : memref<32x20xf32, #tpu.memory_space<vmem>>, vector<32x20xf32>
    tpu.vector_store %arg3[%c0_3, %c0_4], %2 {strides = array<i32>} : memref<32x20xf32, #tpu.memory_space<vmem>>, vector<32x20xf32>,
    return
  }
  func.func @transform_0(%arg0: i32) -> (i32, i32) {
    %c0_i32 = arith.constant 0 : i32
    %c0_i32_0 = arith.constant 0 : i32
    return %arg0, %c0_i32 : i32, i32
  }
  func.func @transform_1(%arg0: i32) -> (i32, i32) {
    %c0_i32 = arith.constant 0 : i32
    %c0_i32_0 = arith.constant 0 : i32
    %c0_i32_1 = arith.constant 0 : i32
    return %c0_i32, %c0_i32_0 : i32, i32
  }
  func.func @transform_2(%arg0: i32) -> (i32, i32) {
    %c0_i32 = arith.constant 0 : i32
    %c0_i32_0 = arith.constant 0 : i32
    return %arg0, %c0_i32 : i32, i32
  }
}

module attributes {stable_mosaic.version = 11 : i64} {
  func.func @_gemm_kernel(%arg0: i32, %arg1: memref<8x80xbf16, #tpu.memory_space<vmem>>, %arg2: memref<80x40xbf16, #tpu.memory_space<vmem>>, %arg3: memref<8x40xf32, #tpu.memory_space<vmem>>) attributes {dimension_semantics = [#tpu.dimension_semantics<parallel>], iteration_bounds = array<i64: 1>, scalar_prefetch = 0 : i64, scratch_operands = 0 : i64, tpu.core_type = #tpu.core_type<tc>, window_params = [{transform_indices = @transform_0, window_bounds = array<i64: 8, 80>}, {pipeline_mode = #tpu.pipeline_mode<synchronous>, transform_indices = @transform_1, window_bounds = array<i64: 80, 40>}, {transform_indices = @transform_2, window_bounds = array<i64: 8, 40>}]} {
    %c0 = arith.constant 0 : index
    %c0_0 = arith.constant 0 : index
    %0 = vector.load %arg1[%c0, %c0_0] : memref<8x80xbf16, #tpu.memory_space<vmem>>, vector<8x80xbf16>
    %c0_1 = arith.constant 0 : index
    %c0_2 = arith.constant 0 : index
    %1 = vector.load %arg2[%c0_1, %c0_2] : memref<80x40xbf16, #tpu.memory_space<vmem>>, vector<80x40xbf16>
    %cst = arith.constant dense<0.000000e+00> : vector<8x40xf32>
    %2 = tpu.matmul %0, %1, %cst {dimension_numbers = #tpu.dot_dimension_numbers<[1], [0], [0], [1], [0, 0, 1, 1], [], []>} : vector<8x80xbf16>, vector<80x40xbf16>, vector<8x40xf32> -> vector<8x40xf32>
    %c0_3 = arith.constant 0 : index
    %c0_4 = arith.constant 0 : index
    %3 = vector.load %arg3[%c0_3, %c0_4] : memref<8x40xf32, #tpu.memory_space<vmem>>, vector<8x40xf32>
    tpu.vector_store %arg3[%c0_3, %c0_4], %2 {strides = array<i32>} : memref<8x40xf32, #tpu.memory_space<vmem>>, vector<8x40xf32>,
    return
  }
  func.func @transform_0(%arg0: i32) -> (i32, i32) {
    %c0_i32 = arith.constant 0 : i32
    %c0_i32_0 = arith.constant 0 : i32
    return %arg0, %c0_i32 : i32, i32
  }
  func.func @transform_1(%arg0: i32) -> (i32, i32) {
    %c0_i32 = arith.constant 0 : i32
    %c0_i32_0 = arith.constant 0 : i32
    %c0_i32_1 = arith.constant 0 : i32
    return %c0_i32, %c0_i32_0 : i32, i32
  }
  func.func @transform_2(%arg0: i32) -> (i32, i32) {
    %c0_i32 = arith.constant 0 : i32
    %c0_i32_0 = arith.constant 0 : i32
    return %arg0, %c0_i32 : i32, i32
  }
}

module attributes {stable_mosaic.version = 11 : i64} {
  func.func @_block_kernel(%arg0: i32, %arg1: memref<1x4x4x20xf32, #tpu.memory_space<vmem>>, %arg2: memref<1x1x20xf32, #tpu.memory_space<vmem>>, %arg3: memref<1x1x20xf32, #tpu.memory_space<vmem>>, %arg4: memref<20x20xbf16, #tpu.memory_space<vmem>>, %arg5: memref<1x20xf32, #tpu.memory_space<vmem>>, %arg6: memref<4x20xbf16, #tpu.memory_space<vmem>>, %arg7: memref<4x20xbf16, #tpu.memory_space<vmem>>, %arg8: memref<4x20xbf16, #tpu.memory_space<vmem>>, %arg9: memref<4x20xbf16, #tpu.memory_space<vmem>>, %arg10: memref<4x20xbf16, #tpu.memory_space<vmem>>, %arg11: memref<1x20xf32, #tpu.memory_space<vmem>>, %arg12: memref<1x1x20xf32, #tpu.memory_space<vmem>>, %arg13: memref<1x1x20xf32, #tpu.memory_space<vmem>>, %arg14: memref<4x4xbf16, #tpu.memory_space<vmem>>, %arg15: memref<1x4x1xf32, #tpu.memory_space<vmem>>, %arg16: memref<4x4xbf16, #tpu.memory_space<vmem>>, %arg17: memref<4x1x1xf32, #tpu.memory_space<vmem>>, %arg18: memref<20x20xbf16, #tpu.memory_space<vmem>>, %arg19: memref<20x20xbf16, #tpu.memory_space<vmem>>, %arg20: memref<20x20xbf16, #tpu.memory_space<vmem>>, %arg21: memref<1x20xf32, #tpu.memory_space<vmem>>, %arg22: memref<1x20xf32, #tpu.memory_space<vmem>>, %arg23: memref<20x60xbf16, #tpu.memory_space<vmem>>, %arg24: memref<1x60xf32, #tpu.memory_space<vmem>>, %arg25: memref<60x20xbf16, #tpu.memory_space<vmem>>, %arg26: memref<1x20xf32, #tpu.memory_space<vmem>>, %arg27: memref<1x4x4x20xf32, #tpu.memory_space<vmem>>) attributes {dimension_semantics = [#tpu.dimension_semantics<parallel>], iteration_bounds = array<i64: 2>, scalar_prefetch = 0 : i64, scratch_operands = 0 : i64, tpu.core_type = #tpu.core_type<tc>, window_params = [{transform_indices = @transform_0, window_bounds = array<i64: 1, 4, 4, 20>}, {pipeline_mode = #tpu.pipeline_mode<synchronous>, transform_indices = @transform_1, window_bounds = array<i64: 1, 1, 20>}, {pipeline_mode = #tpu.pipeline_mode<synchronous>, transform_indices = @transform_2, window_bounds = array<i64: 1, 1, 20>}, {pipeline_mode = #tpu.pipeline_mode<synchronous>, transform_indices = @transform_3, window_bounds = array<i64: 20, 20>}, {pipeline_mode = #tpu.pipeline_mode<synchronous>, transform_indices = @transform_4, window_bounds = array<i64: 1, 20>}, {pipeline_mode = #tpu.pipeline_mode<synchronous>, transform_indices = @transform_5, window_bounds = array<i64: 4, 20>}, {pipeline_mode = #tpu.pipeline_mode<synchronous>, transform_indices = @transform_6, window_bounds = array<i64: 4, 20>}, {pipeline_mode = #tpu.pipeline_mode<synchronous>, transform_indices = @transform_7, window_bounds = array<i64: 4, 20>}, {pipeline_mode = #tpu.pipeline_mode<synchronous>, transform_indices = @transform_8, window_bounds = array<i64: 4, 20>}, {pipeline_mode = #tpu.pipeline_mode<synchronous>, transform_indices = @transform_9, window_bounds = array<i64: 4, 20>}, {pipeline_mode = #tpu.pipeline_mode<synchronous>, transform_indices = @transform_10, window_bounds = array<i64: 1, 20>}, {pipeline_mode = #tpu.pipeline_mode<synchronous>, transform_indices = @transform_11, window_bounds = array<i64: 1, 1, 20>}, {pipeline_mode = #tpu.pipeline_mode<synchronous>, transform_indices = @transform_12, window_bounds = array<i64: 1, 1, 20>}, {pipeline_mode = #tpu.pipeline_mode<synchronous>, transform_indices = @transform_13, window_bounds = array<i64: 4, 4>}, {pipeline_mode = #tpu.pipeline_mode<synchronous>, transform_indices = @transform_14, window_bounds = array<i64: 1, 4, 1>}, {pipeline_mode = #tpu.pipeline_mode<synchronous>, transform_indices = @transform_15, window_bounds = array<i64: 4, 4>}, {pipeline_mode = #tpu.pipeline_mode<synchronous>, transform_indices = @transform_16, window_bounds = array<i64: 4, 1, 1>}, {pipeline_mode = #tpu.pipeline_mode<synchronous>, transform_indices = @transform_17, window_bounds = array<i64: 20, 20>}, {pipeline_mode = #tpu.pipeline_mode<synchronous>, transform_indices = @transform_18, window_bounds = array<i64: 20, 20>}, {pipeline_mode = #tpu.pipeline_mode<synchronous>, transform_indices = @transform_19, window_bounds = array<i64: 20, 20>}, {pipeline_mode = #tpu.pipeline_mode<synchronous>, transform_indices = @transform_20, window_bounds = array<i64: 1, 20>}, {pipeline_mode = #tpu.pipeline_mode<synchronous>, transform_indices = @transform_21, window_bounds = array<i64: 1, 20>}, {pipeline_mode = #tpu.pipeline_mode<synchronous>, transform_indices = @transform_22, window_bounds = array<i64: 20, 60>}, {pipeline_mode = #tpu.pipeline_mode<synchronous>, transform_indices = @transform_23, window_bounds = array<i64: 1, 60>}, {pipeline_mode = #tpu.pipeline_mode<synchronous>, transform_indices = @transform_24, window_bounds = array<i64: 60, 20>}, {pipeline_mode = #tpu.pipeline_mode<synchronous>, transform_indices = @transform_25, window_bounds = array<i64: 1, 20>}, {transform_indices = @transform_26, window_bounds = array<i64: 1, 4, 4, 20>}]} {
    %c0 = arith.constant 0 : index
    %c0_0 = arith.constant 0 : index
    %c0_1 = arith.constant 0 : index
    %c0_2 = arith.constant 0 : index
    %0 = vector.load %arg1[%c0, %c0_0, %c0_1, %c0_2] : memref<1x4x4x20xf32, #tpu.memory_space<vmem>>, vector<1x4x4x20xf32>
    %1 = vector.shape_cast %0 : vector<1x4x4x20xf32> to vector<4x4x20xf32>
    %c0_3 = arith.constant 0 : index
    %c0_4 = arith.constant 0 : index
    %c0_5 = arith.constant 0 : index
    %2 = vector.load %arg2[%c0_3, %c0_4, %c0_5] : memref<1x1x20xf32, #tpu.memory_space<vmem>>, vector<1x1x20xf32>
    %3 = vector.broadcast %2 : vector<1x1x20xf32> to vector<4x4x20xf32>
    %4 = arith.mulf %1, %3 : vector<4x4x20xf32>
    %c0_6 = arith.constant 0 : index
    %c0_7 = arith.constant 0 : index
    %c0_8 = arith.constant 0 : index
    %5 = vector.load %arg3[%c0_6, %c0_7, %c0_8] : memref<1x1x20xf32, #tpu.memory_space<vmem>>, vector<1x1x20xf32>
    %6 = vector.broadcast %5 : vector<1x1x20xf32> to vector<4x4x20xf32>
    %7 = arith.addf %4, %6 : vector<4x4x20xf32>
    %cst = arith.constant 5.000000e-01 : f32
    %8 = vector.broadcast %cst : f32 to vector<4x4x20xf32>
    %9 = arith.mulf %8, %7 : vector<4x4x20xf32>
    %cst_9 = arith.constant 0.707106769 : f32
    %10 = vector.broadcast %cst_9 : f32 to vector<4x4x20xf32>
    %11 = arith.mulf %7, %10 : vector<4x4x20xf32>
    %12 = math.erf %11 : vector<4x4x20xf32>
    %cst_10 = arith.constant 1.000000e+00 : f32
    %13 = vector.broadcast %cst_10 : f32 to vector<4x4x20xf32>
    %14 = arith.addf %13, %12 : vector<4x4x20xf32>
    %15 = arith.mulf %9, %14 : vector<4x4x20xf32>
    %16 = vector.shape_cast %15 : vector<4x4x20xf32> to vector<16x20xf32>
    %17 = arith.truncf %16 : vector<16x20xf32> to vector<16x20xbf16>
    %c0_11 = arith.constant 0 : index
    %c0_12 = arith.constant 0 : index
    %18 = vector.load %arg4[%c0_11, %c0_12] : memref<20x20xbf16, #tpu.memory_space<vmem>>, vector<20x20xbf16>
    %cst_13 = arith.constant dense<0.000000e+00> : vector<16x20xf32>
    %19 = tpu.matmul %17, %18, %cst_13 {dimension_numbers = #tpu.dot_dimension_numbers<[1], [0], [0], [1], [0, 0, 1, 1], [], []>} : vector<16x20xbf16>, vector<20x20xbf16>, vector<16x20xf32> -> vector<16x20xf32>
    %c0_14 = arith.constant 0 : index
    %c0_15 = arith.constant 0 : index
    %20 = vector.load %arg5[%c0_14, %c0_15] : memref<1x20xf32, #tpu.memory_space<vmem>>, vector<1x20xf32>
    %21 = vector.broadcast %20 : vector<1x20xf32> to vector<16x20xf32>
    %22 = arith.addf %19, %21 : vector<16x20xf32>
    %23 = vector.shape_cast %22 : vector<16x20xf32> to vector<4x4x20xf32>
    %cst_16 = arith.constant 0.000000e+00 : f32
    %24 = vector.broadcast %cst_16 : f32 to vector<1x4x4xf32>
    %cst_17 = arith.constant 0.000000e+00 : f32
    %25 = vector.broadcast %cst_17 : f32 to vector<1x4x4xf32>
    %cst_18 = arith.constant 0.000000e+00 : f32
    %26 = vector.broadcast %cst_18 : f32 to vector<4x1x4xf32>
    %cst_19 = arith.constant 0.000000e+00 : f32
    %27 = vector.broadcast %cst_19 : f32 to vector<4x1x4xf32>
    %28 = vector.extract_strided_slice %23 {offsets = [1, 0, 0], sizes = [3, 4, 4], strides = [1, 1, 1]} : vector<4x4x20xf32> to vector<3x4x4xf32>
    %29 = tpu.concatenate %28, %24 in 0 : vector<3x4x4xf32>, vector<1x4x4xf32> -> vector<4x4x4xf32>
    %30 = vector.extract_strided_slice %23 {offsets = [0, 0, 4], sizes = [3, 4, 4], strides = [1, 1, 1]} : vector<4x4x20xf32> to vector<3x4x4xf32>
    %31 = tpu.concatenate %25, %30 in 0 : vector<1x4x4xf32>, vector<3x4x4xf32> -> vector<4x4x4xf32>
    %32 = vector.extract_strided_slice %23 {offsets = [0, 0, 8], sizes = [4, 3, 4], strides = [1, 1, 1]} : vector<4x4x20xf32> to vector<4x3x4xf32>
    %33 = tpu.concatenate %27, %32 in 1 : vector<4x1x4xf32>, vector<4x3x4xf32> -> vector<4x4x4xf32>
    %34 = vector.extract_strided_slice %23 {offsets = [0, 1, 12], sizes = [4, 3, 4], strides = [1, 1, 1]} : vector<4x4x20xf32> to vector<4x3x4xf32>
    %35 = tpu.concatenate %34, %26 in 1 : vector<4x3x4xf32>, vector<4x1x4xf32> -> vector<4x4x4xf32>
    %36 = vector.extract_strided_slice %23 {offsets = [0, 0, 16], sizes = [4, 4, 4], strides = [1, 1, 1]} : vector<4x4x20xf32> to vector<4x4x4xf32>
    %37 = vector.shape_cast %29 : vector<4x4x4xf32> to vector<16x4xf32>
    %38 = arith.truncf %37 : vector<16x4xf32> to vector<16x4xbf16>
    %c0_20 = arith.constant 0 : index
    %c0_21 = arith.constant 0 : index
    %39 = vector.load %arg6[%c0_20, %c0_21] : memref<4x20xbf16, #tpu.memory_space<vmem>>, vector<4x20xbf16>
    %cst_22 = arith.constant dense<0.000000e+00> : vector<16x20xf32>
    %40 = tpu.matmul %38, %39, %cst_22 {dimension_numbers = #tpu.dot_dimension_numbers<[1], [0], [0], [1], [0, 0, 1, 1], [], []>} : vector<16x4xbf16>, vector<4x20xbf16>, vector<16x20xf32> -> vector<16x20xf32>
    %41 = vector.shape_cast %31 : vector<4x4x4xf32> to vector<16x4xf32>
    %42 = arith.truncf %41 : vector<16x4xf32> to vector<16x4xbf16>
    %c0_23 = arith.constant 0 : index
    %c0_24 = arith.constant 0 : index
    %43 = vector.load %arg7[%c0_23, %c0_24] : memref<4x20xbf16, #tpu.memory_space<vmem>>, vector<4x20xbf16>
    %cst_25 = arith.constant dense<0.000000e+00> : vector<16x20xf32>
    %44 = tpu.matmul %42, %43, %cst_25 {dimension_numbers = #tpu.dot_dimension_numbers<[1], [0], [0], [1], [0, 0, 1, 1], [], []>} : vector<16x4xbf16>, vector<4x20xbf16>, vector<16x20xf32> -> vector<16x20xf32>
    %45 = arith.addf %40, %44 : vector<16x20xf32>
    %46 = vector.shape_cast %33 : vector<4x4x4xf32> to vector<16x4xf32>
    %47 = arith.truncf %46 : vector<16x4xf32> to vector<16x4xbf16>
    %c0_26 = arith.constant 0 : index
    %c0_27 = arith.constant 0 : index
    %48 = vector.load %arg8[%c0_26, %c0_27] : memref<4x20xbf16, #tpu.memory_space<vmem>>, vector<4x20xbf16>
    %cst_28 = arith.constant dense<0.000000e+00> : vector<16x20xf32>
    %49 = tpu.matmul %47, %48, %cst_28 {dimension_numbers = #tpu.dot_dimension_numbers<[1], [0], [0], [1], [0, 0, 1, 1], [], []>} : vector<16x4xbf16>, vector<4x20xbf16>, vector<16x20xf32> -> vector<16x20xf32>
    %50 = arith.addf %45, %49 : vector<16x20xf32>
    %51 = vector.shape_cast %35 : vector<4x4x4xf32> to vector<16x4xf32>
    %52 = arith.truncf %51 : vector<16x4xf32> to vector<16x4xbf16>
    %c0_29 = arith.constant 0 : index
    %c0_30 = arith.constant 0 : index
    %53 = vector.load %arg9[%c0_29, %c0_30] : memref<4x20xbf16, #tpu.memory_space<vmem>>, vector<4x20xbf16>
    %cst_31 = arith.constant dense<0.000000e+00> : vector<16x20xf32>
    %54 = tpu.matmul %52, %53, %cst_31 {dimension_numbers = #tpu.dot_dimension_numbers<[1], [0], [0], [1], [0, 0, 1, 1], [], []>} : vector<16x4xbf16>, vector<4x20xbf16>, vector<16x20xf32> -> vector<16x20xf32>
    %55 = arith.addf %50, %54 : vector<16x20xf32>
    %56 = vector.shape_cast %36 : vector<4x4x4xf32> to vector<16x4xf32>
    %57 = arith.truncf %56 : vector<16x4xf32> to vector<16x4xbf16>
    %c0_32 = arith.constant 0 : index
    %c0_33 = arith.constant 0 : index
    %58 = vector.load %arg10[%c0_32, %c0_33] : memref<4x20xbf16, #tpu.memory_space<vmem>>, vector<4x20xbf16>
    %cst_34 = arith.constant dense<0.000000e+00> : vector<16x20xf32>
    %59 = tpu.matmul %57, %58, %cst_34 {dimension_numbers = #tpu.dot_dimension_numbers<[1], [0], [0], [1], [0, 0, 1, 1], [], []>} : vector<16x4xbf16>, vector<4x20xbf16>, vector<16x20xf32> -> vector<16x20xf32>
    %60 = arith.addf %55, %59 : vector<16x20xf32>
    %c0_35 = arith.constant 0 : index
    %c0_36 = arith.constant 0 : index
    %61 = vector.load %arg11[%c0_35, %c0_36] : memref<1x20xf32, #tpu.memory_space<vmem>>, vector<1x20xf32>
    %62 = vector.broadcast %61 : vector<1x20xf32> to vector<16x20xf32>
    %63 = arith.addf %60, %62 : vector<16x20xf32>
    %64 = vector.shape_cast %63 : vector<16x20xf32> to vector<4x4x20xf32>
    %c0_37 = arith.constant 0 : index
    %c0_38 = arith.constant 0 : index
    %c0_39 = arith.constant 0 : index
    %65 = vector.load %arg12[%c0_37, %c0_38, %c0_39] : memref<1x1x20xf32, #tpu.memory_space<vmem>>, vector<1x1x20xf32>
    %66 = vector.broadcast %65 : vector<1x1x20xf32> to vector<4x4x20xf32>
    %67 = arith.mulf %64, %66 : vector<4x4x20xf32>
    %c0_40 = arith.constant 0 : index
    %c0_41 = arith.constant 0 : index
    %c0_42 = arith.constant 0 : index
    %68 = vector.load %arg13[%c0_40, %c0_41, %c0_42] : memref<1x1x20xf32, #tpu.memory_space<vmem>>, vector<1x1x20xf32>
    %69 = vector.broadcast %68 : vector<1x1x20xf32> to vector<4x4x20xf32>
    %70 = arith.addf %67, %69 : vector<4x4x20xf32>
    %cst_43 = arith.constant 5.000000e-01 : f32
    %71 = vector.broadcast %cst_43 : f32 to vector<4x4x20xf32>
    %72 = arith.mulf %71, %70 : vector<4x4x20xf32>
    %cst_44 = arith.constant 0.707106769 : f32
    %73 = vector.broadcast %cst_44 : f32 to vector<4x4x20xf32>
    %74 = arith.mulf %70, %73 : vector<4x4x20xf32>
    %75 = math.erf %74 : vector<4x4x20xf32>
    %cst_45 = arith.constant 1.000000e+00 : f32
    %76 = vector.broadcast %cst_45 : f32 to vector<4x4x20xf32>
    %77 = arith.addf %76, %75 : vector<4x4x20xf32>
    %78 = arith.mulf %72, %77 : vector<4x4x20xf32>
    %79 = arith.truncf %78 : vector<4x4x20xf32> to vector<4x4x20xbf16>
    %80 = vector.shape_cast %79 : vector<4x4x20xbf16> to vector<16x20xbf16>
    %c0_46 = arith.constant 0 : index
    %c0_47 = arith.constant 0 : index
    %81 = vector.load %arg18[%c0_46, %c0_47] : memref<20x20xbf16, #tpu.memory_space<vmem>>, vector<20x20xbf16>
    %cst_48 = arith.constant dense<0.000000e+00> : vector<16x20xf32>
    %82 = tpu.matmul %80, %81, %cst_48 {dimension_numbers = #tpu.dot_dimension_numbers<[1], [0], [0], [1], [0, 0, 1, 1], [], []>} : vector<16x20xbf16>, vector<20x20xbf16>, vector<16x20xf32> -> vector<16x20xf32>
    %c0_49 = arith.constant 0 : index
    %c0_50 = arith.constant 0 : index
    %83 = vector.load %arg14[%c0_49, %c0_50] : memref<4x4xbf16, #tpu.memory_space<vmem>>, vector<4x4xbf16>
    %84 = vector.shape_cast %83 : vector<4x4xbf16> to vector<1x4x4xbf16>
    %85 = vector.shape_cast %84 : vector<1x4x4xbf16> to vector<1x4x4xbf16>
    %86 = vector.broadcast %85 : vector<1x4x4xbf16> to vector<4x4x4xbf16>
    %cst_51 = arith.constant dense<0.000000e+00> : vector<4x4x20xf32>
    %87 = tpu.matmul %86, %79, %cst_51 {dimension_numbers = #tpu.dot_dimension_numbers<[2], [1], [1], [2], [0, 0, 0, 1, 1, 2], [0], [0]>} : vector<4x4x4xbf16>, vector<4x4x20xbf16>, vector<4x4x20xf32> -> vector<4x4x20xf32>
    %c0_52 = arith.constant 0 : index
    %c0_53 = arith.constant 0 : index
    %c0_54 = arith.constant 0 : index
    %88 = vector.load %arg15[%c0_52, %c0_53, %c0_54] : memref<1x4x1xf32, #tpu.memory_space<vmem>>, vector<1x4x1xf32>
    %89 = vector.broadcast %88 : vector<1x4x1xf32> to vector<4x4x20xf32>
    %90 = arith.addf %87, %89 : vector<4x4x20xf32>
    %91 = vector.shape_cast %90 : vector<4x4x20xf32> to vector<16x20xf32>
    %92 = arith.truncf %91 : vector<16x20xf32> to vector<16x20xbf16>
    %c0_55 = arith.constant 0 : index
    %c0_56 = arith.constant 0 : index
    %93 = vector.load %arg19[%c0_55, %c0_56] : memref<20x20xbf16, #tpu.memory_space<vmem>>, vector<20x20xbf16>
    %cst_57 = arith.constant dense<0.000000e+00> : vector<16x20xf32>
    %94 = tpu.matmul %92, %93, %cst_57 {dimension_numbers = #tpu.dot_dimension_numbers<[1], [0], [0], [1], [0, 0, 1, 1], [], []>} : vector<16x20xbf16>, vector<20x20xbf16>, vector<16x20xf32> -> vector<16x20xf32>
    %95 = arith.addf %82, %94 : vector<16x20xf32>
    %c0_58 = arith.constant 0 : index
    %c0_59 = arith.constant 0 : index
    %96 = vector.load %arg16[%c0_58, %c0_59] : memref<4x4xbf16, #tpu.memory_space<vmem>>, vector<4x4xbf16>
    %97 = vector.shape_cast %79 : vector<4x4x20xbf16> to vector<4x80xbf16>
    %cst_60 = arith.constant dense<0.000000e+00> : vector<4x80xf32>
    %98 = tpu.matmul %96, %97, %cst_60 {dimension_numbers = #tpu.dot_dimension_numbers<[1], [0], [0], [1], [0, 0, 1, 1], [], []>} : vector<4x4xbf16>, vector<4x80xbf16>, vector<4x80xf32> -> vector<4x80xf32>
    %99 = vector.shape_cast %98 : vector<4x80xf32> to vector<4x4x20xf32>
    %c0_61 = arith.constant 0 : index
    %c0_62 = arith.constant 0 : index
    %c0_63 = arith.constant 0 : index
    %100 = vector.load %arg17[%c0_61, %c0_62, %c0_63] : memref<4x1x1xf32, #tpu.memory_space<vmem>>, vector<4x1x1xf32>
    %101 = vector.broadcast %100 : vector<4x1x1xf32> to vector<4x4x20xf32>
    %102 = arith.addf %99, %101 : vector<4x4x20xf32>
    %103 = vector.shape_cast %102 : vector<4x4x20xf32> to vector<16x20xf32>
    %104 = arith.truncf %103 : vector<16x20xf32> to vector<16x20xbf16>
    %c0_64 = arith.constant 0 : index
    %c0_65 = arith.constant 0 : index
    %105 = vector.load %arg20[%c0_64, %c0_65] : memref<20x20xbf16, #tpu.memory_space<vmem>>, vector<20x20xbf16>
    %cst_66 = arith.constant dense<0.000000e+00> : vector<16x20xf32>
    %106 = tpu.matmul %104, %105, %cst_66 {dimension_numbers = #tpu.dot_dimension_numbers<[1], [0], [0], [1], [0, 0, 1, 1], [], []>} : vector<16x20xbf16>, vector<20x20xbf16>, vector<16x20xf32> -> vector<16x20xf32>
    %107 = arith.addf %95, %106 : vector<16x20xf32>
    %108 = vector.shape_cast %107 : vector<16x20xf32> to vector<4x4x20xf32>
    %109 = arith.addf %108, %1 : vector<4x4x20xf32>
    %110 = vector.shape_cast %109 : vector<4x4x20xf32> to vector<16x20xf32>
    %cst_67 = arith.constant dense<0.000000e+00> : vector<16xf32>
    %111 = vector.multi_reduction <add>, %110, %cst_67 [1] : vector<16x20xf32> to vector<16xf32>
    %112 = vector.shape_cast %111 : vector<16xf32> to vector<16x1xf32>
    %cst_68 = arith.constant 2.000000e+01 : f32
    %113 = vector.broadcast %cst_68 : f32 to vector<16x1xf32>
    %114 = arith.divf %112, %113 : vector<16x1xf32>
    %115 = vector.broadcast %114 : vector<16x1xf32> to vector<16x20xf32>
    %116 = arith.subf %110, %115 : vector<16x20xf32>
    %117 = arith.mulf %116, %116 : vector<16x20xf32>
    %cst_69 = arith.constant dense<0.000000e+00> : vector<16xf32>
    %118 = vector.multi_reduction <add>, %117, %cst_69 [1] : vector<16x20xf32> to vector<16xf32>
    %119 = vector.shape_cast %118 : vector<16xf32> to vector<16x1xf32>
    %cst_70 = arith.constant 2.000000e+01 : f32
    %120 = vector.broadcast %cst_70 : f32 to vector<16x1xf32>
    %121 = arith.divf %119, %120 : vector<16x1xf32>
    %cst_71 = arith.constant 9.99999974E-6 : f32
    %122 = vector.broadcast %cst_71 : f32 to vector<16x1xf32>
    %123 = arith.addf %121, %122 : vector<16x1xf32>
    %124 = math.rsqrt %123 : vector<16x1xf32>
    %125 = vector.broadcast %124 : vector<16x1xf32> to vector<16x20xf32>
    %126 = arith.mulf %116, %125 : vector<16x20xf32>
    %c0_72 = arith.constant 0 : index
    %c0_73 = arith.constant 0 : index
    %127 = vector.load %arg21[%c0_72, %c0_73] : memref<1x20xf32, #tpu.memory_space<vmem>>, vector<1x20xf32>
    %128 = vector.broadcast %127 : vector<1x20xf32> to vector<16x20xf32>
    %129 = arith.mulf %126, %128 : vector<16x20xf32>
    %c0_74 = arith.constant 0 : index
    %c0_75 = arith.constant 0 : index
    %130 = vector.load %arg22[%c0_74, %c0_75] : memref<1x20xf32, #tpu.memory_space<vmem>>, vector<1x20xf32>
    %131 = vector.broadcast %130 : vector<1x20xf32> to vector<16x20xf32>
    %132 = arith.addf %129, %131 : vector<16x20xf32>
    %133 = arith.truncf %132 : vector<16x20xf32> to vector<16x20xbf16>
    %c0_76 = arith.constant 0 : index
    %c0_77 = arith.constant 0 : index
    %134 = vector.load %arg23[%c0_76, %c0_77] : memref<20x60xbf16, #tpu.memory_space<vmem>>, vector<20x60xbf16>
    %cst_78 = arith.constant dense<0.000000e+00> : vector<16x60xf32>
    %135 = tpu.matmul %133, %134, %cst_78 {dimension_numbers = #tpu.dot_dimension_numbers<[1], [0], [0], [1], [0, 0, 1, 1], [], []>} : vector<16x20xbf16>, vector<20x60xbf16>, vector<16x60xf32> -> vector<16x60xf32>
    %c0_79 = arith.constant 0 : index
    %c0_80 = arith.constant 0 : index
    %136 = vector.load %arg24[%c0_79, %c0_80] : memref<1x60xf32, #tpu.memory_space<vmem>>, vector<1x60xf32>
    %137 = vector.broadcast %136 : vector<1x60xf32> to vector<16x60xf32>
    %138 = arith.addf %135, %137 : vector<16x60xf32>
    %cst_81 = arith.constant 5.000000e-01 : f32
    %139 = vector.broadcast %cst_81 : f32 to vector<16x60xf32>
    %140 = arith.mulf %139, %138 : vector<16x60xf32>
    %cst_82 = arith.constant 0.707106769 : f32
    %141 = vector.broadcast %cst_82 : f32 to vector<16x60xf32>
    %142 = arith.mulf %138, %141 : vector<16x60xf32>
    %143 = math.erf %142 : vector<16x60xf32>
    %cst_83 = arith.constant 1.000000e+00 : f32
    %144 = vector.broadcast %cst_83 : f32 to vector<16x60xf32>
    %145 = arith.addf %144, %143 : vector<16x60xf32>
    %146 = arith.mulf %140, %145 : vector<16x60xf32>
    %147 = arith.truncf %146 : vector<16x60xf32> to vector<16x60xbf16>
    %c0_84 = arith.constant 0 : index
    %c0_85 = arith.constant 0 : index
    %148 = vector.load %arg25[%c0_84, %c0_85] : memref<60x20xbf16, #tpu.memory_space<vmem>>, vector<60x20xbf16>
    %cst_86 = arith.constant dense<0.000000e+00> : vector<16x20xf32>
    %149 = tpu.matmul %147, %148, %cst_86 {dimension_numbers = #tpu.dot_dimension_numbers<[1], [0], [0], [1], [0, 0, 1, 1], [], []>} : vector<16x60xbf16>, vector<60x20xbf16>, vector<16x20xf32> -> vector<16x20xf32>
    %c0_87 = arith.constant 0 : index
    %c0_88 = arith.constant 0 : index
    %150 = vector.load %arg26[%c0_87, %c0_88] : memref<1x20xf32, #tpu.memory_space<vmem>>, vector<1x20xf32>
    %151 = vector.broadcast %150 : vector<1x20xf32> to vector<16x20xf32>
    %152 = arith.addf %149, %151 : vector<16x20xf32>
    %153 = arith.addf %152, %110 : vector<16x20xf32>
    %154 = vector.shape_cast %153 : vector<16x20xf32> to vector<4x4x20xf32>
    %c0_89 = arith.constant 0 : index
    %c0_90 = arith.constant 0 : index
    %c0_91 = arith.constant 0 : index
    %c0_92 = arith.constant 0 : index
    %155 = vector.load %arg27[%c0_89, %c0_90, %c0_91, %c0_92] : memref<1x4x4x20xf32, #tpu.memory_space<vmem>>, vector<1x4x4x20xf32>
    %156 = vector.shape_cast %155 : vector<1x4x4x20xf32> to vector<4x4x20xf32>
    %157 = vector.shape_cast %154 : vector<4x4x20xf32> to vector<1x4x4x20xf32>
    tpu.vector_store %arg27[%c0_89, %c0_90, %c0_91, %c0_92], %157 {strides = array<i32>} : memref<1x4x4x20xf32, #tpu.memory_space<vmem>>, vector<1x4x4x20xf32>,
    return
  }
  func.func @transform_0(%arg0: i32) -> (i32, i32, i32, i32) {
    %c0_i32 = arith.constant 0 : i32
    %c0_i32_0 = arith.constant 0 : i32
    %c0_i32_1 = arith.constant 0 : i32
    %c0_i32_2 = arith.constant 0 : i32
    return %arg0, %c0_i32, %c0_i32_0, %c0_i32_1 : i32, i32, i32, i32
  }
  func.func @transform_1(%arg0: i32) -> (i32, i32, i32) {
    %c0_i32 = arith.constant 0 : i32
    %c0_i32_0 = arith.constant 0 : i32
    %c0_i32_1 = arith.constant 0 : i32
    %c0_i32_2 = arith.constant 0 : i32
    return %c0_i32, %c0_i32_0, %c0_i32_1 : i32, i32, i32
  }
  func.func @transform_2(%arg0: i32) -> (i32, i32, i32) {
    %c0_i32 = arith.constant 0 : i32
    %c0_i32_0 = arith.constant 0 : i32
    %c0_i32_1 = arith.constant 0 : i32
    %c0_i32_2 = arith.constant 0 : i32
    return %c0_i32, %c0_i32_0, %c0_i32_1 : i32, i32, i32
  }
  func.func @transform_3(%arg0: i32) -> (i32, i32) {
    %c0_i32 = arith.constant 0 : i32
    %c0_i32_0 = arith.constant 0 : i32
    %c0_i32_1 = arith.constant 0 : i32
    return %c0_i32, %c0_i32_0 : i32, i32
  }
  func.func @transform_4(%arg0: i32) -> (i32, i32) {
    %c0_i32 = arith.constant 0 : i32
    %c0_i32_0 = arith.constant 0 : i32
    %c0_i32_1 = arith.constant 0 : i32
    return %c0_i32, %c0_i32_0 : i32, i32
  }
  func.func @transform_5(%arg0: i32) -> (i32, i32) {
    %c0_i32 = arith.constant 0 : i32
    %c0_i32_0 = arith.constant 0 : i32
    %c0_i32_1 = arith.constant 0 : i32
    return %c0_i32, %c0_i32_0 : i32, i32
  }
  func.func @transform_6(%arg0: i32) -> (i32, i32) {
    %c0_i32 = arith.constant 0 : i32
    %c0_i32_0 = arith.constant 0 : i32
    %c0_i32_1 = arith.constant 0 : i32
    return %c0_i32, %c0_i32_0 : i32, i32
  }
  func.func @transform_7(%arg0: i32) -> (i32, i32) {
    %c0_i32 = arith.constant 0 : i32
    %c0_i32_0 = arith.constant 0 : i32
    %c0_i32_1 = arith.constant 0 : i32
    return %c0_i32, %c0_i32_0 : i32, i32
  }
  func.func @transform_8(%arg0: i32) -> (i32, i32) {
    %c0_i32 = arith.constant 0 : i32
    %c0_i32_0 = arith.constant 0 : i32
    %c0_i32_1 = arith.constant 0 : i32
    return %c0_i32, %c0_i32_0 : i32, i32
  }
  func.func @transform_9(%arg0: i32) -> (i32, i32) {
    %c0_i32 = arith.constant 0 : i32
    %c0_i32_0 = arith.constant 0 : i32
    %c0_i32_1 = arith.constant 0 : i32
    return %c0_i32, %c0_i32_0 : i32, i32
  }
  func.func @transform_10(%arg0: i32) -> (i32, i32) {
    %c0_i32 = arith.constant 0 : i32
    %c0_i32_0 = arith.constant 0 : i32
    %c0_i32_1 = arith.constant 0 : i32
    return %c0_i32, %c0_i32_0 : i32, i32
  }
  func.func @transform_11(%arg0: i32) -> (i32, i32, i32) {
    %c0_i32 = arith.constant 0 : i32
    %c0_i32_0 = arith.constant 0 : i32
    %c0_i32_1 = arith.constant 0 : i32
    %c0_i32_2 = arith.constant 0 : i32
    return %c0_i32, %c0_i32_0, %c0_i32_1 : i32, i32, i32
  }
  func.func @transform_12(%arg0: i32) -> (i32, i32, i32) {
    %c0_i32 = arith.constant 0 : i32
    %c0_i32_0 = arith.constant 0 : i32
    %c0_i32_1 = arith.constant 0 : i32
    %c0_i32_2 = arith.constant 0 : i32
    return %c0_i32, %c0_i32_0, %c0_i32_1 : i32, i32, i32
  }
  func.func @transform_13(%arg0: i32) -> (i32, i32) {
    %c0_i32 = arith.constant 0 : i32
    %c0_i32_0 = arith.constant 0 : i32
    %c0_i32_1 = arith.constant 0 : i32
    return %c0_i32, %c0_i32_0 : i32, i32
  }
  func.func @transform_14(%arg0: i32) -> (i32, i32, i32) {
    %c0_i32 = arith.constant 0 : i32
    %c0_i32_0 = arith.constant 0 : i32
    %c0_i32_1 = arith.constant 0 : i32
    %c0_i32_2 = arith.constant 0 : i32
    return %c0_i32, %c0_i32_0, %c0_i32_1 : i32, i32, i32
  }
  func.func @transform_15(%arg0: i32) -> (i32, i32) {
    %c0_i32 = arith.constant 0 : i32
    %c0_i32_0 = arith.constant 0 : i32
    %c0_i32_1 = arith.constant 0 : i32
    return %c0_i32, %c0_i32_0 : i32, i32
  }
  func.func @transform_16(%arg0: i32) -> (i32, i32, i32) {
    %c0_i32 = arith.constant 0 : i32
    %c0_i32_0 = arith.constant 0 : i32
    %c0_i32_1 = arith.constant 0 : i32
    %c0_i32_2 = arith.constant 0 : i32
    return %c0_i32, %c0_i32_0, %c0_i32_1 : i32, i32, i32
  }
  func.func @transform_17(%arg0: i32) -> (i32, i32) {
    %c0_i32 = arith.constant 0 : i32
    %c0_i32_0 = arith.constant 0 : i32
    %c0_i32_1 = arith.constant 0 : i32
    return %c0_i32, %c0_i32_0 : i32, i32
  }
  func.func @transform_18(%arg0: i32) -> (i32, i32) {
    %c0_i32 = arith.constant 0 : i32
    %c0_i32_0 = arith.constant 0 : i32
    %c0_i32_1 = arith.constant 0 : i32
    return %c0_i32, %c0_i32_0 : i32, i32
  }
  func.func @transform_19(%arg0: i32) -> (i32, i32) {
    %c0_i32 = arith.constant 0 : i32
    %c0_i32_0 = arith.constant 0 : i32
    %c0_i32_1 = arith.constant 0 : i32
    return %c0_i32, %c0_i32_0 : i32, i32
  }
  func.func @transform_20(%arg0: i32) -> (i32, i32) {
    %c0_i32 = arith.constant 0 : i32
    %c0_i32_0 = arith.constant 0 : i32
    %c0_i32_1 = arith.constant 0 : i32
    return %c0_i32, %c0_i32_0 : i32, i32
  }
  func.func @transform_21(%arg0: i32) -> (i32, i32) {
    %c0_i32 = arith.constant 0 : i32
    %c0_i32_0 = arith.constant 0 : i32
    %c0_i32_1 = arith.constant 0 : i32
    return %c0_i32, %c0_i32_0 : i32, i32
  }
  func.func @transform_22(%arg0: i32) -> (i32, i32) {
    %c0_i32 = arith.constant 0 : i32
    %c0_i32_0 = arith.constant 0 : i32
    %c0_i32_1 = arith.constant 0 : i32
    return %c0_i32, %c0_i32_0 : i32, i32
  }
  func.func @transform_23(%arg0: i32) -> (i32, i32) {
    %c0_i32 = arith.constant 0 : i32
    %c0_i32_0 = arith.constant 0 : i32
    %c0_i32_1 = arith.constant 0 : i32
    return %c0_i32, %c0_i32_0 : i32, i32
  }
  func.func @transform_24(%arg0: i32) -> (i32, i32) {
    %c0_i32 = arith.constant 0 : i32
    %c0_i32_0 = arith.constant 0 : i32
    %c0_i32_1 = arith.constant 0 : i32
    return %c0_i32, %c0_i32_0 : i32, i32
  }
  func.func @transform_25(%arg0: i32) -> (i32, i32) {
    %c0_i32 = arith.constant 0 : i32
    %c0_i32_0 = arith.constant 0 : i32
    %c0_i32_1 = arith.constant 0 : i32
    return %c0_i32, %c0_i32_0 : i32, i32
  }
  func.func @transform_26(%arg0: i32) -> (i32, i32, i32, i32) {
    %c0_i32 = arith.constant 0 : i32
    %c0_i32_0 = arith.constant 0 : i32
    %c0_i32_1 = arith.constant 0 : i32
    %c0_i32_2 = arith.constant 0 : i32
    return %arg0, %c0_i32, %c0_i32_0, %c0_i32_1 : i32, i32, i32, i32
  }
}

module attributes {stable_mosaic.version = 11 : i64} {
  func.func @_head_kernel(%arg0: memref<2x4x40xf32, #tpu.memory_space<vmem>>, %arg1: memref<40x10xbf16, #tpu.memory_space<vmem>>, %arg2: memref<1x10xf32, #tpu.memory_space<vmem>>, %arg3: memref<2x10xf32, #tpu.memory_space<vmem>>) attributes {dimension_semantics = [], scalar_prefetch = 0 : i64, scratch_operands = 0 : i64, tpu.core_type = #tpu.core_type<tc>} {
    %c0 = arith.constant 0 : index
    %c0_0 = arith.constant 0 : index
    %c0_1 = arith.constant 0 : index
    %0 = vector.load %arg0[%c0, %c0_0, %c0_1] : memref<2x4x40xf32, #tpu.memory_space<vmem>>, vector<2x4x40xf32>
    %cst = arith.constant dense<0.000000e+00> : vector<2x40xf32>
    %1 = vector.multi_reduction <add>, %0, %cst [1] : vector<2x4x40xf32> to vector<2x40xf32>
    %cst_2 = arith.constant 4.000000e+00 : f32
    %2 = vector.broadcast %cst_2 : f32 to vector<2x40xf32>
    %3 = arith.divf %1, %2 : vector<2x40xf32>
    %4 = arith.truncf %3 : vector<2x40xf32> to vector<2x40xbf16>
    %c0_3 = arith.constant 0 : index
    %c0_4 = arith.constant 0 : index
    %5 = vector.load %arg1[%c0_3, %c0_4] : memref<40x10xbf16, #tpu.memory_space<vmem>>, vector<40x10xbf16>
    %cst_5 = arith.constant dense<0.000000e+00> : vector<2x10xf32>
    %6 = tpu.matmul %4, %5, %cst_5 {dimension_numbers = #tpu.dot_dimension_numbers<[1], [0], [0], [1], [0, 0, 1, 1], [], []>} : vector<2x40xbf16>, vector<40x10xbf16>, vector<2x10xf32> -> vector<2x10xf32>
    %c0_6 = arith.constant 0 : index
    %c0_7 = arith.constant 0 : index
    %7 = vector.load %arg2[%c0_6, %c0_7] : memref<1x10xf32, #tpu.memory_space<vmem>>, vector<1x10xf32>
    %8 = vector.broadcast %7 : vector<1x10xf32> to vector<2x10xf32>
    %9 = arith.addf %6, %8 : vector<2x10xf32>
    %c0_8 = arith.constant 0 : index
    %c0_9 = arith.constant 0 : index
    %10 = vector.load %arg3[%c0_8, %c0_9] : memref<2x10xf32, #tpu.memory_space<vmem>>, vector<2x10xf32>
    tpu.vector_store %arg3[%c0_8, %c0_9], %9 {strides = array<i32>} : memref<2x10xf32, #tpu.memory_space<vmem>>, vector<2x10xf32>,
    return
  }
}

module attributes {stable_mosaic.version = 11 : i64} {
  func.func @_block_kernel(%arg0: i32, %arg1: memref<1x2x2x40xf32, #tpu.memory_space<vmem>>, %arg2: memref<1x1x40xf32, #tpu.memory_space<vmem>>, %arg3: memref<1x1x40xf32, #tpu.memory_space<vmem>>, %arg4: memref<40x40xbf16, #tpu.memory_space<vmem>>, %arg5: memref<1x40xf32, #tpu.memory_space<vmem>>, %arg6: memref<8x40xbf16, #tpu.memory_space<vmem>>, %arg7: memref<8x40xbf16, #tpu.memory_space<vmem>>, %arg8: memref<8x40xbf16, #tpu.memory_space<vmem>>, %arg9: memref<8x40xbf16, #tpu.memory_space<vmem>>, %arg10: memref<8x40xbf16, #tpu.memory_space<vmem>>, %arg11: memref<1x40xf32, #tpu.memory_space<vmem>>, %arg12: memref<1x1x40xf32, #tpu.memory_space<vmem>>, %arg13: memref<1x1x40xf32, #tpu.memory_space<vmem>>, %arg14: memref<2x2xbf16, #tpu.memory_space<vmem>>, %arg15: memref<1x2x1xf32, #tpu.memory_space<vmem>>, %arg16: memref<2x2xbf16, #tpu.memory_space<vmem>>, %arg17: memref<2x1x1xf32, #tpu.memory_space<vmem>>, %arg18: memref<40x40xbf16, #tpu.memory_space<vmem>>, %arg19: memref<40x40xbf16, #tpu.memory_space<vmem>>, %arg20: memref<40x40xbf16, #tpu.memory_space<vmem>>, %arg21: memref<1x40xf32, #tpu.memory_space<vmem>>, %arg22: memref<1x40xf32, #tpu.memory_space<vmem>>, %arg23: memref<40x120xbf16, #tpu.memory_space<vmem>>, %arg24: memref<1x120xf32, #tpu.memory_space<vmem>>, %arg25: memref<120x40xbf16, #tpu.memory_space<vmem>>, %arg26: memref<1x40xf32, #tpu.memory_space<vmem>>, %arg27: memref<1x2x2x40xf32, #tpu.memory_space<vmem>>) attributes {dimension_semantics = [#tpu.dimension_semantics<parallel>], iteration_bounds = array<i64: 2>, scalar_prefetch = 0 : i64, scratch_operands = 0 : i64, tpu.core_type = #tpu.core_type<tc>, window_params = [{transform_indices = @transform_0, window_bounds = array<i64: 1, 2, 2, 40>}, {pipeline_mode = #tpu.pipeline_mode<synchronous>, transform_indices = @transform_1, window_bounds = array<i64: 1, 1, 40>}, {pipeline_mode = #tpu.pipeline_mode<synchronous>, transform_indices = @transform_2, window_bounds = array<i64: 1, 1, 40>}, {pipeline_mode = #tpu.pipeline_mode<synchronous>, transform_indices = @transform_3, window_bounds = array<i64: 40, 40>}, {pipeline_mode = #tpu.pipeline_mode<synchronous>, transform_indices = @transform_4, window_bounds = array<i64: 1, 40>}, {pipeline_mode = #tpu.pipeline_mode<synchronous>, transform_indices = @transform_5, window_bounds = array<i64: 8, 40>}, {pipeline_mode = #tpu.pipeline_mode<synchronous>, transform_indices = @transform_6, window_bounds = array<i64: 8, 40>}, {pipeline_mode = #tpu.pipeline_mode<synchronous>, transform_indices = @transform_7, window_bounds = array<i64: 8, 40>}, {pipeline_mode = #tpu.pipeline_mode<synchronous>, transform_indices = @transform_8, window_bounds = array<i64: 8, 40>}, {pipeline_mode = #tpu.pipeline_mode<synchronous>, transform_indices = @transform_9, window_bounds = array<i64: 8, 40>}, {pipeline_mode = #tpu.pipeline_mode<synchronous>, transform_indices = @transform_10, window_bounds = array<i64: 1, 40>}, {pipeline_mode = #tpu.pipeline_mode<synchronous>, transform_indices = @transform_11, window_bounds = array<i64: 1, 1, 40>}, {pipeline_mode = #tpu.pipeline_mode<synchronous>, transform_indices = @transform_12, window_bounds = array<i64: 1, 1, 40>}, {pipeline_mode = #tpu.pipeline_mode<synchronous>, transform_indices = @transform_13, window_bounds = array<i64: 2, 2>}, {pipeline_mode = #tpu.pipeline_mode<synchronous>, transform_indices = @transform_14, window_bounds = array<i64: 1, 2, 1>}, {pipeline_mode = #tpu.pipeline_mode<synchronous>, transform_indices = @transform_15, window_bounds = array<i64: 2, 2>}, {pipeline_mode = #tpu.pipeline_mode<synchronous>, transform_indices = @transform_16, window_bounds = array<i64: 2, 1, 1>}, {pipeline_mode = #tpu.pipeline_mode<synchronous>, transform_indices = @transform_17, window_bounds = array<i64: 40, 40>}, {pipeline_mode = #tpu.pipeline_mode<synchronous>, transform_indices = @transform_18, window_bounds = array<i64: 40, 40>}, {pipeline_mode = #tpu.pipeline_mode<synchronous>, transform_indices = @transform_19, window_bounds = array<i64: 40, 40>}, {pipeline_mode = #tpu.pipeline_mode<synchronous>, transform_indices = @transform_20, window_bounds = array<i64: 1, 40>}, {pipeline_mode = #tpu.pipeline_mode<synchronous>, transform_indices = @transform_21, window_bounds = array<i64: 1, 40>}, {pipeline_mode = #tpu.pipeline_mode<synchronous>, transform_indices = @transform_22, window_bounds = array<i64: 40, 120>}, {pipeline_mode = #tpu.pipeline_mode<synchronous>, transform_indices = @transform_23, window_bounds = array<i64: 1, 120>}, {pipeline_mode = #tpu.pipeline_mode<synchronous>, transform_indices = @transform_24, window_bounds = array<i64: 120, 40>}, {pipeline_mode = #tpu.pipeline_mode<synchronous>, transform_indices = @transform_25, window_bounds = array<i64: 1, 40>}, {transform_indices = @transform_26, window_bounds = array<i64: 1, 2, 2, 40>}]} {
    %c0 = arith.constant 0 : index
    %c0_0 = arith.constant 0 : index
    %c0_1 = arith.constant 0 : index
    %c0_2 = arith.constant 0 : index
    %0 = vector.load %arg1[%c0, %c0_0, %c0_1, %c0_2] : memref<1x2x2x40xf32, #tpu.memory_space<vmem>>, vector<1x2x2x40xf32>
    %1 = vector.shape_cast %0 : vector<1x2x2x40xf32> to vector<2x2x40xf32>
    %c0_3 = arith.constant 0 : index
    %c0_4 = arith.constant 0 : index
    %c0_5 = arith.constant 0 : index
    %2 = vector.load %arg2[%c0_3, %c0_4, %c0_5] : memref<1x1x40xf32, #tpu.memory_space<vmem>>, vector<1x1x40xf32>
    %3 = vector.broadcast %2 : vector<1x1x40xf32> to vector<2x2x40xf32>
    %4 = arith.mulf %1, %3 : vector<2x2x40xf32>
    %c0_6 = arith.constant 0 : index
    %c0_7 = arith.constant 0 : index
    %c0_8 = arith.constant 0 : index
    %5 = vector.load %arg3[%c0_6, %c0_7, %c0_8] : memref<1x1x40xf32, #tpu.memory_space<vmem>>, vector<1x1x40xf32>
    %6 = vector.broadcast %5 : vector<1x1x40xf32> to vector<2x2x40xf32>
    %7 = arith.addf %4, %6 : vector<2x2x40xf32>
    %cst = arith.constant 5.000000e-01 : f32
    %8 = vector.broadcast %cst : f32 to vector<2x2x40xf32>
    %9 = arith.mulf %8, %7 : vector<2x2x40xf32>
    %cst_9 = arith.constant 0.707106769 : f32
    %10 = vector.broadcast %cst_9 : f32 to vector<2x2x40xf32>
    %11 = arith.mulf %7, %10 : vector<2x2x40xf32>
    %12 = math.erf %11 : vector<2x2x40xf32>
    %cst_10 = arith.constant 1.000000e+00 : f32
    %13 = vector.broadcast %cst_10 : f32 to vector<2x2x40xf32>
    %14 = arith.addf %13, %12 : vector<2x2x40xf32>
    %15 = arith.mulf %9, %14 : vector<2x2x40xf32>
    %16 = vector.shape_cast %15 : vector<2x2x40xf32> to vector<4x40xf32>
    %17 = arith.truncf %16 : vector<4x40xf32> to vector<4x40xbf16>
    %c0_11 = arith.constant 0 : index
    %c0_12 = arith.constant 0 : index
    %18 = vector.load %arg4[%c0_11, %c0_12] : memref<40x40xbf16, #tpu.memory_space<vmem>>, vector<40x40xbf16>
    %cst_13 = arith.constant dense<0.000000e+00> : vector<4x40xf32>
    %19 = tpu.matmul %17, %18, %cst_13 {dimension_numbers = #tpu.dot_dimension_numbers<[1], [0], [0], [1], [0, 0, 1, 1], [], []>} : vector<4x40xbf16>, vector<40x40xbf16>, vector<4x40xf32> -> vector<4x40xf32>
    %c0_14 = arith.constant 0 : index
    %c0_15 = arith.constant 0 : index
    %20 = vector.load %arg5[%c0_14, %c0_15] : memref<1x40xf32, #tpu.memory_space<vmem>>, vector<1x40xf32>
    %21 = vector.broadcast %20 : vector<1x40xf32> to vector<4x40xf32>
    %22 = arith.addf %19, %21 : vector<4x40xf32>
    %23 = vector.shape_cast %22 : vector<4x40xf32> to vector<2x2x40xf32>
    %cst_16 = arith.constant 0.000000e+00 : f32
    %24 = vector.broadcast %cst_16 : f32 to vector<1x2x8xf32>
    %cst_17 = arith.constant 0.000000e+00 : f32
    %25 = vector.broadcast %cst_17 : f32 to vector<1x2x8xf32>
    %cst_18 = arith.constant 0.000000e+00 : f32
    %26 = vector.broadcast %cst_18 : f32 to vector<2x1x8xf32>
    %cst_19 = arith.constant 0.000000e+00 : f32
    %27 = vector.broadcast %cst_19 : f32 to vector<2x1x8xf32>
    %28 = vector.extract_strided_slice %23 {offsets = [1, 0, 0], sizes = [1, 2, 8], strides = [1, 1, 1]} : vector<2x2x40xf32> to vector<1x2x8xf32>
    %29 = tpu.concatenate %28, %24 in 0 : vector<1x2x8xf32>, vector<1x2x8xf32> -> vector<2x2x8xf32>
    %30 = vector.extract_strided_slice %23 {offsets = [0, 0, 8], sizes = [1, 2, 8], strides = [1, 1, 1]} : vector<2x2x40xf32> to vector<1x2x8xf32>
    %31 = tpu.concatenate %25, %30 in 0 : vector<1x2x8xf32>, vector<1x2x8xf32> -> vector<2x2x8xf32>
    %32 = vector.extract_strided_slice %23 {offsets = [0, 0, 16], sizes = [2, 1, 8], strides = [1, 1, 1]} : vector<2x2x40xf32> to vector<2x1x8xf32>
    %33 = tpu.concatenate %27, %32 in 1 : vector<2x1x8xf32>, vector<2x1x8xf32> -> vector<2x2x8xf32>
    %34 = vector.extract_strided_slice %23 {offsets = [0, 1, 24], sizes = [2, 1, 8], strides = [1, 1, 1]} : vector<2x2x40xf32> to vector<2x1x8xf32>
    %35 = tpu.concatenate %34, %26 in 1 : vector<2x1x8xf32>, vector<2x1x8xf32> -> vector<2x2x8xf32>
    %36 = vector.extract_strided_slice %23 {offsets = [0, 0, 32], sizes = [2, 2, 8], strides = [1, 1, 1]} : vector<2x2x40xf32> to vector<2x2x8xf32>
    %37 = vector.shape_cast %29 : vector<2x2x8xf32> to vector<4x8xf32>
    %38 = arith.truncf %37 : vector<4x8xf32> to vector<4x8xbf16>
    %c0_20 = arith.constant 0 : index
    %c0_21 = arith.constant 0 : index
    %39 = vector.load %arg6[%c0_20, %c0_21] : memref<8x40xbf16, #tpu.memory_space<vmem>>, vector<8x40xbf16>
    %cst_22 = arith.constant dense<0.000000e+00> : vector<4x40xf32>
    %40 = tpu.matmul %38, %39, %cst_22 {dimension_numbers = #tpu.dot_dimension_numbers<[1], [0], [0], [1], [0, 0, 1, 1], [], []>} : vector<4x8xbf16>, vector<8x40xbf16>, vector<4x40xf32> -> vector<4x40xf32>
    %41 = vector.shape_cast %31 : vector<2x2x8xf32> to vector<4x8xf32>
    %42 = arith.truncf %41 : vector<4x8xf32> to vector<4x8xbf16>
    %c0_23 = arith.constant 0 : index
    %c0_24 = arith.constant 0 : index
    %43 = vector.load %arg7[%c0_23, %c0_24] : memref<8x40xbf16, #tpu.memory_space<vmem>>, vector<8x40xbf16>
    %cst_25 = arith.constant dense<0.000000e+00> : vector<4x40xf32>
    %44 = tpu.matmul %42, %43, %cst_25 {dimension_numbers = #tpu.dot_dimension_numbers<[1], [0], [0], [1], [0, 0, 1, 1], [], []>} : vector<4x8xbf16>, vector<8x40xbf16>, vector<4x40xf32> -> vector<4x40xf32>
    %45 = arith.addf %40, %44 : vector<4x40xf32>
    %46 = vector.shape_cast %33 : vector<2x2x8xf32> to vector<4x8xf32>
    %47 = arith.truncf %46 : vector<4x8xf32> to vector<4x8xbf16>
    %c0_26 = arith.constant 0 : index
    %c0_27 = arith.constant 0 : index
    %48 = vector.load %arg8[%c0_26, %c0_27] : memref<8x40xbf16, #tpu.memory_space<vmem>>, vector<8x40xbf16>
    %cst_28 = arith.constant dense<0.000000e+00> : vector<4x40xf32>
    %49 = tpu.matmul %47, %48, %cst_28 {dimension_numbers = #tpu.dot_dimension_numbers<[1], [0], [0], [1], [0, 0, 1, 1], [], []>} : vector<4x8xbf16>, vector<8x40xbf16>, vector<4x40xf32> -> vector<4x40xf32>
    %50 = arith.addf %45, %49 : vector<4x40xf32>
    %51 = vector.shape_cast %35 : vector<2x2x8xf32> to vector<4x8xf32>
    %52 = arith.truncf %51 : vector<4x8xf32> to vector<4x8xbf16>
    %c0_29 = arith.constant 0 : index
    %c0_30 = arith.constant 0 : index
    %53 = vector.load %arg9[%c0_29, %c0_30] : memref<8x40xbf16, #tpu.memory_space<vmem>>, vector<8x40xbf16>
    %cst_31 = arith.constant dense<0.000000e+00> : vector<4x40xf32>
    %54 = tpu.matmul %52, %53, %cst_31 {dimension_numbers = #tpu.dot_dimension_numbers<[1], [0], [0], [1], [0, 0, 1, 1], [], []>} : vector<4x8xbf16>, vector<8x40xbf16>, vector<4x40xf32> -> vector<4x40xf32>
    %55 = arith.addf %50, %54 : vector<4x40xf32>
    %56 = vector.shape_cast %36 : vector<2x2x8xf32> to vector<4x8xf32>
    %57 = arith.truncf %56 : vector<4x8xf32> to vector<4x8xbf16>
    %c0_32 = arith.constant 0 : index
    %c0_33 = arith.constant 0 : index
    %58 = vector.load %arg10[%c0_32, %c0_33] : memref<8x40xbf16, #tpu.memory_space<vmem>>, vector<8x40xbf16>
    %cst_34 = arith.constant dense<0.000000e+00> : vector<4x40xf32>
    %59 = tpu.matmul %57, %58, %cst_34 {dimension_numbers = #tpu.dot_dimension_numbers<[1], [0], [0], [1], [0, 0, 1, 1], [], []>} : vector<4x8xbf16>, vector<8x40xbf16>, vector<4x40xf32> -> vector<4x40xf32>
    %60 = arith.addf %55, %59 : vector<4x40xf32>
    %c0_35 = arith.constant 0 : index
    %c0_36 = arith.constant 0 : index
    %61 = vector.load %arg11[%c0_35, %c0_36] : memref<1x40xf32, #tpu.memory_space<vmem>>, vector<1x40xf32>
    %62 = vector.broadcast %61 : vector<1x40xf32> to vector<4x40xf32>
    %63 = arith.addf %60, %62 : vector<4x40xf32>
    %64 = vector.shape_cast %63 : vector<4x40xf32> to vector<2x2x40xf32>
    %c0_37 = arith.constant 0 : index
    %c0_38 = arith.constant 0 : index
    %c0_39 = arith.constant 0 : index
    %65 = vector.load %arg12[%c0_37, %c0_38, %c0_39] : memref<1x1x40xf32, #tpu.memory_space<vmem>>, vector<1x1x40xf32>
    %66 = vector.broadcast %65 : vector<1x1x40xf32> to vector<2x2x40xf32>
    %67 = arith.mulf %64, %66 : vector<2x2x40xf32>
    %c0_40 = arith.constant 0 : index
    %c0_41 = arith.constant 0 : index
    %c0_42 = arith.constant 0 : index
    %68 = vector.load %arg13[%c0_40, %c0_41, %c0_42] : memref<1x1x40xf32, #tpu.memory_space<vmem>>, vector<1x1x40xf32>
    %69 = vector.broadcast %68 : vector<1x1x40xf32> to vector<2x2x40xf32>
    %70 = arith.addf %67, %69 : vector<2x2x40xf32>
    %cst_43 = arith.constant 5.000000e-01 : f32
    %71 = vector.broadcast %cst_43 : f32 to vector<2x2x40xf32>
    %72 = arith.mulf %71, %70 : vector<2x2x40xf32>
    %cst_44 = arith.constant 0.707106769 : f32
    %73 = vector.broadcast %cst_44 : f32 to vector<2x2x40xf32>
    %74 = arith.mulf %70, %73 : vector<2x2x40xf32>
    %75 = math.erf %74 : vector<2x2x40xf32>
    %cst_45 = arith.constant 1.000000e+00 : f32
    %76 = vector.broadcast %cst_45 : f32 to vector<2x2x40xf32>
    %77 = arith.addf %76, %75 : vector<2x2x40xf32>
    %78 = arith.mulf %72, %77 : vector<2x2x40xf32>
    %79 = arith.truncf %78 : vector<2x2x40xf32> to vector<2x2x40xbf16>
    %80 = vector.shape_cast %79 : vector<2x2x40xbf16> to vector<4x40xbf16>
    %c0_46 = arith.constant 0 : index
    %c0_47 = arith.constant 0 : index
    %81 = vector.load %arg18[%c0_46, %c0_47] : memref<40x40xbf16, #tpu.memory_space<vmem>>, vector<40x40xbf16>
    %cst_48 = arith.constant dense<0.000000e+00> : vector<4x40xf32>
    %82 = tpu.matmul %80, %81, %cst_48 {dimension_numbers = #tpu.dot_dimension_numbers<[1], [0], [0], [1], [0, 0, 1, 1], [], []>} : vector<4x40xbf16>, vector<40x40xbf16>, vector<4x40xf32> -> vector<4x40xf32>
    %c0_49 = arith.constant 0 : index
    %c0_50 = arith.constant 0 : index
    %83 = vector.load %arg14[%c0_49, %c0_50] : memref<2x2xbf16, #tpu.memory_space<vmem>>, vector<2x2xbf16>
    %84 = vector.shape_cast %83 : vector<2x2xbf16> to vector<1x2x2xbf16>
    %85 = vector.shape_cast %84 : vector<1x2x2xbf16> to vector<1x2x2xbf16>
    %86 = vector.broadcast %85 : vector<1x2x2xbf16> to vector<2x2x2xbf16>
    %cst_51 = arith.constant dense<0.000000e+00> : vector<2x2x40xf32>
    %87 = tpu.matmul %86, %79, %cst_51 {dimension_numbers = #tpu.dot_dimension_numbers<[2], [1], [1], [2], [0, 0, 0, 1, 1, 2], [0], [0]>} : vector<2x2x2xbf16>, vector<2x2x40xbf16>, vector<2x2x40xf32> -> vector<2x2x40xf32>
    %c0_52 = arith.constant 0 : index
    %c0_53 = arith.constant 0 : index
    %c0_54 = arith.constant 0 : index
    %88 = vector.load %arg15[%c0_52, %c0_53, %c0_54] : memref<1x2x1xf32, #tpu.memory_space<vmem>>, vector<1x2x1xf32>
    %89 = vector.broadcast %88 : vector<1x2x1xf32> to vector<2x2x40xf32>
    %90 = arith.addf %87, %89 : vector<2x2x40xf32>
    %91 = vector.shape_cast %90 : vector<2x2x40xf32> to vector<4x40xf32>
    %92 = arith.truncf %91 : vector<4x40xf32> to vector<4x40xbf16>
    %c0_55 = arith.constant 0 : index
    %c0_56 = arith.constant 0 : index
    %93 = vector.load %arg19[%c0_55, %c0_56] : memref<40x40xbf16, #tpu.memory_space<vmem>>, vector<40x40xbf16>
    %cst_57 = arith.constant dense<0.000000e+00> : vector<4x40xf32>
    %94 = tpu.matmul %92, %93, %cst_57 {dimension_numbers = #tpu.dot_dimension_numbers<[1], [0], [0], [1], [0, 0, 1, 1], [], []>} : vector<4x40xbf16>, vector<40x40xbf16>, vector<4x40xf32> -> vector<4x40xf32>
    %95 = arith.addf %82, %94 : vector<4x40xf32>
    %c0_58 = arith.constant 0 : index
    %c0_59 = arith.constant 0 : index
    %96 = vector.load %arg16[%c0_58, %c0_59] : memref<2x2xbf16, #tpu.memory_space<vmem>>, vector<2x2xbf16>
    %97 = vector.shape_cast %79 : vector<2x2x40xbf16> to vector<2x80xbf16>
    %cst_60 = arith.constant dense<0.000000e+00> : vector<2x80xf32>
    %98 = tpu.matmul %96, %97, %cst_60 {dimension_numbers = #tpu.dot_dimension_numbers<[1], [0], [0], [1], [0, 0, 1, 1], [], []>} : vector<2x2xbf16>, vector<2x80xbf16>, vector<2x80xf32> -> vector<2x80xf32>
    %99 = vector.shape_cast %98 : vector<2x80xf32> to vector<2x2x40xf32>
    %c0_61 = arith.constant 0 : index
    %c0_62 = arith.constant 0 : index
    %c0_63 = arith.constant 0 : index
    %100 = vector.load %arg17[%c0_61, %c0_62, %c0_63] : memref<2x1x1xf32, #tpu.memory_space<vmem>>, vector<2x1x1xf32>
    %101 = vector.broadcast %100 : vector<2x1x1xf32> to vector<2x2x40xf32>
    %102 = arith.addf %99, %101 : vector<2x2x40xf32>
    %103 = vector.shape_cast %102 : vector<2x2x40xf32> to vector<4x40xf32>
    %104 = arith.truncf %103 : vector<4x40xf32> to vector<4x40xbf16>
    %c0_64 = arith.constant 0 : index
    %c0_65 = arith.constant 0 : index
    %105 = vector.load %arg20[%c0_64, %c0_65] : memref<40x40xbf16, #tpu.memory_space<vmem>>, vector<40x40xbf16>
    %cst_66 = arith.constant dense<0.000000e+00> : vector<4x40xf32>
    %106 = tpu.matmul %104, %105, %cst_66 {dimension_numbers = #tpu.dot_dimension_numbers<[1], [0], [0], [1], [0, 0, 1, 1], [], []>} : vector<4x40xbf16>, vector<40x40xbf16>, vector<4x40xf32> -> vector<4x40xf32>
    %107 = arith.addf %95, %106 : vector<4x40xf32>
    %108 = vector.shape_cast %107 : vector<4x40xf32> to vector<2x2x40xf32>
    %109 = arith.addf %108, %1 : vector<2x2x40xf32>
    %110 = vector.shape_cast %109 : vector<2x2x40xf32> to vector<4x40xf32>
    %cst_67 = arith.constant dense<0.000000e+00> : vector<4xf32>
    %111 = vector.multi_reduction <add>, %110, %cst_67 [1] : vector<4x40xf32> to vector<4xf32>
    %112 = vector.shape_cast %111 : vector<4xf32> to vector<4x1xf32>
    %cst_68 = arith.constant 4.000000e+01 : f32
    %113 = vector.broadcast %cst_68 : f32 to vector<4x1xf32>
    %114 = arith.divf %112, %113 : vector<4x1xf32>
    %115 = vector.broadcast %114 : vector<4x1xf32> to vector<4x40xf32>
    %116 = arith.subf %110, %115 : vector<4x40xf32>
    %117 = arith.mulf %116, %116 : vector<4x40xf32>
    %cst_69 = arith.constant dense<0.000000e+00> : vector<4xf32>
    %118 = vector.multi_reduction <add>, %117, %cst_69 [1] : vector<4x40xf32> to vector<4xf32>
    %119 = vector.shape_cast %118 : vector<4xf32> to vector<4x1xf32>
    %cst_70 = arith.constant 4.000000e+01 : f32
    %120 = vector.broadcast %cst_70 : f32 to vector<4x1xf32>
    %121 = arith.divf %119, %120 : vector<4x1xf32>
    %cst_71 = arith.constant 9.99999974E-6 : f32
    %122 = vector.broadcast %cst_71 : f32 to vector<4x1xf32>
    %123 = arith.addf %121, %122 : vector<4x1xf32>
    %124 = math.rsqrt %123 : vector<4x1xf32>
    %125 = vector.broadcast %124 : vector<4x1xf32> to vector<4x40xf32>
    %126 = arith.mulf %116, %125 : vector<4x40xf32>
    %c0_72 = arith.constant 0 : index
    %c0_73 = arith.constant 0 : index
    %127 = vector.load %arg21[%c0_72, %c0_73] : memref<1x40xf32, #tpu.memory_space<vmem>>, vector<1x40xf32>
    %128 = vector.broadcast %127 : vector<1x40xf32> to vector<4x40xf32>
    %129 = arith.mulf %126, %128 : vector<4x40xf32>
    %c0_74 = arith.constant 0 : index
    %c0_75 = arith.constant 0 : index
    %130 = vector.load %arg22[%c0_74, %c0_75] : memref<1x40xf32, #tpu.memory_space<vmem>>, vector<1x40xf32>
    %131 = vector.broadcast %130 : vector<1x40xf32> to vector<4x40xf32>
    %132 = arith.addf %129, %131 : vector<4x40xf32>
    %133 = arith.truncf %132 : vector<4x40xf32> to vector<4x40xbf16>
    %c0_76 = arith.constant 0 : index
    %c0_77 = arith.constant 0 : index
    %134 = vector.load %arg23[%c0_76, %c0_77] : memref<40x120xbf16, #tpu.memory_space<vmem>>, vector<40x120xbf16>
    %cst_78 = arith.constant dense<0.000000e+00> : vector<4x120xf32>
    %135 = tpu.matmul %133, %134, %cst_78 {dimension_numbers = #tpu.dot_dimension_numbers<[1], [0], [0], [1], [0, 0, 1, 1], [], []>} : vector<4x40xbf16>, vector<40x120xbf16>, vector<4x120xf32> -> vector<4x120xf32>
    %c0_79 = arith.constant 0 : index
    %c0_80 = arith.constant 0 : index
    %136 = vector.load %arg24[%c0_79, %c0_80] : memref<1x120xf32, #tpu.memory_space<vmem>>, vector<1x120xf32>
    %137 = vector.broadcast %136 : vector<1x120xf32> to vector<4x120xf32>
    %138 = arith.addf %135, %137 : vector<4x120xf32>
    %cst_81 = arith.constant 5.000000e-01 : f32
    %139 = vector.broadcast %cst_81 : f32 to vector<4x120xf32>
    %140 = arith.mulf %139, %138 : vector<4x120xf32>
    %cst_82 = arith.constant 0.707106769 : f32
    %141 = vector.broadcast %cst_82 : f32 to vector<4x120xf32>
    %142 = arith.mulf %138, %141 : vector<4x120xf32>
    %143 = math.erf %142 : vector<4x120xf32>
    %cst_83 = arith.constant 1.000000e+00 : f32
    %144 = vector.broadcast %cst_83 : f32 to vector<4x120xf32>
    %145 = arith.addf %144, %143 : vector<4x120xf32>
    %146 = arith.mulf %140, %145 : vector<4x120xf32>
    %147 = arith.truncf %146 : vector<4x120xf32> to vector<4x120xbf16>
    %c0_84 = arith.constant 0 : index
    %c0_85 = arith.constant 0 : index
    %148 = vector.load %arg25[%c0_84, %c0_85] : memref<120x40xbf16, #tpu.memory_space<vmem>>, vector<120x40xbf16>
    %cst_86 = arith.constant dense<0.000000e+00> : vector<4x40xf32>
    %149 = tpu.matmul %147, %148, %cst_86 {dimension_numbers = #tpu.dot_dimension_numbers<[1], [0], [0], [1], [0, 0, 1, 1], [], []>} : vector<4x120xbf16>, vector<120x40xbf16>, vector<4x40xf32> -> vector<4x40xf32>
    %c0_87 = arith.constant 0 : index
    %c0_88 = arith.constant 0 : index
    %150 = vector.load %arg26[%c0_87, %c0_88] : memref<1x40xf32, #tpu.memory_space<vmem>>, vector<1x40xf32>
    %151 = vector.broadcast %150 : vector<1x40xf32> to vector<4x40xf32>
    %152 = arith.addf %149, %151 : vector<4x40xf32>
    %153 = arith.addf %152, %110 : vector<4x40xf32>
    %154 = vector.shape_cast %153 : vector<4x40xf32> to vector<2x2x40xf32>
    %c0_89 = arith.constant 0 : index
    %c0_90 = arith.constant 0 : index
    %c0_91 = arith.constant 0 : index
    %c0_92 = arith.constant 0 : index
    %155 = vector.load %arg27[%c0_89, %c0_90, %c0_91, %c0_92] : memref<1x2x2x40xf32, #tpu.memory_space<vmem>>, vector<1x2x2x40xf32>
    %156 = vector.shape_cast %155 : vector<1x2x2x40xf32> to vector<2x2x40xf32>
    %157 = vector.shape_cast %154 : vector<2x2x40xf32> to vector<1x2x2x40xf32>
    tpu.vector_store %arg27[%c0_89, %c0_90, %c0_91, %c0_92], %157 {strides = array<i32>} : memref<1x2x2x40xf32, #tpu.memory_space<vmem>>, vector<1x2x2x40xf32>,
    return
  }
  func.func @transform_0(%arg0: i32) -> (i32, i32, i32, i32) {
    %c0_i32 = arith.constant 0 : i32
    %c0_i32_0 = arith.constant 0 : i32
    %c0_i32_1 = arith.constant 0 : i32
    %c0_i32_2 = arith.constant 0 : i32
    return %arg0, %c0_i32, %c0_i32_0, %c0_i32_1 : i32, i32, i32, i32
  }
  func.func @transform_1(%arg0: i32) -> (i32, i32, i32) {
    %c0_i32 = arith.constant 0 : i32
    %c0_i32_0 = arith.constant 0 : i32
    %c0_i32_1 = arith.constant 0 : i32
    %c0_i32_2 = arith.constant 0 : i32
    return %c0_i32, %c0_i32_0, %c0_i32_1 : i32, i32, i32
  }
  func.func @transform_2(%arg0: i32) -> (i32, i32, i32) {
    %c0_i32 = arith.constant 0 : i32
    %c0_i32_0 = arith.constant 0 : i32
    %c0_i32_1 = arith.constant 0 : i32
    %c0_i32_2 = arith.constant 0 : i32
    return %c0_i32, %c0_i32_0, %c0_i32_1 : i32, i32, i32
  }
  func.func @transform_3(%arg0: i32) -> (i32, i32) {
    %c0_i32 = arith.constant 0 : i32
    %c0_i32_0 = arith.constant 0 : i32
    %c0_i32_1 = arith.constant 0 : i32
    return %c0_i32, %c0_i32_0 : i32, i32
  }
  func.func @transform_4(%arg0: i32) -> (i32, i32) {
    %c0_i32 = arith.constant 0 : i32
    %c0_i32_0 = arith.constant 0 : i32
    %c0_i32_1 = arith.constant 0 : i32
    return %c0_i32, %c0_i32_0 : i32, i32
  }
  func.func @transform_5(%arg0: i32) -> (i32, i32) {
    %c0_i32 = arith.constant 0 : i32
    %c0_i32_0 = arith.constant 0 : i32
    %c0_i32_1 = arith.constant 0 : i32
    return %c0_i32, %c0_i32_0 : i32, i32
  }
  func.func @transform_6(%arg0: i32) -> (i32, i32) {
    %c0_i32 = arith.constant 0 : i32
    %c0_i32_0 = arith.constant 0 : i32
    %c0_i32_1 = arith.constant 0 : i32
    return %c0_i32, %c0_i32_0 : i32, i32
  }
  func.func @transform_7(%arg0: i32) -> (i32, i32) {
    %c0_i32 = arith.constant 0 : i32
    %c0_i32_0 = arith.constant 0 : i32
    %c0_i32_1 = arith.constant 0 : i32
    return %c0_i32, %c0_i32_0 : i32, i32
  }
  func.func @transform_8(%arg0: i32) -> (i32, i32) {
    %c0_i32 = arith.constant 0 : i32
    %c0_i32_0 = arith.constant 0 : i32
    %c0_i32_1 = arith.constant 0 : i32
    return %c0_i32, %c0_i32_0 : i32, i32
  }
  func.func @transform_9(%arg0: i32) -> (i32, i32) {
    %c0_i32 = arith.constant 0 : i32
    %c0_i32_0 = arith.constant 0 : i32
    %c0_i32_1 = arith.constant 0 : i32
    return %c0_i32, %c0_i32_0 : i32, i32
  }
  func.func @transform_10(%arg0: i32) -> (i32, i32) {
    %c0_i32 = arith.constant 0 : i32
    %c0_i32_0 = arith.constant 0 : i32
    %c0_i32_1 = arith.constant 0 : i32
    return %c0_i32, %c0_i32_0 : i32, i32
  }
  func.func @transform_11(%arg0: i32) -> (i32, i32, i32) {
    %c0_i32 = arith.constant 0 : i32
    %c0_i32_0 = arith.constant 0 : i32
    %c0_i32_1 = arith.constant 0 : i32
    %c0_i32_2 = arith.constant 0 : i32
    return %c0_i32, %c0_i32_0, %c0_i32_1 : i32, i32, i32
  }
  func.func @transform_12(%arg0: i32) -> (i32, i32, i32) {
    %c0_i32 = arith.constant 0 : i32
    %c0_i32_0 = arith.constant 0 : i32
    %c0_i32_1 = arith.constant 0 : i32
    %c0_i32_2 = arith.constant 0 : i32
    return %c0_i32, %c0_i32_0, %c0_i32_1 : i32, i32, i32
  }
  func.func @transform_13(%arg0: i32) -> (i32, i32) {
    %c0_i32 = arith.constant 0 : i32
    %c0_i32_0 = arith.constant 0 : i32
    %c0_i32_1 = arith.constant 0 : i32
    return %c0_i32, %c0_i32_0 : i32, i32
  }
  func.func @transform_14(%arg0: i32) -> (i32, i32, i32) {
    %c0_i32 = arith.constant 0 : i32
    %c0_i32_0 = arith.constant 0 : i32
    %c0_i32_1 = arith.constant 0 : i32
    %c0_i32_2 = arith.constant 0 : i32
    return %c0_i32, %c0_i32_0, %c0_i32_1 : i32, i32, i32
  }
  func.func @transform_15(%arg0: i32) -> (i32, i32) {
    %c0_i32 = arith.constant 0 : i32
    %c0_i32_0 = arith.constant 0 : i32
    %c0_i32_1 = arith.constant 0 : i32
    return %c0_i32, %c0_i32_0 : i32, i32
  }
  func.func @transform_16(%arg0: i32) -> (i32, i32, i32) {
    %c0_i32 = arith.constant 0 : i32
    %c0_i32_0 = arith.constant 0 : i32
    %c0_i32_1 = arith.constant 0 : i32
    %c0_i32_2 = arith.constant 0 : i32
    return %c0_i32, %c0_i32_0, %c0_i32_1 : i32, i32, i32
  }
  func.func @transform_17(%arg0: i32) -> (i32, i32) {
    %c0_i32 = arith.constant 0 : i32
    %c0_i32_0 = arith.constant 0 : i32
    %c0_i32_1 = arith.constant 0 : i32
    return %c0_i32, %c0_i32_0 : i32, i32
  }
  func.func @transform_18(%arg0: i32) -> (i32, i32) {
    %c0_i32 = arith.constant 0 : i32
    %c0_i32_0 = arith.constant 0 : i32
    %c0_i32_1 = arith.constant 0 : i32
    return %c0_i32, %c0_i32_0 : i32, i32
  }
  func.func @transform_19(%arg0: i32) -> (i32, i32) {
    %c0_i32 = arith.constant 0 : i32
    %c0_i32_0 = arith.constant 0 : i32
    %c0_i32_1 = arith.constant 0 : i32
    return %c0_i32, %c0_i32_0 : i32, i32
  }
  func.func @transform_20(%arg0: i32) -> (i32, i32) {
    %c0_i32 = arith.constant 0 : i32
    %c0_i32_0 = arith.constant 0 : i32
    %c0_i32_1 = arith.constant 0 : i32
    return %c0_i32, %c0_i32_0 : i32, i32
  }
  func.func @transform_21(%arg0: i32) -> (i32, i32) {
    %c0_i32 = arith.constant 0 : i32
    %c0_i32_0 = arith.constant 0 : i32
    %c0_i32_1 = arith.constant 0 : i32
    return %c0_i32, %c0_i32_0 : i32, i32
  }
  func.func @transform_22(%arg0: i32) -> (i32, i32) {
    %c0_i32 = arith.constant 0 : i32
    %c0_i32_0 = arith.constant 0 : i32
    %c0_i32_1 = arith.constant 0 : i32
    return %c0_i32, %c0_i32_0 : i32, i32
  }
  func.func @transform_23(%arg0: i32) -> (i32, i32) {
    %c0_i32 = arith.constant 0 : i32
    %c0_i32_0 = arith.constant 0 : i32
    %c0_i32_1 = arith.constant 0 : i32
    return %c0_i32, %c0_i32_0 : i32, i32
  }
  func.func @transform_24(%arg0: i32) -> (i32, i32) {
    %c0_i32 = arith.constant 0 : i32
    %c0_i32_0 = arith.constant 0 : i32
    %c0_i32_1 = arith.constant 0 : i32
    return %c0_i32, %c0_i32_0 : i32, i32
  }
  func.func @transform_25(%arg0: i32) -> (i32, i32) {
    %c0_i32 = arith.constant 0 : i32
    %c0_i32_0 = arith.constant 0 : i32
    %c0_i32_1 = arith.constant 0 : i32
    return %c0_i32, %c0_i32_0 : i32, i32
  }
  func.func @transform_26(%arg0: i32) -> (i32, i32, i32, i32) {
    %c0_i32 = arith.constant 0 : i32
    %c0_i32_0 = arith.constant 0 : i32
    %c0_i32_1 = arith.constant 0 : i32
    %c0_i32_2 = arith.constant 0 : i32
    return %arg0, %c0_i32, %c0_i32_0, %c0_i32_1 : i32, i32, i32, i32
  }
}

</mosaic_0001>

<bundles_post_ra>
// kernel: caterpillar_forward.5
= control target key start
LH: loop header
LB: loop body
LE: loop exit
PB: predicated region body
PF: predicated region fallthrough
CT: control target
= control target key end

     0   :  { %vm50_vm0 = vcmask 392192   ;;  %vm106_vm1 = vcmask 162816   ;;  %s184_s1 = inlined_call_operand.vmem [shape: bf16[48,20], index: 1, kind: input, shape index: {}]   ;;  %s185_s0 = inlined_call_operand.vmem [shape: bf16[32,48], index: 0, kind: input, shape index: {}]   ;;  %s186_s2 = inlined_call_operand.vmem [shape: f32[32,20], index: 2, kind: output, shape index: {}]  }
   0x1   :  { %v137_v0 = vld [vmem:[%s184_s1] sm:$0xff]   ;;  %v138_v1 = vld [vmem:[%s184_s1 + $0x8] sm:$0xff]   ;;  %v139_v3 = vld [vmem:[%s184_s1 + $0x10] sm:$0xff]  }
   0x2   :  { %127 = vmatprep.subr.bf16.mxu0 %v137_v0  ;;  %v140_v2 = vld [vmem:[%s185_s0] sm:$0xff]   ;;  %v141_v4 = vld [vmem:[%s185_s0 + $0x8] sm:$0xff]  }
   0x3   :  { %128 = vmatpush3.bf16.msra.mxu0 %v137_v0  ;;  %133 = vmatprep.mubr.msk.bf16.mxu0 %vm50_vm0, %v140_v2 }
   0x4   :  { %129 = vmatprep.subr.bf16.mxu0 %v138_v1 }
   0x7   :  { %130 = vmatpush3.bf16.msra.mxu0 %v138_v1 }
   0x8   :  { %131 = vmatprep.subr.bf16.mxu0 %v139_v3 }
   0xb   :  { %132 = vmatpush3.bf16.msra.mxu0 %v139_v3 }
   0xe   :  { %134 = vmatmul.mubr.msk.bf16.vlgmr.msra.gmra.mrb[0].mxu0 %vm50_vm0, %v141_v4 }
  0xe1   :  { %v135_v5 = vpop.f32.mrb[0].mxu0 }
  0xe2   :  { %109 = vst.msk [vmem:[%s186_s2 + $0x10] sm:$0xff] %vm106_vm1, %v135_v5  ;;  %v91_v6 = vpop.f32.mrb[1].mxu0 }
  0xe3   :  { %107 = vst.msk [vmem:[%s186_s2] sm:$0xff] %vm106_vm1, %v91_v6  ;;  %v136_v7 = vpop.f32.mrb[2].mxu0 }
  0xe4   :  { %110 = vst.msk [vmem:[%s186_s2 + $0x18] sm:$0xff] %vm106_vm1, %v136_v7  ;;  %v94_v8 = vpop.f32.mrb[3].mxu0 }
  0xe5   :  { %108 = vst.msk [vmem:[%s186_s2 + $0x8] sm:$0xff] %vm106_vm1, %v94_v8 }

// kernel: caterpillar_forward.7
= control target key start
LH: loop header
LB: loop body
LE: loop exit
PB: predicated region body
PF: predicated region fallthrough
CT: control target
= control target key end

     0   :  { %v136_v0 = vmov 0.0   ;;  %vm137_vm0 = vmmov 0   ;;  %vm53_vm1 = vcmask 654336   ;;  %vm97_vm2 = vcmask 326656   ;;  %s174_s1 = inlined_call_operand.vmem [shape: bf16[80,40], index: 1, kind: input, shape index: {}]   ;;  %s175_s0 = inlined_call_operand.vmem [shape: bf16[8,80], index: 0, kind: input, shape index: {}]   ;;  %s176_s2 = inlined_call_operand.vmem [shape: f32[8,40], index: 2, kind: output, shape index: {}]  }
   0x1   :  { %115 = vmatprep.subr.bf16.mxu0 %v136_v0  ;;  %v131_v1 = vld [vmem:[%s174_s1] sm:$0xff]   ;;  %125 = vmatprep.mubr.msk.bf16.mxu0 %vm137_vm0, %v136_v0  ;;  %v132_v2 = vld [vmem:[%s174_s1 + $0x8] sm:$0xff]   ;;  %v133_v3 = vld [vmem:[%s174_s1 + $0x10] sm:$0xff]  }
   0x2   :  { %116 = vmatpush3.bf16.msra.mxu0 %v131_v1  ;;  %v134_v4 = vld [vmem:[%s174_s1 + $0x18] sm:$0xff]   ;;  %v135_v5 = vld [vmem:[%s174_s1 + $0x20] sm:$0xff]  }
   0x3   :  { %117 = vmatprep.subr.bf16.mxu0 %v136_v0  ;;  %v12_v6 = vld [vmem:[%s175_s0] sm:$0xf] }
   0x6   :  { %118 = vmatpush3.bf16.msra.mxu0 %v132_v2 }
   0x7   :  { %119 = vmatprep.subr.bf16.mxu0 %v136_v0 }
   0xa   :  { %120 = vmatpush3.bf16.msra.mxu0 %v133_v3 }
   0xb   :  { %121 = vmatprep.subr.bf16.mxu0 %v136_v0 }
   0xe   :  { %122 = vmatpush3.bf16.msra.mxu0 %v134_v4 }
   0xf   :  { %123 = vmatprep.subr.bf16.mxu0 %v136_v0 }
  0x12   :  { %124 = vmatpush3.bf16.msra.mxu0 %v135_v5 }
  0x15   :  { %126 = vmatmul.mubr.msk.bf16.vlgmr.msra.gmra.mrb[0].mxu0 %vm53_vm1, %v12_v6 }
  0xe8   :  { %v91_v7 = vpop.f32.mrb[0].mxu0 }
  0xe9   :  { %98 = vst.msk [vmem:[%s176_s2] sm:$0xff] %vm97_vm2, %v91_v7  ;;  %v127_v8 = vpop.f32.mrb[1].mxu0 }
  0xea   :  { %v94_v9 = vpop.f32.mrb[2].mxu0 }
  0xeb   :  { %v128_v10 = vpop.f32.mrb[3].mxu0 }

// kernel: caterpillar_forward.9
= control target key start
LH: loop header
LB: loop body
LE: loop exit
PB: predicated region body
PF: predicated region fallthrough
CT: control target
= control target key end

     0   :  { %v185_v1 = vmov 0.0   ;;  %vm18_vm0 = vcmask 322560   ;;  %vm186_vm1 = vmmov 0   ;;  %vm76_vm2 = vcmask 1043456   ;;  %s238_s0 = inlined_call_operand.vmem [shape: f32[2,4,40], index: 0, kind: input, shape index: {}]   ;;  %s239_s1 = inlined_call_operand.vmem [shape: bf16[40,10], index: 1, kind: input, shape index: {}]   ;;  %s240_s2 = inlined_call_operand.vmem [shape: f32[1,10], index: 2, kind: input, shape index: {}]   ;;  %s241_s3 = inlined_call_operand.hbm [shape: f32[2,10], index: 3, kind: output, shape index: {}]  }
   0x1   :  { %v158_v0 = vld [vmem:[%s239_s1] sm:$0xff]   ;;  %145 = vmatprep.subr.bf16.mxu0 %v185_v1  ;;  %v159_v2 = vld [vmem:[%s239_s1 + $0x8] sm:$0xff]   ;;  %v160_v3 = vld [vmem:[%s239_s1 + $0x10] ss:$0 sps:$4 sm:$0xff]   ;;  %151 = vmatprep.mubr.msk.bf16.mxu0 %vm186_vm1, %v185_v1 }
   0x2   :  { %146 = vmatpush3.bf16.msra.mxu0 %v158_v0  ;;  %v16_v4 = vld [vmem:[%s238_s0] sm:$0xf]  ;;  %v17_v5 = vld [vmem:[%s238_s0 + $0x4] sm:$0xf] }
   0x3   :  { %147 = vmatprep.subr.bf16.mxu0 %v185_v1  ;;  %v19_v6 = vsel %vm18_vm0, %v16_v4, 0.0  ;;  %v26_v7 = vsel %vm18_vm0, %v17_v5, 0.0 }
   0x4   :  { %v20_v8 = vrot.slane %v19_v6, 4  ;;  %v27_v9 = vrot.slane %v26_v7, 4 }
   0x5   :  { %8 = vsyncpa [#allocation3], 0  ;;  %v78_v10 = vsel %vm76_vm2, %v160_v3, 0  ;;  %vm54_vm3 = vcmask 1041409   ;;  %vm72_vm4 = vcmask 326656   ;;  %s187_s22 = smov [#allocation2]  }
   0x6   :  { %148 = vmatpush3.bf16.msra.mxu0 %v159_v2  ;;  %v21_v11 = vadd.f32 %v20_v8, %v19_v6  ;;  %v28_v12 = vadd.f32 %v27_v9, %v26_v7  ;;  %v136_v29 = vld [vmem:[%s240_s2] ss:$0 sm:$0xff]  ;;  %s128_s23 = sshll.u32 %s187_s22, 4  ;;  %vm120_vm5 = vcmask 74752   ;;  %s129_s23 = int_to_ptr.vmem [resolvable:$true] %s128_s23 }
   0x7   :  { %149 = vmatprep.subr.bf16.mxu0 %v185_v1  ;;  %s161_s24 = scalar_lea.vmem %s129_s23, 32  ;;  %p166_p1 = scmp.lt.s32.totalorder %s129_s23, %s129_s23 }
   0x8   :  { %v22_v13 = vrot.slane %v21_v11, 2  ;;  %v29_v14 = vrot.slane %v28_v12, 2  ;;  %p162_p0 = scmp.ne.s32.totalorder %s129_s23, %s161_s24  ;;  %p167_p2 = scmp.lt.s32.totalorder %s161_s24, %s161_s24 }
   0xa   :  { %150 = vmatpush3.bf16.msra.mxu0 %v78_v10  ;;  %v23_v15 = vadd.f32 %v22_v13, %v21_v11  ;;  %v30_v16 = vadd.f32 %v29_v14, %v28_v12  ;;  %p168_p3 = por %p167_p2, %p166_p1 }
   0xc   :  { %v24_v17 = vrot.slane %v23_v15, 1  ;;  %v31_v18 = vrot.slane %v30_v16, 1  ;;  %p169_p4 = pnand %p168_p3, %p162_p0 }
   0xe   :  { %v25_v19 = vadd.f32 %v24_v17, %v23_v15  ;;  %v32_v20 = vadd.f32 %v31_v18, %v30_v16 }
  0x10   :  { %v34_v21 = vmul.f32 0.25, %v25_v19  ;;  %v35_v22 = vmul.f32 0.25, %v32_v20 }
  0x12   :  { %v36_v23 = vpack.c.bf16 %v34_v21, %v34_v21  ;;  %v37_v24 = vpack.c.bf16 %v35_v22, %v35_v22 }
  0x14   :  { %v52_v25 = vunpack.c.l.b16 %v36_v23  ;;  %v53_v26 = vunpack.c.l.b16 %v37_v24 }
  0x16   :  { %v55_v27 = vsel %vm54_vm3, %v53_v26, %v52_v25 }
  0x17   :  { %v56_v28 = vpack.c.b16 %v55_v27, %v55_v27 }
  0x19   :  { %152 = vmatmul.mubr.msk.bf16.vlgmr.msra.gmra.mrb[0].mxu0 %vm72_vm4, %v56_v28 }
  0xec   :  { %v114_v30 = vpop.f32.mrb[0].mxu0 }
  0xed   :  { %v115_v31 = vadd.f32 %v136_v29, %v114_v30  ;;  %v153_v32 = vpop.f32.mrb[1].mxu0 }
  0xee   :  { %v117_v33 = vpop.f32.mrb[2].mxu0 }
  0xef   :  { %v154_v34 = vpop.f32.mrb[3].mxu0  ;;  %121 = vst.msk [vmem:[#allocation2] sm:$0x3] %vm120_vm5, %v115_v31 }
  0xf0   :  { %172 = shalt.err (!%p169_p4)
}
  0xf1   :  { %s173_s2 = scalar_lea.hbm %s241_s3, 32 }
  0xf2   :  { %p174_p5 = scmp.ne.s32.totalorder %s241_s3, %s173_s2  ;;  %p177_p6 = scmp.lt.u32.totalorder %s173_s2, %s241_s3 }
  0xf4   :  { %p179_p7 = pnand %p177_p6, %p174_p5 }
  0xf6   :  { %182 = shalt.err (!%p179_p7)
}
  0xf7   :  { %131 = dma.vmem_to_hbm [thread:$0]  %s129_s23, 32, %s241_s3, [#allocation3]  }
  0xf8   :  { %183 = dma.done.wait [#allocation3], 32  }
  0xf9   :  { %184 = vsyncadd [#allocation3], 4294967264 }
  0xfa   :  { %135 = vsyncpa [#allocation3], 1 }

// kernel: caterpillar_forward.6
= control target key start
LH: loop header
LB: loop body
LE: loop exit
PB: predicated region body
PF: predicated region fallthrough
CT: control target
= control target key end

     0   :  { %s2726_s27 = smov 0   ;;  %s3010_s0 = inlined_call_operand.vmem [shape: f32[2,4,4,20], index: 0, kind: input, shape index: {}]   ;;  %s3011_s1 = inlined_call_operand.vmem [shape: f32[1,1,20], index: 1, kind: input, shape index: {}]   ;;  %s3012_s2 = inlined_call_operand.vmem [shape: f32[1,1,20], index: 2, kind: input, shape index: {}]   ;;  %s3013_s3 = inlined_call_operand.vmem [shape: bf16[20,20], index: 3, kind: input, shape index: {}]   ;;  %s3014_s4 = inlined_call_operand.vmem [shape: f32[1,20], index: 4, kind: input, shape index: {}]   ;;  %s3015_s5 = inlined_call_operand.vmem [shape: bf16[4,20], index: 5, kind: input, shape index: {}]   ;;  %s3016_s6 = inlined_call_operand.vmem [shape: bf16[4,20], index: 6, kind: input, shape index: {}]   ;;  %s3017_s7 = inlined_call_operand.vmem [shape: bf16[4,20], index: 7, kind: input, shape index: {}]   ;;  %s3018_s8 = inlined_call_operand.vmem [shape: bf16[4,20], index: 8, kind: input, shape index: {}]   ;;  %s3019_s9 = inlined_call_operand.vmem [shape: bf16[4,20], index: 9, kind: input, shape index: {}]   ;;  %s3020_s10 = inlined_call_operand.vmem [shape: f32[1,20], index: 10, kind: input, shape index: {}]   ;;  %s3021_s11 = inlined_call_operand.vmem [shape: f32[1,1,20], index: 11, kind: input, shape index: {}]   ;;  %s3022_s12 = inlined_call_operand.vmem [shape: f32[1,1,20], index: 12, kind: input, shape index: {}]   ;;  %s3023_s13 = inlined_call_operand.vmem [shape: bf16[4,4], index: 13, kind: input, shape index: {}]   ;;  %s3024_s14 = inlined_call_operand.vmem [shape: f32[1,4,1], index: 14, kind: input, shape index: {}]   ;;  %s3025_s15 = inlined_call_operand.vmem [shape: bf16[4,4], index: 15, kind: input, shape index: {}]   ;;  %s3026_s16 = inlined_call_operand.vmem [shape: f32[4,1,1], index: 16, kind: input, shape index: {}]   ;;  %s3027_s17 = inlined_call_operand.vmem [shape: bf16[20,20], index: 17, kind: input, shape index: {}]   ;;  %s3028_s18 = inlined_call_operand.vmem [shape: bf16[20,20], index: 18, kind: input, shape index: {}]   ;;  %s3029_s19 = inlined_call_operand.vmem [shape: bf16[20,20], index: 19, kind: input, shape index: {}]   ;;  %s3030_s20 = inlined_call_operand.vmem [shape: f32[1,20], index: 20, kind: input, shape index: {}]   ;;  %s3031_s21 = inlined_call_operand.vmem [shape: f32[1,20], index: 21, kind: input, shape index: {}]   ;;  %s3032_s22 = inlined_call_operand.vmem [shape: bf16[20,60], index: 22, kind: input, shape index: {}]   ;;  %s3033_s23 = inlined_call_operand.vmem [shape: f32[1,60], index: 23, kind: input, shape index: {}]   ;;  %s3034_s24 = inlined_call_operand.vmem [shape: bf16[60,20], index: 24, kind: input, shape index: {}]   ;;  %s3035_s25 = inlined_call_operand.vmem [shape: f32[1,20], index: 25, kind: input, shape index: {}]   ;;  %s3036_s26 = inlined_call_operand.vmem [shape: f32[2,4,4,20], index: 26, kind: output, shape index: {}]  }
   0x1   :  { %3038 = sst [smem:[#allocation2_spill]] %s3010_s0 }
   0x2   :  { %3039 = sst [smem:[#allocation3_spill]] %s3011_s1 }
   0x3   :  { %3040 = sst [smem:[#allocation4_spill]] %s3012_s2 }
   0x4   :  { %3041 = sst [smem:[#allocation5_spill]] %s3013_s3 }
   0x5   :  { %3042 = sst [smem:[#allocation6_spill]] %s3014_s4 }
   0x6   :  { %3043 = sst [smem:[#allocation7_spill]] %s3015_s5 }
   0x7   :  { %3044 = sst [smem:[#allocation8_spill]] %s3016_s6 }
   0x8   :  { %3045 = sst [smem:[#allocation9_spill]] %s3017_s7 }
   0x9   :  { %3046 = sst [smem:[#allocation10_spill]] %s3018_s8 }
   0xa   :  { %3047 = sst [smem:[#allocation11_spill]] %s3019_s9 }
   0xb   :  { %3048 = sst [smem:[#allocation12_spill]] %s3020_s10 }
   0xc LB: > { %s2280_s3 = sadd.s32 4294967295, %s2572_s27   ;;  %p2284_p0 = scmp.ge.s32.totalorder %s2572_s27, 1  ;;  %s2572_s27 = sphi %s2726_s27, %s36_s27  }
   0xd   : > { %p712_p1 = scmp.lt.s32.totalorder %s2572_s27, 3 }
   0xf   : > { %p713_p2 = pnand %p2284_p0, %p712_p1 }
  0x10   : > { %s3049_s8 = sld [smem:[#allocation5_spill]] (!%p713_p2)  ;;  %v2574_v1 = vmov (!%p713_p2), 0.0   ;;  %vm871_vm0 = vcmask (!%p713_p2), 1041408   ;;  %p782_p3 = scmp.lt.s32.totalorder (!%p713_p2), %s2280_s3, 1  ;;  %vm2575_vm1 = vmmov (!%p713_p2), 0   ;;  %vm867_vm2 = vcmask (!%p713_p2), 162816  }
  0x11   : > { %716 = sbr.rel (%p713_p2) target bundleno = 2145 (0x861), region = 124  ;;  %2381 = vmatprep.subr.bf16.mxu0 (!%p713_p2), %v2574_v1  ;;  %2389 = vmatprep.subr.bf16.mxu1 (!%p713_p2), %v2574_v1  ;;  %s3050_s30 = sld [smem:[#allocation3_spill]] (!%p713_p2)  ;;  %vm955_vm3 = vcmask (!%p713_p2), 1042432   ;;  %vm973_vm4 = vcmask (!%p713_p2), 31744   ;;  %vm942_vm5 = vcmask (!%p713_p2), 1040384   ;;  %vm1678_vm6 = vcmask (!%p713_p2), 326656  }
  0x12   : > { %2385 = vmatprep.mubr.msk.bf16.mxu0 (!%p713_p2), %vm2575_vm1, %v2574_v1  ;;  %2391 = vmatprep.mubr.msk.bf16.mxu1 (!%p713_p2), %vm2575_vm1, %v2574_v1  ;;  %s3051_s6 = sld [smem:[#allocation4_spill]] (!%p713_p2)  ;;  %s3052_s28 = sld [smem:[#allocation2_spill]] (!%p713_p2)  ;;  %vm1681_vm7 = vcmask (!%p713_p2), 490496   ;;  %vm2167_vm8 = vcmask (!%p713_p2), 1045504   ;;  %vm2220_vm9 = vcmask (!%p713_p2), 158720  }
  0x13   : > { %s3053_s9 = sld [smem:[#allocation8_spill]] (!%p713_p2)  ;;  %s3054_s10 = sld [smem:[#allocation6_spill]] (!%p713_p2) }
  0x14   : > { %s3055_s7 = sld [smem:[#allocation11_spill]] (!%p713_p2)  ;;  %s2578_s29 = smov (!%p713_p2), 116  }
  0x15   : > { %s2579_s0 = smov (!%p713_p2), 112   ;;  %s3056_s5 = sld [smem:[#allocation7_spill]] (!%p713_p2) }
  0x16   : > { %v2528_v0 = vld [vmem:[%s3049_s8] sm:$0xff] (!%p713_p2)   ;;  %v2529_v2 = vld [vmem:[%s3049_s8 + $0x8] ss:$0 sps:$4 sm:$0x33] (!%p713_p2)   ;;  %s3057_s1 = sld [smem:[#allocation9_spill]] (!%p713_p2) }
  0x17   : > { %2382 = vmatpush3.bf16.msra.mxu0 (!%p713_p2), %v2528_v0  ;;  %v873_v3 = vsel (!%p713_p2), %vm871_vm0, %v2529_v2, 0  ;;  %v2289_v4 = vld [vmem:[%s3050_s30] ss:$0 sm:$0xff] (!%p713_p2) }
  0x18   : > { %2383 = vmatprep.subr.bf16.mxu0 %v2574_v1  ;;  %s3061_s3 = smov (!%p782_p3, %s2280_s3), 1  ;;  %v2290_v5 = vld [vmem:[%s3051_s6] ss:$0 sm:$0xff]  ;;  %s2586_s6 = smov 68  }
  0x19   : > { %s2339_s2 = sshll.u32 %s3061_s3, 4  ;;  %v972_v41 = vld [vmem:[%s3053_s9] sm:$0x3]  ;;  %s3059_s9 = sld [smem:[#allocation12_spill]] }
  0x1a   : > { %s786_s4 = scalar_lea.vmem %s3052_s28, %s2339_s2  ;;  %v978_v42 = vsel %vm871_vm0, %v972_v41, 0  ;;  %v2291_v43 = vld [vmem:[%s3054_s10] ss:$0 sm:$0xff]  ;;  %s2576_s28 = smov 124   ;;  %v2580_v41 = vmov 0  }
  0x1b   : > { %2384 = vmatpush3.bf16.msra.mxu0 %v873_v3  ;;  %v2763_v6 = vld [vmem:[%s786_s4] sm:$0xf]  ;;  %v2765_v7 = vld [vmem:[%s786_s4 + $0x4] sm:$0xf]  ;;  %v2767_v8 = vld [vmem:[%s786_s4 + $0x8] sm:$0xf]  ;;  %2390 = vmatpush3.bf16.msra.mxu1 %v978_v42 }
  0x1c   : > { %2413 = vmatprep.subr.bf16.mxu0 %v2574_v1  ;;  %v2769_v9 = vld [vmem:[%s786_s4 + $0xc] sm:$0xf]  ;;  %v804_v10 = vmul.f32 %v2289_v4, %v2763_v6  ;;  %v805_v11 = vmul.f32 %v2289_v4, %v2765_v7  ;;  %v806_v12 = vmul.f32 %v2289_v4, %v2767_v8  ;;  %2395 = vmatprep.subr.bf16.mxu1 %v2574_v1  ;;  %v1194_v48 = vld [vmem:[%s3055_s7] sm:$0x3]  ;;  %s2577_s4 = smov 120  }
  0x1d   : > { %v807_v13 = vmul.f32 %v2289_v4, %v2769_v9  ;;  %v1202_v52 = vsel %vm871_vm0, %v1194_v48, 0  ;;  %2526 = vset.pattern.permute.xlu0 %v2580_v41  ;;  %2527 = vset.pattern.permute.xlu1 %v2580_v41 }
  0x1e   : > { %v815_v14 = vadd.f32 %v2290_v5, %v804_v10  ;;  %v816_v15 = vadd.f32 %v2290_v5, %v805_v11  ;;  %v817_v16 = vadd.f32 %v2290_v5, %v806_v12 }
  0x1f   : > { %v818_v17 = vadd.f32 %v2290_v5, %v807_v13 }
  0x20   : > { %v823_v18 = vmul.f32 0.70710677, %v815_v14  ;;  %v824_v19 = vmul.f32 0.70710677, %v816_v15  ;;  %v825_v20 = vmul.f32 0.70710677, %v817_v16 }
  0x21   : > { %v826_v21 = vmul.f32 0.70710677, %v818_v17  ;;  %v819_v22 = vmul.f32 0.5, %v815_v14  ;;  %v820_v24 = vmul.f32 0.5, %v816_v15  ;;  %v821_v26 = vmul.f32 0.5, %v817_v16 }
  0x22   : > { %2542 = verf.f32 %v823_v18  ;;  %v822_v29 = vmul.f32 0.5, %v818_v17 }
  0x23   : > { %2544 = verf.f32 %v824_v19  ;;  %v966_v19 = vld [vmem:[%s3056_s5] sm:$0x3] }
  0x24   : > { %2546 = verf.f32 %v825_v20 }
  0x25   : > { %2548 = verf.f32 %v826_v21 }
  0x2c   : > { %v2543_v23 = vpop.eup %2542 }
  0x2d   : > { %v2545_v25 = vpop.eup %2544  ;;  %v831_v27 = vadd.f32 1.0, %v2543_v23  ;;  %v1025_v23 = vsel %vm871_vm0, %v966_v19, 0 }
  0x2e   : > { %v2547_v28 = vpop.eup %2546  ;;  %v832_v30 = vadd.f32 1.0, %v2545_v25 }
  0x2f   : > { %v2549_v31 = vpop.eup %2548  ;;  %v833_v32 = vadd.f32 1.0, %v2547_v28  ;;  %v835_v33 = vmul.f32 %v831_v27, %v819_v22  ;;  %v1077_v27 = vld [vmem:[%s3057_s1] sm:$0x3]  ;;  %s2587_s1 = smov 108  }
  0x30   : > { %v834_v34 = vadd.f32 1.0, %v2549_v31  ;;  %v836_v35 = vmul.f32 %v832_v30, %v820_v24 }
  0x31   : > { %v837_v36 = vmul.f32 %v833_v32, %v821_v26 }
  0x32   : > { %v838_v37 = vmul.f32 %v834_v34, %v822_v29  ;;  %v843_v38 = vcombine.low %v835_v33, %v836_v35  ;;  %v1082_v29 = vsel %vm871_vm0, %v1077_v27, 0 }
  0x34   : > { %v844_v39 = vcombine.low %v837_v36, %v838_v37 }
  0x36   : > { %v847_v40 = vpack.c.bf16 %v844_v39, %v843_v38 }
  0x38   : > { %2386 = vmatmul.mubr.msk.bf16.vlgmr.msra.gmra.mrb[0].mxu0 %vm867_vm2, %v847_v40 }
  0x39   : > { %2415 = vmatprep.mubr.msk.bf16.mxu0 %vm2575_vm1, %v2574_v1  ;;  %2414 = vmatpush3.bf16.msra.mxu0 %v1202_v52 }
  0x3a   : > { %2425 = vmatprep.subr.bf16.mxu0 %v2574_v1 }
 0x10b   : > { %v909_v44 = vpop.f32.mrb[0].mxu0 }
 0x10c   : > { %v910_v45 = vadd.f32 %v2291_v43, %v909_v44  ;;  %v2387_v46 = vpop.f32.mrb[1].mxu0 }
 0x10d   : > { %v912_v47 = vpop.f32.mrb[2].mxu0 }
 0x10e   : > { %v913_v49 = vadd.f32 %v2291_v43, %v912_v47  ;;  %920 = vrot.lane.b32.xlu0 %v910_v45, %s2576_s28  ;;  %v2388_v50 = vpop.f32.mrb[3].mxu0  ;;  %v918_v51 = vcombine.high %v910_v45, %v910_v45  ;;  %v947_v54 = vrot.slane %v910_v45, 1  ;;  %v926_v56 = vrot.slane %v910_v45, 7 }
 0x110   : > { %924 = vrot.lane.b32.xlu1 %v913_v49, %s2576_s28  ;;  %v919_v53 = vcombine.high %v913_v49, %v913_v49  ;;  %v948_v55 = vrot.slane %v918_v51, 1  ;;  %v949_v57 = vrot.slane %v913_v49, 1  ;;  %v961_v58 = vcombine.low %v918_v51, %v913_v49 }
 0x111   : > { %v1189_v61 = vcombine.low %v910_v45, %v918_v51  ;;  %v927_v63 = vrot.slane %v918_v51, 7  ;;  %v956_v2 = vsel %vm955_vm3, %v947_v54, 0.0  ;;  %v928_v13 = vrot.slane %v913_v49, 7 }
 0x112   : > { %922 = vrot.lane.b32.xlu0 %v918_v51, %s2576_s28  ;;  %v950_v59 = vrot.slane %v919_v53, 1  ;;  %v957_v60 = vsel %vm955_vm3, %v948_v55, 0.0  ;;  %v1190_v62 = vcombine.low %v913_v49, %v919_v53  ;;  %v962_v0 = vcombine.low %v919_v53, %v2574_v1  ;;  %s2583_s28 = smov 20  }
 0x113   : > { %v958_v3 = vsel %vm955_vm3, %v949_v57, 0.0  ;;  %v1131_v10 = vcombine.low %v956_v2, %v957_v60  ;;  %v929_v15 = vrot.slane %v919_v53, 7  ;;  %v2300_v2 = vld [vmem:[%s3059_s9] ss:$0 sm:$0xff]  ;;  %s2585_s9 = smov 60  }
 0x114   : > { %930 = vrot.lane.b32.xlu1 %v926_v56, %s2577_s4  ;;  %v959_v4 = vsel %vm955_vm3, %v950_v59, 0.0  ;;  %v1193_v5 = vpack.c.bf16 %v1190_v62, %v1189_v61  ;;  %v965_v12 = vpack.c.bf16 %v962_v0, %v961_v58 }
 0x115   : > { %v1132_v11 = vcombine.low %v958_v3, %v959_v4 }
 0x116   : > { %932 = vrot.lane.b32.xlu0 %v927_v63, %s2577_s4 }
 0x117   : > { %v1135_v14 = vpack.c.bf16 %v1132_v11, %v1131_v10  ;;  %v2301_v11 = vld [vmem:[%s3021_s11] ss:$0 sm:$0xff] }
 0x118   : > { %934 = vrot.lane.b32.xlu1 %v928_v13, %s2577_s4 }
 0x11a   : > { %936 = vrot.lane.b32.xlu0 %v929_v15, %s2577_s4  ;;  %s3058_s4 = sld [smem:[#allocation10_spill]] }
 0x11c   : > { %1138 = vrot.lane.b32.xlu1 %v1135_v14, %s2578_s29  ;;  %v2302_v14 = vld [vmem:[%s3022_s12] ss:$0 sm:$0xff] }
 0x11e   : > { %1196 = vrot.lane.b32.xlu0 %v1193_v5, %s2579_s0 }
 0x120   : > { %v1136_v36 = vld [vmem:[%s3058_s4] sm:$0x3]  ;;  %s2584_s4 = smov 40  }
 0x121   : > { %v1144_v39 = vsel %vm871_vm0, %v1136_v36, 0 }
 0x180   : > { %v921_v16 = vpop.permute.xlu0 %920 }
 0x181   : > { %v967_v20 = vcombine.low %v2574_v1, %v921_v16 }
 0x182   : > { %v925_v17 = vpop.permute.xlu1 %924 }
 0x184   : > { %v923_v18 = vpop.permute.xlu0 %922 }
 0x185   : > { %v968_v21 = vcombine.low %v923_v18, %v925_v17 }
 0x186   : > { %v931_v25 = vpop.permute.xlu1 %930 }
 0x187   : > { %v971_v22 = vpack.c.bf16 %v968_v21, %v967_v20  ;;  %v943_v35 = vsel %vm942_vm5, 0.0, %v931_v25 }
 0x188   : > { %v933_v24 = vpop.permute.xlu0 %932 }
 0x189   : > { %2392 = vmatmul.mubr.msk.bf16.vlgmr.msra.gmra.mrb[0].mxu1 %vm973_vm4, %v971_v22  ;;  %v944_v32 = vsel %vm942_vm5, 0.0, %v933_v24 }
 0x18a   : > { %2396 = vmatpush3.bf16.msra.mxu1 %v1025_v23  ;;  %2397 = vmatprep.mubr.msk.bf16.mxu1 %vm2575_vm1, %v2574_v1  ;;  %v935_v28 = vpop.permute.xlu1 %934  ;;  %v1072_v37 = vcombine.low %v943_v35, %v944_v32 }
 0x18b   : > { %2401 = vmatprep.subr.bf16.mxu1 %v2574_v1  ;;  %v945_v33 = vsel %vm942_vm5, 0.0, %v935_v28 }
 0x18c   : > { %v937_v26 = vpop.permute.xlu0 %936 }
 0x18d   : > { %v946_v30 = vsel %vm942_vm5, 0.0, %v937_v26 }
 0x18e   : > { %v1073_v34 = vcombine.low %v945_v33, %v946_v30  ;;  %v1139_v40 = vpop.permute.xlu1 %1138  ;;  %v1570_v30 = vlaneseq  ;;  %v2582_v33 = vmov 1983009808  }
 0x190   : > { %v1197_v31 = vpop.permute.xlu0 %1196  ;;  %v1076_v38 = vpack.c.bf16 %v1073_v34, %v1072_v37  ;;  %v1568_v34 = vunpack.c.l.s4 %v2582_v33 }
 0x191   : > { %2398 = vmatmul.mubr.msk.bf16.vlgmr.msra.gmra.mrb[4].mxu1 %vm973_vm4, %v965_v12  ;;  %2416 = vmatmul.mubr.msk.bf16.vlgmr.msra.gmra.mrb[4].mxu0 %vm973_vm4, %v1197_v31  ;;  %v2581_v31 = vmov 1934713408  }
 0x192   : > { %2402 = vmatpush3.bf16.msra.mxu1 %v1082_v29  ;;  %2403 = vmatprep.mubr.msk.bf16.mxu1 %vm2575_vm1, %v2574_v1  ;;  %v1641_v32 = vunpack.c.l.s4 %v2581_v31 }
 0x193   : > { %2407 = vmatprep.subr.bf16.mxu1 %v2574_v1  ;;  %2427 = vmatprep.mubr.msk.bf16.mxu0 %vm2575_vm1, %v2574_v1 }
 0x199   : > { %2404 = vmatmul.mubr.msk.bf16.vlgmr.msra.gmra.mrb[8].mxu1 %vm973_vm4, %v1076_v38 }
 0x19a   : > { %2408 = vmatpush3.bf16.msra.mxu1 %v1144_v39  ;;  %2409 = vmatprep.mubr.msk.bf16.mxu1 %vm2575_vm1, %v2574_v1  ;;  %v2834_v39 = vshrl.u32 %v1570_v30, 7  ;;  %v2319_v30 = vld [vmem:[%s3026_s16 + $0x1] ss:$0 sm:$0xff] }
 0x19b   : > { %2419 = vmatprep.subr.bf16.mxu1 %v2574_v1 }
 0x1a1   : > { %2410 = vmatmul.mubr.msk.bf16.vlgmr.msra.gmra.mrb[12].mxu1 %vm973_vm4, %v1139_v40  ;;  %v1642_v40 = vunpack.c.0.s8 %v1641_v32 }
 0x1a2   : > { %2421 = vmatprep.mubr.msk.bf16.mxu1 %vm2575_vm1, %v2574_v1 }
 0x25c   : > { %v1014_v42 = vpop.f32.mrb[0].mxu1 }
 0x25d   : > { %v2393_v43 = vpop.f32.mrb[1].mxu1 }
 0x25e   : > { %v1017_v44 = vpop.f32.mrb[2].mxu1 }
 0x25f   : > { %v2394_v45 = vpop.f32.mrb[3].mxu1 }
 0x264   : > { %v1061_v46 = vpop.f32.mrb[4].mxu1  ;;  %v1238_v47 = vpop.f32.mrb[4].mxu0 }
 0x265   : > { %v1062_v48 = vadd.f32 %v1061_v46, %v1014_v42  ;;  %v2399_v49 = vpop.f32.mrb[5].mxu1  ;;  %v2417_v50 = vpop.f32.mrb[5].mxu0  ;;  %v1569_v42 = vunpack.c.0.s8 %v1568_v34 }
 0x266   : > { %v1064_v51 = vpop.f32.mrb[6].mxu1  ;;  %v1241_v52 = vpop.f32.mrb[6].mxu0 }
 0x267   : > { %v1065_v53 = vadd.f32 %v1064_v51, %v1017_v44  ;;  %v2400_v54 = vpop.f32.mrb[7].mxu1  ;;  %v2418_v55 = vpop.f32.mrb[7].mxu0 }
 0x268   : > { %v2837_v55 = vsub.s32 %v1642_v40, %v2834_v39 }
 0x26c   : > { %v1118_v56 = vpop.f32.mrb[8].mxu1 }
 0x26d   : > { %v1125_v57 = vadd.f32 %v1118_v56, %v1062_v48  ;;  %v2405_v58 = vpop.f32.mrb[9].mxu1  ;;  %v2840_v56 = vsub.s32 %v1569_v42, %v2834_v39 }
 0x26e   : > { %v1121_v59 = vpop.f32.mrb[10].mxu1 }
 0x26f   : > { %v1126_v60 = vadd.f32 %v1121_v59, %v1065_v53  ;;  %v2406_v61 = vpop.f32.mrb[11].mxu1 }
 0x270   : > { %v1311_v61 = vld [vmem:[%s3023_s13] sm:$0x3] }
 0x274   : > { %v1180_v62 = vpop.f32.mrb[12].mxu1 }
 0x275   : > { %v1187_v63 = vadd.f32 %v1180_v62, %v1125_v57  ;;  %v2411_v0 = vpop.f32.mrb[13].mxu1 }
 0x276   : > { %v1183_v3 = vpop.f32.mrb[14].mxu1 }
 0x277   : > { %v1245_v4 = vadd.f32 %v1238_v47, %v1187_v63  ;;  %v1188_v5 = vadd.f32 %v1183_v3, %v1126_v60  ;;  %v2412_v10 = vpop.f32.mrb[15].mxu1 }
 0x279   : > { %v1254_v12 = vadd.f32 %v2300_v2, %v1245_v4  ;;  %v1246_v13 = vadd.f32 %v1241_v52, %v1188_v5 }
 0x27b   : > { %v1258_v15 = vcombine.high %v1254_v12, %v1254_v12  ;;  %v1269_v16 = vmul.f32 %v2301_v11, %v1254_v12  ;;  %v1255_v17 = vadd.f32 %v2300_v2, %v1246_v13 }
 0x27d   : > { %v1270_v18 = vmul.f32 %v2301_v11, %v1258_v15  ;;  %v1280_v19 = vadd.f32 %v2302_v14, %v1269_v16  ;;  %v1259_v20 = vcombine.high %v1255_v17, %v1255_v17  ;;  %v1271_v21 = vmul.f32 %v2301_v11, %v1255_v17 }
 0x27f   : > { %v1281_v22 = vadd.f32 %v2302_v14, %v1270_v18  ;;  %v1288_v23 = vmul.f32 0.70710677, %v1280_v19  ;;  %v1272_v24 = vmul.f32 %v2301_v11, %v1259_v20  ;;  %v1282_v25 = vadd.f32 %v2302_v14, %v1271_v21 }
 0x280   : > { %v1284_v36 = vmul.f32 0.5, %v1280_v19 }
 0x281   : > { %v1289_v26 = vmul.f32 0.70710677, %v1281_v22  ;;  %2550 = verf.f32 %v1288_v23  ;;  %v1283_v27 = vadd.f32 %v2302_v14, %v1272_v24  ;;  %v1290_v28 = vmul.f32 0.70710677, %v1282_v25 }
 0x282   : > { %v1285_v45 = vmul.f32 0.5, %v1281_v22  ;;  %v1286_v48 = vmul.f32 0.5, %v1282_v25  ;;  %v1312_v25 = vld [vmem:[%s3024_s14] sm:$0xf] }
 0x283   : > { %2552 = verf.f32 %v1289_v26  ;;  %v1291_v29 = vmul.f32 0.70710677, %v1283_v27  ;;  %v1287_v52 = vmul.f32 0.5, %v1283_v27  ;;  %v2530_v26 = vld [vmem:[%s3028_s18] sm:$0xff]  }
 0x284   : > { %2554 = verf.f32 %v1290_v28  ;;  %v2531_v27 = vld [vmem:[%s3028_s18 + $0x8] ss:$0 sps:$4 sm:$0x33]  }
 0x285   : > { %2556 = verf.f32 %v1291_v29  ;;  %v1518_v28 = vsel %vm871_vm0, %v2531_v27, 0  ;;  %v2318_v29 = vld [vmem:[%s3026_s16] ss:$0 sm:$0xff] }
 0x28b   : > { %v2551_v35 = vpop.eup %2550 }
 0x28c   : > { %v1296_v37 = vadd.f32 1.0, %v2551_v35 }
 0x28d   : > { %v2553_v38 = vpop.eup %2552 }
 0x28e   : > { %v2555_v43 = vpop.eup %2554  ;;  %v1300_v44 = vmul.f32 %v1296_v37, %v1284_v36  ;;  %v1297_v46 = vadd.f32 1.0, %v2553_v38  ;;  %v1638_v38 = vld [vmem:[%s3025_s15] sm:$0x3] }
 0x28f   : > { %v2557_v47 = vpop.eup %2556  ;;  %v1298_v49 = vadd.f32 1.0, %v2555_v43 }
 0x290   : > { %v1304_v50 = vpack.c.bf16 %v1300_v44, %v1300_v44  ;;  %v1301_v51 = vmul.f32 %v1297_v46, %v1285_v45  ;;  %v1299_v53 = vadd.f32 1.0, %v2557_v47 }
 0x291   : > { %v1302_v54 = vmul.f32 %v1298_v49, %v1286_v48 }
 0x292   : > { %v1322_v57 = vsel %vm871_vm0, %v1304_v50, 0  ;;  %v1305_v58 = vpack.c.bf16 %v1301_v51, %v1301_v51  ;;  %v2310_v59 = vpack.c.bf16 %v1301_v51, %v1300_v44  ;;  %v1303_v60 = vmul.f32 %v1299_v53, %v1287_v52 }
 0x293   : > { %2420 = vmatpush3.bf16.msra.mxu1 %v1322_v57  ;;  %v1306_v62 = vpack.c.bf16 %v1302_v54, %v1302_v54  ;;  %v2315_v63 = vpack.c.bf16 %v1302_v54, %v1300_v44 }
 0x294   : > { %v1365_v0 = vsel %vm871_vm0, %v1305_v58, 0  ;;  %2431 = vmatprep.subr.bf16.mxu1 %v2574_v1  ;;  %v1307_v2 = vpack.c.bf16 %v1303_v60, %v1303_v60  ;;  %v2311_v3 = vpack.c.bf16 %v1303_v60, %v1302_v54  ;;  %v2316_v4 = vpack.c.bf16 %v1303_v60, %v1301_v51 }
 0x295   : > { %2426 = vmatpush3.bf16.msra.mxu0 %v1365_v0  ;;  %v1646_v5 = vrot.slane %v2315_v63, %v2837_v55  ;;  %v1408_v10 = vsel %vm871_vm0, %v1306_v62, 0  ;;  %v2854_v12 = vrot.slane %v2310_v59, %v2840_v56 }
 0x296   : > { %2422 = vmatmul.mubr.msk.bf16.vlgmr.msra.gmra.mrb[16].mxu1 %vm973_vm4, %v1311_v61  ;;  %2437 = vmatprep.subr.bf16.mxu0 %v2574_v1  ;;  %v1655_v11 = vrot.slane %v2316_v4, %v2837_v55  ;;  %v2857_v13 = vrot.slane %v2311_v3, %v2840_v56  ;;  %v1451_v14 = vsel %vm871_vm0, %v1307_v2, 0  ;;  %v2532_v3 = vld [vmem:[%s3027_s17] sm:$0xff]  }
 0x297   : > { %2432 = vmatpush3.bf16.msra.mxu1 %v1408_v10  ;;  %v1660_v15 = vshrl.u32 %v1646_v5, 16  ;;  %v1647_v16 = vcombine.high %v1646_v5, %v2580_v41  ;;  %2433 = vmatprep.mubr.msk.bf16.mxu1 %vm2575_vm1, %v2574_v1 }
 0x298   : > { %2428 = vmatmul.mubr.msk.bf16.vlgmr.msra.gmra.mrb[8].mxu0 %vm973_vm4, %v1311_v61  ;;  %v1661_v17 = vshrl.u32 %v1655_v11, 16  ;;  %v1656_v18 = vcombine.high %v1655_v11, %v2580_v41  ;;  %v1659_v19 = vpack.i.b16 %v1655_v11, %v1646_v5  ;;  %2443 = vmatprep.subr.bf16.mxu1 %v2574_v1  ;;  %v1581_v20 = vcombine.low %v2854_v12, %v2857_v13  ;;  %v2533_v5 = vld [vmem:[%s3027_s17 + $0x8] ss:$0 sps:$4 sm:$0x33]   ;;  %v2534_v12 = vld [vmem:[%s3029_s19] sm:$0xff]  }
 0x299   : > { %2438 = vmatpush3.bf16.msra.mxu0 %v1451_v14  ;;  %2439 = vmatprep.mubr.msk.bf16.mxu0 %vm2575_vm1, %v2574_v1  ;;  %v1666_v23 = vshrl.u32 %v1647_v16, 16  ;;  %v1595_v10 = vsel %vm871_vm0, %v2533_v5, 0  ;;  %v2320_v13 = vld [vmem:[%s3026_s16 + $0x2] ss:$0 sm:$0xff] }
 0x29a   : > { %v1662_v21 = vpack.i.b16 %v1661_v17, %v1660_v15  ;;  %v1665_v22 = vpack.i.b16 %v1656_v18, %v1647_v16  ;;  %v1667_v24 = vshrl.u32 %v1656_v18, 16  ;;  %2459 = vmatprep.subr.bf16.mxu0 %v2574_v1  ;;  %v2321_v16 = vld [vmem:[%s3026_s16 + $0x3] ss:$0 sm:$0xff]  ;;  %v2535_v18 = vld [vmem:[%s3029_s19 + $0x8] ss:$0 sps:$4 sm:$0x33]  }
 0x29c   : > { %1669 = vrot.lane.b32.xlu1 %v1662_v21, %s2583_s28  ;;  %1671 = vrot.lane.b32.xlu0 %v1665_v22, %s2584_s4  ;;  %v1668_v41 = vpack.i.b16 %v1667_v24, %v1666_v23  ;;  %s2588_s4 = smov 88  }
 0x29e   : > { %2434 = vmatmul.mubr.msk.bf16.vlgmr.msra.gmra.mrb[20].mxu1 %vm973_vm4, %v1311_v61 }
 0x29f   : > { %2447 = vmatprep.mubr.msk.bf16.mxu1 %vm2575_vm1, %v2574_v1  ;;  %2444 = vmatpush3.bf16.msra.mxu1 %v2530_v26 }
 0x2a0   : > { %1673 = vrot.lane.b32.xlu1 %v1668_v41, %s2585_s9  ;;  %2440 = vmatmul.mubr.msk.bf16.vlgmr.msra.gmra.mrb[12].mxu0 %vm973_vm4, %v1311_v61 }
 0x2a1   : > { %1315 = vperm.xlu0 %2526, %v1312_v25   ;;  %2461 = vmatprep.mubr.msk.bf16.mxu0 %vm2575_vm1, %v2574_v1 }
 0x2a2   : > { %2445 = vmatprep.subr.bf16.mxu1 %v2574_v1 }
 0x2a3   : > { %2446 = vmatpush3.bf16.msra.mxu1 %v1518_v28 }
 0x2a4   : > { %2451 = vmatprep.subr.bf16.mxu1 %v2574_v1  ;;  %1798 = vperm.xlu1 %2527, %v2318_v29  }
 0x2a5   : > { %1802 = vperm.xlu0 %2526, %v2319_v30  }
 0x30e   : > { %v1670_v31 = vpop.permute.xlu1 %1669  ;;  %v1672_v33 = vpop.permute.xlu0 %1671 }
 0x30f   : > { %v1677_v32 = vsel %vm867_vm2, %v1659_v19, %v1670_v31  ;;  %v1842_v19 = vsel %vm871_vm0, %v2535_v18, 0 }
 0x310   : > { %v1680_v34 = vsel %vm1678_vm6, %v1677_v32, %v1672_v33 }
 0x312   : > { %v1674_v35 = vpop.permute.xlu1 %1673 }
 0x313   : > { %v1683_v36 = vsel %vm1681_vm7, %v1680_v34, %v1674_v35 }
 0x314   : > { %v1687_v37 = vsel %vm871_vm0, %v1683_v36, 0 }
 0x315   : > { %2460 = vmatpush3.bf16.msra.mxu0 %v1687_v37 }
 0x316   : > { %2473 = vmatprep.subr.bf16.mxu0 %v2574_v1 }
 0x318   : > { %2462 = vmatmul.mubr.msk.bf16.vlgmr.msra.gmra.mrb[16].mxu0 %vm973_vm4, %v1638_v38 }
 0x319   : > { %2477 = vmatprep.mubr.msk.bf16.mxu0 %vm2575_vm1, %v2574_v1 }
 0x320   : > { %v1316_v40 = vpop.permute.xlu0 %1315 }
 0x324   : > { %v1803_v21 = vpop.permute.xlu0 %1802 }
 0x369   : > { %v1358_v42 = vpop.f32.mrb[16].mxu1 }
 0x36a   : > { %v2423_v43 = vpop.f32.mrb[17].mxu1  ;;  %v1359_v44 = vadd.f32 %v1358_v42, %v1316_v40 }
 0x36b   : > { %v1401_v45 = vpop.f32.mrb[8].mxu0  ;;  %v1361_v46 = vpop.f32.mrb[18].mxu1 }
 0x36c   : > { %v2429_v47 = vpop.f32.mrb[9].mxu0  ;;  %v2424_v48 = vpop.f32.mrb[19].mxu1  ;;  %v1402_v49 = vadd.f32 %v1401_v45, %v1316_v40 }
 0x36d   : > { %v1404_v50 = vpop.f32.mrb[10].mxu0 }
 0x36e   : > { %v2430_v51 = vpop.f32.mrb[11].mxu0  ;;  %v1497_v52 = vcombine.low %v1359_v44, %v1402_v49 }
 0x371   : > { %v1444_v53 = vpop.f32.mrb[20].mxu1 }
 0x372   : > { %v1445_v54 = vadd.f32 %v1444_v53, %v1316_v40  ;;  %v2435_v57 = vpop.f32.mrb[21].mxu1 }
 0x373   : > { %v1487_v58 = vpop.f32.mrb[12].mxu0  ;;  %v1447_v59 = vpop.f32.mrb[22].mxu1 }
 0x374   : > { %v1488_v60 = vadd.f32 %v1487_v58, %v1316_v40  ;;  %v2441_v61 = vpop.f32.mrb[13].mxu0  ;;  %v2436_v62 = vpop.f32.mrb[23].mxu1  ;;  %v2590_v59 = vmov 1985246804  }
 0x375   : > { %v1490_v63 = vpop.f32.mrb[14].mxu0 }
 0x376   : > { %v1498_v0 = vcombine.low %v1445_v54, %v1488_v60  ;;  %v2442_v2 = vpop.f32.mrb[15].mxu0  ;;  %v1924_v60 = vunpack.c.l.s4 %v2590_v59  ;;  %v2539_v59 = vld [vmem:[%s3034_s24 + $0x8] sm:$0xff]  }
 0x378   : > { %v1501_v4 = vpack.c.bf16 %v1498_v0, %v1497_v52 }
 0x37a   : > { %2448 = vmatmul.mubr.msk.bf16.vlgmr.msra.gmra.mrb[24].mxu1 %vm867_vm2, %v1501_v4 }
 0x37b   : > { %2452 = vmatpush3.bf16.msra.mxu1 %v2532_v3  ;;  %2455 = vmatprep.mubr.msk.bf16.mxu1 %vm2575_vm1, %v2574_v1 }
 0x37c   : > { %2453 = vmatprep.subr.bf16.mxu1 %v2574_v1 }
 0x37f   : > { %2454 = vmatpush3.bf16.msra.mxu1 %v1595_v10 }
 0x380   : > { %2465 = vmatprep.subr.bf16.mxu1 %v2574_v1 }
 0x386   : > { %2456 = vmatmul.mubr.msk.bf16.vlgmr.msra.gmra.mrb[24].mxu1 %vm867_vm2, %v1581_v20  ;;  %v1799_v20 = vpop.permute.xlu1 %1798 }
 0x387   : > { %2469 = vmatprep.mubr.msk.bf16.mxu1 %vm2575_vm1, %v2574_v1  ;;  %2466 = vmatpush3.bf16.msra.mxu1 %v2534_v12 }
 0x388   : > { %2467 = vmatprep.subr.bf16.mxu1 %v2574_v1 }
 0x38b   : > { %2468 = vmatpush3.bf16.msra.mxu1 %v1842_v19 }
 0x3eb   : > { %v1723_v11 = vpop.f32.mrb[16].mxu0 }
 0x3ec   : > { %1736 = vrot.lane.b32.xlu0 %v1723_v11, %s2586_s6  ;;  %1730 = vrot.lane.b32.xlu1 %v1723_v11, %s2587_s1  ;;  %v2463_v14 = vpop.f32.mrb[17].mxu0  ;;  %s791_s6 = scalar_lea.vmem %s3036_s26, %s2339_s2 }
 0x3ed   : > { %v1726_v15 = vpop.f32.mrb[18].mxu0 }
 0x3ee   : > { %v2464_v17 = vpop.f32.mrb[19].mxu0 }
 0x3f0   : > { %1810 = vperm.xlu0 %2526, %v2321_v16   ;;  %1733 = vrot.lane.b32.xlu1 %v1723_v11, %s2588_s4 }
 0x3f4   : > { %1806 = vperm.xlu1 %2527, %v2320_v13  }
 0x45e   : > { %v1731_v22 = vpop.permute.xlu1 %1730  ;;  %v1737_v23 = vpop.permute.xlu0 %1736 }
 0x45f   : > { %v1747_v24 = vcombine.low %v1731_v22, %v1737_v23  ;;  %v2536_v23 = vld [vmem:[%s3032_s22] sm:$0xff]  }
 0x460   : > { %2474 = vmatpush3.bf16.msra.mxu0 %v2536_v23 }
 0x461   : > { %v1754_v26 = vrot.slane %v1747_v24, %v2840_v56  ;;  %v2537_v24 = vld [vmem:[%s3032_s22 + $0x8] ss:$0 sps:$4 sm:$0x33]   ;;  %2475 = vmatprep.subr.bf16.mxu0 %v2574_v1 }
 0x462   : > { %v1734_v41 = vpop.permute.xlu1 %1733 }
 0x463   : > { %v1739_v25 = vcombine.low %v1723_v11, %v1734_v41  ;;  %v2072_v41 = vsel %vm871_vm0, %v2537_v24, 0 }
 0x464   : > { %2476 = vmatpush3.bf16.msra.mxu0 %v2072_v41 }
 0x465   : > { %v1746_v27 = vrot.slane %v1739_v25, %v2840_v56  ;;  %2481 = vmatprep.subr.bf16.mxu0 %v2574_v1 }
 0x467   : > { %v1755_v28 = vcombine.low %v1746_v27, %v1754_v26  ;;  %v1756_v29 = vcombine.high %v1746_v27, %v1754_v26 }
 0x469   : > { %v1763_v30 = vrot.slane %v1755_v28, %v2837_v55  ;;  %v1770_v32 = vrot.slane %v1756_v29, %v2837_v55 }
 0x46b   : > { %v1771_v31 = vcombine.high %v1763_v30, %v2574_v1  ;;  %v1772_v34 = vcombine.high %v1770_v32, %v2574_v1  ;;  %v1813_v38 = vadd.f32 %v1799_v20, %v1763_v30 }
 0x46d   : > { %v1814_v35 = vadd.f32 %v1803_v21, %v1771_v31  ;;  %v2325_v31 = vld [vmem:[%s3030_s20] ss:$0 sm:$0xff] }
 0x46f   : > { %v1811_v33 = vpop.permute.xlu0 %1810  ;;  %v1821_v42 = vcombine.low %v1813_v38, %v1814_v35 }
 0x470   : > { %v1816_v37 = vadd.f32 %v1811_v33, %v1772_v34  ;;  %v2021_v34 = vcombine.high %v2325_v31, %v2325_v31 }
 0x473   : > { %v1807_v36 = vpop.permute.xlu1 %1806 }
 0x474   : > { %v1815_v40 = vadd.f32 %v1807_v36, %v1770_v32  ;;  %v2326_v32 = vld [vmem:[%s3031_s21] ss:$0 sm:$0xff] }
 0x475   : > { %v2034_v38 = vcombine.high %v2326_v32, %v2326_v32 }
 0x476   : > { %v1822_v43 = vcombine.low %v1815_v40, %v1816_v37 }
 0x478   : > { %v1825_v44 = vpack.c.bf16 %v1822_v43, %v1821_v42 }
 0x47a   : > { %2470 = vmatmul.mubr.msk.bf16.vlgmr.msra.gmra.mrb[24].mxu1 %vm867_vm2, %v1825_v44 }
 0x54d   : > { %v1878_v56 = vpop.f32.mrb[24].mxu1 }
 0x54e   : > { %v1889_v45 = vcombine.high %v1878_v56, %v1878_v56  ;;  %v2471_v46 = vpop.f32.mrb[25].mxu1  ;;  %v1893_v48 = vadd.f32 %v1878_v56, %v2763_v6  ;;  %v2589_v6 = vmov 839922192  }
 0x54f   : > { %v1881_v47 = vpop.f32.mrb[26].mxu1 }
 0x550   : > { %v1894_v55 = vadd.f32 %v1889_v45, %v2765_v7  ;;  %v1890_v49 = vcombine.high %v1881_v47, %v1881_v47  ;;  %v2472_v50 = vpop.f32.mrb[27].mxu1  ;;  %v1895_v51 = vadd.f32 %v1881_v47, %v2767_v8  ;;  %v1917_v7 = vunpack.c.l.s4 %v2589_v6 }
 0x551   : > { %v1925_v8 = vunpack.c.0.s8 %v1924_v60  ;;  %v2540_v60 = vld [vmem:[%s3034_s24 + $0x10] sm:$0xff]  }
 0x552   : > { %v1896_v52 = vadd.f32 %v1890_v49, %v2769_v9  ;;  %v2948_v53 = vcombine.low %v1893_v48, %v1894_v55  ;;  %v1918_v61 = vunpack.c.0.s8 %v1917_v7  ;;  %v2538_v7 = vld [vmem:[%s3034_s24] sm:$0xff]  }
 0x553   : > { %v1928_v62 = vsub.s32 %v1925_v8, %v2834_v39 }
 0x554   : > { %v1905_v54 = vsel %vm867_vm2, %v2948_v53, 0.0  ;;  %v2952_v57 = vcombine.low %v1895_v51, %v1896_v52  ;;  %v1921_v9 = vsub.s32 %v1918_v61, %v2834_v39  ;;  %v2541_v61 = vld [vmem:[%s3034_s24 + $0x18] sm:$0x3f]  }
 0x555   : > { %1906 = vadd.xlane.f32.xlu1 %v1905_v54  ;;  %v2169_v8 = vsel %vm2167_vm8, %v2541_v61, 0 }
 0x556   : > { %v1908_v58 = vsel %vm867_vm2, %v2952_v57, 0.0 }
 0x557   : > { %1909 = vadd.xlane.f32.xlu0 %v1908_v58 }
 0x5e2   : > { %v1907_v63 = vpop.xlane.xlu1 %1906 }
 0x5e3   : > { %v1912_v0 = vmul.f32 0.05, %v1907_v63 }
 0x5e4   : > { %v1910_v2 = vpop.xlane.xlu0 %1909 }
 0x5e5   : > { %v1922_v3 = vrot.slane %v1912_v0, %v1921_v9  ;;  %v1929_v4 = vrot.slane %v1912_v0, %v1928_v62  ;;  %v1913_v5 = vmul.f32 0.05, %v1910_v2 }
 0x5e7   : > { %v1948_v10 = vsub.f32 %v1893_v48, %v1922_v3  ;;  %v1949_v11 = vsub.f32 %v1894_v55, %v1929_v4  ;;  %v1936_v14 = vrot.slane %v1913_v5, %v1921_v9  ;;  %v1943_v15 = vrot.slane %v1913_v5, %v1928_v62 }
 0x5e9   : > { %v1950_v16 = vsub.f32 %v1895_v51, %v1936_v14  ;;  %v1951_v17 = vsub.f32 %v1896_v52, %v1943_v15  ;;  %v1952_v12 = vmul.f32 %v1948_v10, %v1948_v10  ;;  %v1953_v13 = vmul.f32 %v1949_v11, %v1949_v11 }
 0x5eb   : > { %v1960_v18 = vcombine.low %v1952_v12, %v1953_v13  ;;  %v1954_v19 = vmul.f32 %v1950_v16, %v1950_v16  ;;  %v1955_v20 = vmul.f32 %v1951_v17, %v1951_v17 }
 0x5ed   : > { %v1964_v21 = vsel %vm867_vm2, %v1960_v18, 0.0  ;;  %v1961_v39 = vcombine.low %v1954_v19, %v1955_v20  ;;  %v2331_v19 = vld [vmem:[%s3035_s25] ss:$0 sm:$0xff] }
 0x5ee   : > { %1965 = vadd.xlane.f32.xlu0 %v1964_v21 }
 0x5ef   : > { %v1967_v22 = vsel %vm867_vm2, %v1961_v39, 0.0 }
 0x5f0   : > { %1968 = vadd.xlane.f32.xlu1 %v1967_v22 }
 0x67b   : > { %v1966_v25 = vpop.xlane.xlu0 %1965 }
 0x67c   : > { %v1970_v26 = vmul.f32 0.05, %v1966_v25 }
 0x67d   : > { %v1969_v27 = vpop.xlane.xlu1 %1968 }
 0x67e   : > { %v1972_v28 = vadd.f32 1e-05, %v1970_v26  ;;  %v1971_v29 = vmul.f32 0.05, %v1969_v27 }
 0x680   : > { %2558 = vrsqrt.f32 %v1972_v28  ;;  %v1973_v30 = vadd.f32 1e-05, %v1971_v29 }
 0x682   : > { %2560 = vrsqrt.f32 %v1973_v30 }
 0x68a   : > { %v2559_v33 = vpop.eup %2558 }
 0x68b   : > { %v1984_v35 = vrot.slane %v2559_v33, %v1921_v9  ;;  %v1991_v36 = vrot.slane %v2559_v33, %v1928_v62 }
 0x68c   : > { %v2561_v37 = vpop.eup %2560 }
 0x68d   : > { %v2010_v40 = vmul.f32 %v1984_v35, %v1948_v10  ;;  %v2011_v42 = vmul.f32 %v1991_v36, %v1949_v11  ;;  %v1998_v43 = vrot.slane %v2561_v37, %v1921_v9  ;;  %v2005_v44 = vrot.slane %v2561_v37, %v1928_v62  ;;  %v2327_v9 = vld [vmem:[%s3033_s23] ss:$0 sm:$0xff] }
 0x68f   : > { %v2023_v56 = vmul.f32 %v2325_v31, %v2010_v40  ;;  %v2024_v45 = vmul.f32 %v2021_v34, %v2011_v42  ;;  %v2012_v46 = vmul.f32 %v1998_v43, %v1950_v16  ;;  %v2013_v47 = vmul.f32 %v2005_v44, %v1951_v17 }
 0x691   : > { %v2025_v48 = vmul.f32 %v2325_v31, %v2012_v46  ;;  %v2026_v55 = vmul.f32 %v2021_v34, %v2013_v47  ;;  %v2036_v49 = vadd.f32 %v2326_v32, %v2023_v56  ;;  %v2037_v50 = vadd.f32 %v2034_v38, %v2024_v45 }
 0x693   : > { %v2038_v51 = vadd.f32 %v2326_v32, %v2025_v48  ;;  %v2039_v52 = vadd.f32 %v2034_v38, %v2026_v55  ;;  %v2044_v54 = vcombine.low %v2036_v49, %v2037_v50 }
 0x695   : > { %v2045_v58 = vcombine.low %v2038_v51, %v2039_v52 }
 0x697   : > { %v2048_v6 = vpack.c.bf16 %v2045_v58, %v2044_v54 }
 0x699   : > { %2478 = vmatmul.mubr.msk.bf16.vlgmr.msra.gmra.mrb[20].mxu0 %vm867_vm2, %v2048_v6 }
 0x69a   : > { %2489 = vmatprep.mubr.msk.bf16.mxu0 %vm2575_vm1, %v2574_v1  ;;  %2482 = vmatpush3.bf16.msra.mxu0 %v2538_v7 }
 0x69b   : > { %2483 = vmatprep.subr.bf16.mxu0 %v2574_v1 }
 0x69e   : > { %2484 = vmatpush3.bf16.msra.mxu0 %v2539_v59 }
 0x69f   : > { %2485 = vmatprep.subr.bf16.mxu0 %v2574_v1 }
 0x6a2   : > { %2486 = vmatpush3.bf16.msra.mxu0 %v2540_v60 }
 0x6a3   : > { %2487 = vmatprep.subr.bf16.mxu0 %v2574_v1 }
 0x6a6   : > { %2488 = vmatpush3.bf16.msra.mxu0 %v2169_v8 }
 0x76c   : > { %v2108_v62 = vpop.f32.mrb[20].mxu0 }
 0x76d   : > { %v2109_v63 = vadd.f32 %v2327_v9, %v2108_v62  ;;  %v2479_v0 = vpop.f32.mrb[21].mxu0 }
 0x76e   : > { %v2111_v2 = vpop.f32.mrb[22].mxu0 }
 0x76f   : > { %v2117_v3 = vmul.f32 0.70710677, %v2109_v63  ;;  %v2112_v4 = vadd.f32 %v2327_v9, %v2111_v2  ;;  %v2480_v5 = vpop.f32.mrb[23].mxu0  ;;  %v2115_v15 = vmul.f32 0.5, %v2109_v63 }
 0x771   : > { %2562 = verf.f32 %v2117_v3  ;;  %v2118_v1 = vmul.f32 0.70710677, %v2112_v4  ;;  %v2116_v16 = vmul.f32 0.5, %v2112_v4 }
 0x773   : > { %2564 = verf.f32 %v2118_v1 }
 0x77b   : > { %v2563_v10 = vpop.eup %2562 }
 0x77c   : > { %v2121_v11 = vadd.f32 1.0, %v2563_v10 }
 0x77d   : > { %v2565_v14 = vpop.eup %2564 }
 0x77e   : > { %v2122_v17 = vadd.f32 1.0, %v2565_v14  ;;  %v2123_v12 = vmul.f32 %v2121_v11, %v2115_v15 }
 0x780   : > { %v2124_v13 = vmul.f32 %v2122_v17, %v2116_v16 }
 0x782   : > { %v2125_v18 = vpack.c.bf16 %v2124_v13, %v2123_v12 }
 0x784   : > { %2490 = vmatmul.mubr.msk.bf16.vlgmr.msra.gmra.mrb[24].mxu0 %vm1681_vm7, %v2125_v18 }
 0x857   : > { %v2205_v20 = vpop.f32.mrb[24].mxu0 }
 0x858   : > { %v2206_v21 = vadd.f32 %v2331_v19, %v2205_v20  ;;  %v2491_v39 = vpop.f32.mrb[25].mxu0 }
 0x859   : > { %v2208_v22 = vpop.f32.mrb[26].mxu0 }
 0x85a   : > { %v2212_v23 = vadd.f32 %v2206_v21, %v2948_v53  ;;  %v2209_v24 = vadd.f32 %v2331_v19, %v2208_v22  ;;  %v2492_v41 = vpop.f32.mrb[27].mxu0 }
 0x85c   : > { %v2216_v25 = vcombine.high %v2212_v23, %v2212_v23  ;;  %2221 = vst.msk [vmem:[%s791_s6] sm:$0xf] %vm2220_vm9, %v2212_v23  ;;  %v2213_v26 = vadd.f32 %v2209_v24, %v2952_v57 }
 0x85e   : > { %2222 = vst.msk [vmem:[%s791_s6 + $0x4] sm:$0xf] %vm2220_vm9, %v2216_v25  ;;  %v2217_v27 = vcombine.high %v2213_v26, %v2213_v26  ;;  %2223 = vst.msk [vmem:[%s791_s6 + $0x8] sm:$0xf] %vm2220_vm9, %v2213_v26 }
 0x860   : > { %2224 = vst.msk [vmem:[%s791_s6 + $0xc] sm:$0xf] %vm2220_vm9, %v2217_v27 }
 0x861 PF: > { %s36_s27 = sadd.s32 1, %s2572_s27  }
 0x862   : > { %p33_p4 = scmp.ge.s32.totalorder %s36_s27, 4  }
 0x864   :  { %35 = sbr.rel (!%p33_p4) target bundleno = 12 (0xc), region = 154 }

// kernel: caterpillar_forward.8
= control target key start
LH: loop header
LB: loop body
LE: loop exit
PB: predicated region body
PF: predicated region fallthrough
CT: control target
= control target key end

     0   :  { %s2581_s27 = smov 0   ;;  %s2884_s0 = inlined_call_operand.vmem [shape: f32[2,2,2,40], index: 0, kind: input, shape index: {}]   ;;  %s2885_s1 = inlined_call_operand.vmem [shape: f32[1,1,40], index: 1, kind: input, shape index: {}]   ;;  %s2886_s2 = inlined_call_operand.vmem [shape: f32[1,1,40], index: 2, kind: input, shape index: {}]   ;;  %s2887_s3 = inlined_call_operand.vmem [shape: bf16[40,40], index: 3, kind: input, shape index: {}]   ;;  %s2888_s4 = inlined_call_operand.vmem [shape: f32[1,40], index: 4, kind: input, shape index: {}]   ;;  %s2889_s5 = inlined_call_operand.vmem [shape: bf16[8,40], index: 5, kind: input, shape index: {}]   ;;  %s2890_s6 = inlined_call_operand.vmem [shape: bf16[8,40], index: 6, kind: input, shape index: {}]   ;;  %s2891_s7 = inlined_call_operand.vmem [shape: bf16[8,40], index: 7, kind: input, shape index: {}]   ;;  %s2892_s8 = inlined_call_operand.vmem [shape: bf16[8,40], index: 8, kind: input, shape index: {}]   ;;  %s2893_s9 = inlined_call_operand.vmem [shape: bf16[8,40], index: 9, kind: input, shape index: {}]   ;;  %s2894_s10 = inlined_call_operand.vmem [shape: f32[1,40], index: 10, kind: input, shape index: {}]   ;;  %s2895_s11 = inlined_call_operand.vmem [shape: f32[1,1,40], index: 11, kind: input, shape index: {}]   ;;  %s2896_s12 = inlined_call_operand.vmem [shape: f32[1,1,40], index: 12, kind: input, shape index: {}]   ;;  %s2897_s13 = inlined_call_operand.vmem [shape: bf16[2,2], index: 13, kind: input, shape index: {}]   ;;  %s2898_s14 = inlined_call_operand.vmem [shape: f32[1,2,1], index: 14, kind: input, shape index: {}]   ;;  %s2899_s15 = inlined_call_operand.vmem [shape: bf16[2,2], index: 15, kind: input, shape index: {}]   ;;  %s2900_s16 = inlined_call_operand.vmem [shape: f32[2,1,1], index: 16, kind: input, shape index: {}]   ;;  %s2901_s17 = inlined_call_operand.vmem [shape: bf16[40,40], index: 17, kind: input, shape index: {}]   ;;  %s2902_s18 = inlined_call_operand.vmem [shape: bf16[40,40], index: 18, kind: input, shape index: {}]   ;;  %s2903_s19 = inlined_call_operand.vmem [shape: bf16[40,40], index: 19, kind: input, shape index: {}]   ;;  %s2904_s20 = inlined_call_operand.vmem [shape: f32[1,40], index: 20, kind: input, shape index: {}]   ;;  %s2905_s21 = inlined_call_operand.vmem [shape: f32[1,40], index: 21, kind: input, shape index: {}]   ;;  %s2906_s22 = inlined_call_operand.vmem [shape: bf16[40,120], index: 22, kind: input, shape index: {}]   ;;  %s2907_s23 = inlined_call_operand.vmem [shape: f32[1,120], index: 23, kind: input, shape index: {}]   ;;  %s2908_s24 = inlined_call_operand.vmem [shape: bf16[120,40], index: 24, kind: input, shape index: {}]   ;;  %s2909_s25 = inlined_call_operand.vmem [shape: f32[1,40], index: 25, kind: input, shape index: {}]   ;;  %s2910_s26 = inlined_call_operand.vmem [shape: f32[2,2,2,40], index: 26, kind: output, shape index: {}]  }
   0x1   :  { %2912 = sst [smem:[#allocation2_spill]] %s2884_s0 }
   0x2   :  { %2913 = sst [smem:[#allocation3_spill]] %s2885_s1 }
   0x3   :  { %2914 = sst [smem:[#allocation4_spill]] %s2886_s2 }
   0x4   :  { %2915 = sst [smem:[#allocation5_spill]] %s2887_s3 }
   0x5   :  { %2916 = sst [smem:[#allocation6_spill]] %s2888_s4 }
   0x6   :  { %2917 = sst [smem:[#allocation7_spill]] %s2889_s5 }
   0x7   :  { %2918 = sst [smem:[#allocation8_spill]] %s2890_s6 }
   0x8   :  { %2919 = sst [smem:[#allocation9_spill]] %s2891_s7 }
   0x9   :  { %2920 = sst [smem:[#allocation10_spill]] %s2892_s8 }
   0xa   :  { %2921 = sst [smem:[#allocation11_spill]] %s2893_s9 }
   0xb   :  { %2922 = sst [smem:[#allocation12_spill]] %s2894_s10 }
   0xc LB: > { %s2131_s3 = sadd.s32 4294967295, %s2430_s27   ;;  %p2135_p0 = scmp.ge.s32.totalorder %s2430_s27, 1  ;;  %s2430_s27 = sphi %s2581_s27, %s36_s27  }
   0xd   : > { %p712_p1 = scmp.lt.s32.totalorder %s2430_s27, 3 }
   0xf   : > { %p713_p2 = pnand %p2135_p0, %p712_p1 }
  0x10   : > { %s2923_s8 = sld [smem:[#allocation5_spill]] (!%p713_p2)  ;;  %v2432_v1 = vmov (!%p713_p2), 0.0   ;;  %p782_p3 = scmp.lt.s32.totalorder (!%p713_p2), %s2131_s3, 1  ;;  %vm866_vm0 = vcmask (!%p713_p2), 1043456   ;;  %vm2433_vm1 = vmmov (!%p713_p2), 0   ;;  %v829_v17 = vlaneseq (!%p713_p2) }
  0x11   : > { %716 = sbr.rel (%p713_p2) target bundleno = 2124 (0x84c), region = 124  ;;  %2239 = vmatprep.subr.bf16.mxu0 (!%p713_p2), %v2432_v1  ;;  %2249 = vmatprep.subr.bf16.mxu1 (!%p713_p2), %v2432_v1  ;;  %s2924_s5 = sld [smem:[#allocation3_spill]] (!%p713_p2)  ;;  %v2434_v15 = vmov (!%p713_p2), 1983009808   ;;  %vm862_vm2 = vcmask (!%p713_p2), 326656   ;;  %vm942_vm3 = vcmask (!%p713_p2), 1040384  }
  0x12   : > { %2245 = vmatprep.mubr.msk.bf16.mxu0 (!%p713_p2), %vm2433_vm1, %v2432_v1  ;;  %2251 = vmatprep.mubr.msk.bf16.mxu1 (!%p713_p2), %vm2433_vm1, %v2432_v1  ;;  %s2925_s7 = sld [smem:[#allocation4_spill]] (!%p713_p2)  ;;  %s2926_s29 = sld [smem:[#allocation2_spill]] (!%p713_p2)  ;;  %v827_v16 = vunpack.c.l.s4 (!%p713_p2), %v2434_v15  ;;  %v2628_v22 = vshrl.u32 (!%p713_p2), %v829_v17, 7  ;;  %vm980_vm4 = vcmask (!%p713_p2), 64512   ;;  %vm1318_vm5 = vcmask (!%p713_p2), 15360  }
  0x13   : > { %s2927_s2 = sld [smem:[#allocation8_spill]] (!%p713_p2)  ;;  %s2928_s1 = sld [smem:[#allocation6_spill]] (!%p713_p2)  ;;  %vm1757_vm6 = vcmask (!%p713_p2), 322560   ;;  %vm2014_vm7 = vcmask (!%p713_p2), 982016   ;;  %vm2073_vm8 = vcmask (!%p713_p2), 320512  }
  0x14   : > { %v828_v21 = vunpack.c.0.s8 (!%p713_p2), %v827_v16  ;;  %s2929_s4 = sld [smem:[#allocation9_spill]] (!%p713_p2)  ;;  %v947_v39 = vsub.s32 (!%p713_p2), 1, %v2628_v22  ;;  %v930_v46 = vsub.s32 (!%p713_p2), 0, %v2628_v22  ;;  %s2437_s9 = smov (!%p713_p2), 96  }
  0x15   : > { %s2438_s30 = smov (!%p713_p2), 104   ;;  %s2930_s6 = sld [smem:[#allocation7_spill]] (!%p713_p2) }
  0x16   : > { %v2389_v0 = vld [vmem:[%s2923_s8] sm:$0xff] (!%p713_p2)   ;;  %v2390_v2 = vld [vmem:[%s2923_s8 + $0x8] sm:$0xff] (!%p713_p2)   ;;  %v2391_v3 = vld [vmem:[%s2923_s8 + $0x10] ss:$0 sps:$4 sm:$0xff] (!%p713_p2)   ;;  %v2631_v28 = vsub.s32 (!%p713_p2), %v828_v21, %v2628_v22  ;;  %s2931_s28 = sld [smem:[#allocation11_spill]] (!%p713_p2)  ;;  %v2439_v21 = vmov (!%p713_p2), 0  }
  0x17   : > { %2240 = vmatpush3.bf16.msra.mxu0 (!%p713_p2), %v2389_v0  ;;  %v2140_v4 = vld [vmem:[%s2924_s5] ss:$0 sm:$0xff] (!%p713_p2)  ;;  %v868_v5 = vsel (!%p713_p2), %vm866_vm0, %v2391_v3, 0  ;;  %2387 = vset.pattern.permute.xlu0 (!%p713_p2), %v2439_v21  ;;  %s2442_s5 = smov (!%p713_p2), 88  }
  0x18   : > { %2241 = vmatprep.subr.bf16.mxu0 %v2432_v1  ;;  %s2935_s3 = smov (!%p782_p3, %s2131_s3), 1  ;;  %v2141_v6 = vld [vmem:[%s2925_s7] ss:$0 sm:$0xff]  ;;  %2388 = vset.pattern.permute.xlu1 %v2439_v21 }
  0x19   : > { %s2192_s10 = sshll.u32 %s2935_s3, 2  ;;  %v979_v32 = vld [vmem:[%s2927_s2] sm:$0xf]  ;;  %s2440_s2 = smov 40  }
  0x1a   : > { %s786_s0 = scalar_lea.vmem %s2926_s29, %s2192_s10  ;;  %v985_v33 = vsel %vm866_vm0, %v979_v32, 0  ;;  %v2142_v34 = vld [vmem:[%s2928_s1] ss:$0 sm:$0xff]  ;;  %s2435_s29 = smov 120  }
  0x1b   : > { %2242 = vmatpush3.bf16.msra.mxu0 %v2390_v2  ;;  %v2621_v7 = vld [vmem:[%s786_s0] sm:$0x3]  ;;  %v2623_v8 = vld [vmem:[%s786_s0 + $0x2] sm:$0x3]  ;;  %2250 = vmatpush3.bf16.msra.mxu1 %v985_v33  ;;  %s2436_s0 = smov 112  }
  0x1c   : > { %2243 = vmatprep.subr.bf16.mxu0 %v2432_v1  ;;  %v802_v9 = vmul.f32 %v2140_v4, %v2621_v7  ;;  %v803_v10 = vmul.f32 %v2140_v4, %v2623_v8  ;;  %2255 = vmatprep.subr.bf16.mxu1 %v2432_v1  ;;  %v1085_v36 = vld [vmem:[%s2929_s4] sm:$0xf] }
  0x1d   : > { %v1090_v40 = vsel %vm866_vm0, %v1085_v36, 0  ;;  %v968_v61 = vld [vmem:[%s2930_s6] sm:$0xf]  ;;  %s2933_s6 = sld [smem:[#allocation12_spill]] }
  0x1e   : > { %v811_v11 = vadd.f32 %v2141_v6, %v802_v9  ;;  %v812_v12 = vadd.f32 %v2141_v6, %v803_v10  ;;  %v1031_v2 = vsel %vm866_vm0, %v968_v61, 0  ;;  %v1206_v10 = vld [vmem:[%s2931_s28] sm:$0xf] }
  0x1f   : > { %2244 = vmatpush3.bf16.msra.mxu0 %v868_v5  ;;  %v2167_v21 = vld [vmem:[%s2900_s16] ss:$0 sm:$0xff] }
  0x20   : > { %2261 = vmatprep.subr.bf16.mxu0 %v2432_v1  ;;  %v815_v13 = vmul.f32 0.70710677, %v811_v11  ;;  %v816_v14 = vmul.f32 0.70710677, %v812_v12  ;;  %v813_v18 = vmul.f32 0.5, %v811_v11  ;;  %v814_v20 = vmul.f32 0.5, %v812_v12 }
  0x22   : > { %2412 = verf.f32 %v815_v13 }
  0x23   : > { %2414 = verf.f32 %v816_v14  ;;  %v1214_v14 = vsel %vm866_vm0, %v1206_v10, 0 }
  0x2c   : > { %v2413_v19 = vpop.eup %2412 }
  0x2d   : > { %v2415_v23 = vpop.eup %2414  ;;  %v819_v24 = vadd.f32 1.0, %v2413_v19 }
  0x2e   : > { %v820_v25 = vadd.f32 1.0, %v2415_v23 }
  0x2f   : > { %v821_v26 = vmul.f32 %v819_v24, %v813_v18 }
  0x30   : > { %v822_v27 = vmul.f32 %v820_v25, %v814_v20  ;;  %v1312_v20 = vld [vmem:[%s2898_s14] sm:$0x3] }
  0x32   : > { %v825_v29 = vcombine.low %v821_v26, %v822_v27 }
  0x34   : > { %v832_v30 = vrot.slane %v825_v29, %v2631_v28 }
  0x36   : > { %v834_v31 = vpack.c.bf16 %v832_v30, %v832_v30 }
  0x38   : > { %2246 = vmatmul.mubr.msk.bf16.vlgmr.msra.gmra.mrb[0].mxu0 %vm862_vm2, %v834_v31 }
  0x39   : > { %2263 = vmatprep.mubr.msk.bf16.mxu0 %vm2433_vm1, %v2432_v1  ;;  %2262 = vmatpush3.bf16.msra.mxu0 %v1090_v40 }
  0x3a   : > { %2273 = vmatprep.subr.bf16.mxu0 %v2432_v1 }
 0x10b   : > { %v904_v35 = vpop.f32.mrb[0].mxu0 }
 0x10c   : > { %v905_v37 = vadd.f32 %v2142_v34, %v904_v35  ;;  %v2247_v38 = vpop.f32.mrb[1].mxu0 }
 0x10d   : > { %v907_v41 = vpop.f32.mrb[2].mxu0 }
 0x10e   : > { %v917_v42 = vrot.slane %v905_v37, %v2631_v28  ;;  %v2248_v43 = vpop.f32.mrb[3].mxu0 }
 0x110   : > { %v925_v44 = vrot.slane %v917_v42, %v2631_v28  ;;  %v918_v45 = vcombine.high %v917_v42, %v917_v42  ;;  %v948_v47 = vrot.slane %v917_v42, %v947_v39  ;;  %v931_v51 = vrot.slane %v917_v42, %v930_v46 }
 0x112   : > { %926 = vrot.lane.b32.xlu0 %v925_v44, %s2435_s29  ;;  %v935_v48 = vrot.slane %v918_v45, %v930_v46  ;;  %v1196_v49 = vcombine.low %v917_v42, %v918_v45  ;;  %v952_v50 = vrot.slane %v918_v45, %v947_v39  ;;  %v955_v53 = vsel %vm942_vm3, %v948_v47, 0.0 }
 0x113   : > { %v958_v6 = vcombine.low %v918_v45, %v2432_v1  ;;  %v2152_v45 = vld [vmem:[%s2933_s6] ss:$0 sm:$0xff] }
 0x114   : > { %938 = vrot.lane.b32.xlu1 %v935_v48, %s2436_s0  ;;  %v1203_v52 = vrot.slane %v1196_v49, %v2631_v28  ;;  %v956_v54 = vsel %vm942_vm3, %v952_v50, 0.0  ;;  %v2153_v50 = vld [vmem:[%s2895_s11] ss:$0 sm:$0xff] }
 0x115   : > { %v1135_v55 = vcombine.low %v955_v53, %v956_v54  ;;  %v965_v12 = vrot.slane %v958_v6, %v2631_v28 }
 0x116   : > { %936 = vrot.lane.b32.xlu0 %v931_v51, %s2436_s0  ;;  %v1205_v57 = vpack.c.bf16 %v1203_v52, %v1203_v52  ;;  %s2932_s0 = sld [smem:[#allocation10_spill]]  ;;  %v2154_v52 = vld [vmem:[%s2896_s12] ss:$0 sm:$0xff] }
 0x117   : > { %v1142_v56 = vrot.slane %v1135_v55, %v2631_v28  ;;  %v967_v16 = vpack.c.bf16 %v965_v12, %v965_v12  ;;  %v2392_v12 = vld [vmem:[%s2902_s18] sm:$0xff]  }
 0x119   : > { %v1144_v58 = vpack.c.bf16 %v1142_v56, %v1142_v56 }
 0x11a   : > { %1208 = vrot.lane.b32.xlu0 %v1205_v57, %s2437_s9 }
 0x11b   : > { %1147 = vrot.lane.b32.xlu1 %v1144_v58, %s2438_s30 }
 0x11c   : > { %v1145_v15 = vld [vmem:[%s2932_s0] sm:$0xf] }
 0x11d   : > { %v1153_v17 = vsel %vm866_vm0, %v1145_v15, 0 }
 0x11e   : > { %1315 = vperm.xlu0 %2387, %v1312_v20  }
 0x184   : > { %v927_v59 = vpop.permute.xlu0 %926 }
 0x185   : > { %v969_v60 = vcombine.low %v2432_v1, %v927_v59 }
 0x186   : > { %v939_v62 = vpop.permute.xlu1 %938 }
 0x187   : > { %v976_v63 = vrot.slane %v969_v60, %v2631_v28  ;;  %v944_v4 = vsel %vm942_vm3, 0.0, %v939_v62 }
 0x188   : > { %v937_v0 = vpop.permute.xlu0 %936 }
 0x189   : > { %v978_v3 = vpack.c.bf16 %v976_v63, %v976_v63  ;;  %v943_v5 = vsel %vm942_vm3, 0.0, %v937_v0 }
 0x18a   : > { %v1075_v9 = vcombine.low %v943_v5, %v944_v4 }
 0x18b   : > { %2252 = vmatmul.mubr.msk.bf16.vlgmr.msra.gmra.mrb[0].mxu1 %vm980_vm4, %v978_v3 }
 0x18c   : > { %v1082_v11 = vrot.slane %v1075_v9, %v2631_v28  ;;  %2256 = vmatpush3.bf16.msra.mxu1 %v1031_v2  ;;  %2257 = vmatprep.mubr.msk.bf16.mxu1 %vm2433_vm1, %v2432_v1  ;;  %v1209_v18 = vpop.permute.xlu0 %1208 }
 0x18d   : > { %2267 = vmatprep.subr.bf16.mxu1 %v2432_v1  ;;  %v1148_v19 = vpop.permute.xlu1 %1147 }
 0x18e   : > { %v1084_v13 = vpack.c.bf16 %v1082_v11, %v1082_v11  ;;  %v1311_v11 = vld [vmem:[%s2897_s13] sm:$0x1] }
 0x190   : > { %2264 = vmatmul.mubr.msk.bf16.vlgmr.msra.gmra.mrb[4].mxu0 %vm980_vm4, %v1084_v13 }
 0x191   : > { %2274 = vmatpush3.bf16.msra.mxu0 %v1214_v14  ;;  %2275 = vmatprep.mubr.msk.bf16.mxu0 %vm2433_vm1, %v2432_v1 }
 0x192   : > { %2285 = vmatprep.subr.bf16.mxu0 %v2432_v1 }
 0x193   : > { %2258 = vmatmul.mubr.msk.bf16.vlgmr.msra.gmra.mrb[4].mxu1 %vm980_vm4, %v967_v16 }
 0x194   : > { %2268 = vmatpush3.bf16.msra.mxu1 %v1153_v17  ;;  %2269 = vmatprep.mubr.msk.bf16.mxu1 %vm2433_vm1, %v2432_v1 }
 0x195   : > { %2279 = vmatprep.subr.bf16.mxu1 %v2432_v1 }
 0x198   : > { %2276 = vmatmul.mubr.msk.bf16.vlgmr.msra.gmra.mrb[8].mxu0 %vm980_vm4, %v1209_v18  ;;  %v2393_v18 = vld [vmem:[%s2902_s18 + $0x8] sm:$0xff]  }
 0x199   : > { %2287 = vmatprep.mubr.msk.bf16.mxu0 %vm2433_vm1, %v2432_v1 }
 0x19b   : > { %2270 = vmatmul.mubr.msk.bf16.vlgmr.msra.gmra.mrb[8].mxu1 %vm980_vm4, %v1148_v19  ;;  %v2394_v19 = vld [vmem:[%s2902_s18 + $0x10] ss:$0 sps:$4 sm:$0xff]  }
 0x19c   : > { %2281 = vmatprep.mubr.msk.bf16.mxu1 %vm2433_vm1, %v2432_v1  ;;  %v1444_v20 = vsel %vm866_vm0, %v2394_v19, 0 }
 0x25e   : > { %v1021_v23 = vpop.f32.mrb[0].mxu1 }
 0x25f   : > { %v2253_v24 = vpop.f32.mrb[1].mxu1 }
 0x260   : > { %v1024_v25 = vpop.f32.mrb[2].mxu1 }
 0x261   : > { %v2254_v26 = vpop.f32.mrb[3].mxu1 }
 0x263   : > { %v1126_v27 = vpop.f32.mrb[4].mxu0 }
 0x264   : > { %v2265_v29 = vpop.f32.mrb[5].mxu0 }
 0x265   : > { %v1129_v30 = vpop.f32.mrb[6].mxu0  ;;  %v1316_v29 = vpop.permute.xlu0 %1315 }
 0x266   : > { %v1067_v31 = vpop.f32.mrb[4].mxu1  ;;  %v2266_v32 = vpop.f32.mrb[7].mxu0 }
 0x267   : > { %v1068_v33 = vadd.f32 %v1067_v31, %v1021_v23  ;;  %v2259_v34 = vpop.f32.mrb[5].mxu1  ;;  %v2168_v23 = vld [vmem:[%s2900_s16 + $0x1] ss:$0 sm:$0xff] }
 0x268   : > { %v1070_v35 = vpop.f32.mrb[6].mxu1 }
 0x269   : > { %v2260_v36 = vpop.f32.mrb[7].mxu1  ;;  %v1132_v37 = vadd.f32 %v1126_v27, %v1068_v33  ;;  %v1564_v27 = vld [vmem:[%s2899_s15] sm:$0x1] }
 0x26b   : > { %v1250_v38 = vpop.f32.mrb[8].mxu0 }
 0x26c   : > { %v2277_v39 = vpop.f32.mrb[9].mxu0 }
 0x26d   : > { %v1253_v40 = vpop.f32.mrb[10].mxu0 }
 0x26e   : > { %v1189_v41 = vpop.f32.mrb[8].mxu1  ;;  %v2278_v42 = vpop.f32.mrb[11].mxu0  ;;  %v2441_v40 = vmov 1966171168  }
 0x26f   : > { %v1195_v43 = vadd.f32 %v1189_v41, %v1132_v37  ;;  %v2271_v44 = vpop.f32.mrb[9].mxu1  ;;  %v1490_v41 = vunpack.c.l.s4 %v2441_v40 }
 0x270   : > { %v1192_v46 = vpop.f32.mrb[10].mxu1  ;;  %v2395_v44 = vld [vmem:[%s2901_s17] sm:$0xff]  }
 0x271   : > { %v1256_v47 = vadd.f32 %v1250_v38, %v1195_v43  ;;  %v2272_v48 = vpop.f32.mrb[11].mxu1  ;;  %v1491_v46 = vunpack.c.0.s8 %v1490_v41 }
 0x272   : > { %v2397_v48 = vld [vmem:[%s2901_s17 + $0x10] ss:$0 sps:$4 sm:$0xff]  }
 0x273   : > { %v1264_v49 = vadd.f32 %v2152_v45, %v1256_v47  ;;  %v2396_v47 = vld [vmem:[%s2901_s17 + $0x8] sm:$0xff]  }
 0x275   : > { %v1272_v51 = vrot.slane %v1264_v49, %v2631_v28  ;;  %v1494_v49 = vsub.s32 %v1491_v46, %v2628_v22  ;;  %v2403_v46 = vld [vmem:[%s2906_s22 + $0x10] ss:$0 sps:$4 sm:$0xff]  }
 0x277   : > { %v1273_v53 = vcombine.high %v1272_v51, %v1272_v51  ;;  %v1283_v54 = vmul.f32 %v2153_v50, %v1272_v51 }
 0x279   : > { %v1284_v55 = vmul.f32 %v2153_v50, %v1273_v53  ;;  %v1292_v56 = vadd.f32 %v2154_v52, %v1283_v54  ;;  %v1522_v50 = vsel %vm866_vm0, %v2397_v48, 0  ;;  %v2398_v53 = vld [vmem:[%s2903_s19] sm:$0xff]   ;;  %v2399_v54 = vld [vmem:[%s2903_s19 + $0x8] sm:$0xff]  }
 0x27a   : > { %v2404_v48 = vld [vmem:[%s2908_s24] sm:$0xff]  }
 0x27b   : > { %v1293_v57 = vadd.f32 %v2154_v52, %v1284_v55  ;;  %v1296_v58 = vmul.f32 0.70710677, %v1292_v56  ;;  %v1294_v61 = vmul.f32 0.5, %v1292_v56  ;;  %v2400_v55 = vld [vmem:[%s2903_s19 + $0x10] ss:$0 sps:$4 sm:$0xff]  }
 0x27c   : > { %v1690_v56 = vsel %vm866_vm0, %v2400_v55, 0  ;;  %v2174_v55 = vld [vmem:[%s2905_s21] ss:$0 sm:$0xff] }
 0x27d   : > { %v1297_v59 = vmul.f32 0.70710677, %v1293_v57  ;;  %2416 = verf.f32 %v1296_v58  ;;  %v1295_v2 = vmul.f32 0.5, %v1293_v57 }
 0x27f   : > { %2418 = verf.f32 %v1297_v59 }
 0x287   : > { %v2417_v60 = vpop.eup %2416 }
 0x288   : > { %v1300_v62 = vadd.f32 1.0, %v2417_v60 }
 0x289   : > { %v2419_v63 = vpop.eup %2418 }
 0x28a   : > { %v2708_v0 = vmul.f32 %v1300_v62, %v1294_v61  ;;  %v1301_v3 = vadd.f32 1.0, %v2419_v63  ;;  %v2443_v61 = vmov 1934713408  }
 0x28b   : > { %v1625_v62 = vunpack.c.l.s4 %v2443_v61 }
 0x28c   : > { %v1304_v4 = vpack.c.bf16 %v2708_v0, %v2708_v0  ;;  %v2712_v5 = vmul.f32 %v1301_v3, %v1295_v2 }
 0x28d   : > { %v1626_v63 = vunpack.c.0.s8 %v1625_v62 }
 0x28e   : > { %v1323_v6 = vsel %vm942_vm3, %v1304_v4, 0  ;;  %v1305_v9 = vpack.c.bf16 %v2712_v5, %v2712_v5  ;;  %v2161_v10 = vpack.c.bf16 %v2712_v5, %v2708_v0  ;;  %v1566_v14 = vshrl.u32 %v1304_v4, 16 }
 0x28f   : > { %2280 = vmatpush3.bf16.msra.mxu1 %v1323_v6  ;;  %v1629_v0 = vsub.s32 %v1626_v63, %v2628_v22 }
 0x290   : > { %v1366_v13 = vsel %vm942_vm3, %v1305_v9, 0  ;;  %v1567_v15 = vshrl.u32 %v1305_v9, 16  ;;  %v1565_v16 = vpack.i.b16 %v1305_v9, %v1304_v4  ;;  %2291 = vmatprep.subr.bf16.mxu1 %v2432_v1  ;;  %v1495_v51 = vrot.slane %v2161_v10, %v1494_v49 }
 0x291   : > { %2286 = vmatpush3.bf16.msra.mxu0 %v1366_v13 }
 0x292   : > { %2282 = vmatmul.mubr.msk.bf16.vlgmr.msra.gmra.mrb[12].mxu1 %vm1318_vm5, %v1311_v11  ;;  %v1568_v17 = vpack.i.b16 %v1567_v15, %v1566_v14  ;;  %2311 = vmatprep.subr.bf16.mxu0 %v2432_v1  ;;  %v1502_v52 = vrot.slane %v1495_v51, %v1494_v49  ;;  %v2405_v49 = vld [vmem:[%s2908_s24 + $0x8] sm:$0xff]  }
 0x293   : > { %2292 = vmatpush3.bf16.msra.mxu1 %v2392_v12  ;;  %2297 = vmatprep.mubr.msk.bf16.mxu1 %vm2433_vm1, %v2432_v1 }
 0x294   : > { %1569 = vrot.lane.b32.xlu1 %v1568_v17, %s2440_s2  ;;  %2288 = vmatmul.mubr.msk.bf16.vlgmr.msra.gmra.mrb[12].mxu0 %vm1318_vm5, %v1311_v11 }
 0x295   : > { %2313 = vmatprep.mubr.msk.bf16.mxu0 %vm2433_vm1, %v2432_v1  ;;  %2293 = vmatprep.subr.bf16.mxu1 %v2432_v1 }
 0x297   : > { %2294 = vmatpush3.bf16.msra.mxu1 %v2393_v18 }
 0x298   : > { %2295 = vmatprep.subr.bf16.mxu1 %v2432_v1  ;;  %1645 = vperm.xlu1 %2388, %v2167_v21  }
 0x29b   : > { %2296 = vmatpush3.bf16.msra.mxu1 %v1444_v20 }
 0x29c   : > { %2301 = vmatprep.subr.bf16.mxu1 %v2432_v1  ;;  %1649 = vperm.xlu1 %2388, %v2168_v23  }
 0x306   : > { %v1570_v24 = vpop.permute.xlu1 %1569 }
 0x307   : > { %v1573_v25 = vsel %vm862_vm2, %v1565_v16, %v1570_v24 }
 0x308   : > { %v1577_v26 = vsel %vm942_vm3, %v1573_v25, 0 }
 0x309   : > { %2312 = vmatpush3.bf16.msra.mxu0 %v1577_v26 }
 0x30a   : > { %2337 = vmatprep.subr.bf16.mxu0 %v2432_v1 }
 0x30c   : > { %2314 = vmatmul.mubr.msk.bf16.vlgmr.msra.gmra.mrb[16].mxu0 %vm1318_vm5, %v1564_v27  ;;  %v2444_v27 = vmov 269488144  }
 0x30d   : > { %2353 = vmatprep.mubr.msk.bf16.mxu0 %vm2433_vm1, %v2432_v1  ;;  %2338 = vmatpush3.bf16.msra.mxu0 %v2404_v48 }
 0x30e   : > { %2339 = vmatprep.subr.bf16.mxu0 %v2432_v1 }
 0x311   : > { %2340 = vmatpush3.bf16.msra.mxu0 %v2405_v49 }
 0x312   : > { %2341 = vmatprep.subr.bf16.mxu0 %v2432_v1 }
 0x317   : > { %v1646_v3 = vpop.permute.xlu1 %1645 }
 0x31b   : > { %v1650_v9 = vpop.permute.xlu1 %1649 }
 0x365   : > { %v1359_v30 = vpop.f32.mrb[12].mxu1 }
 0x366   : > { %v1360_v31 = vadd.f32 %v1359_v30, %v1316_v29  ;;  %v2283_v32 = vpop.f32.mrb[13].mxu1  ;;  %v2445_v30 = vmov 842150450  }
 0x367   : > { %v1402_v33 = vpop.f32.mrb[12].mxu0  ;;  %v1362_v34 = vpop.f32.mrb[14].mxu1 }
 0x368   : > { %v1403_v35 = vadd.f32 %v1402_v33, %v1316_v29  ;;  %v2289_v36 = vpop.f32.mrb[13].mxu0  ;;  %v2284_v37 = vpop.f32.mrb[15].mxu1  ;;  %v1765_v29 = vunpack.c.l.s4 %v2444_v27 }
 0x369   : > { %v1405_v38 = vpop.f32.mrb[14].mxu0 }
 0x36a   : > { %v1410_v39 = vcombine.low %v1360_v31, %v1403_v35  ;;  %v2290_v42 = vpop.f32.mrb[15].mxu0  ;;  %v1772_v31 = vunpack.c.l.s4 %v2445_v30  ;;  %v1766_v32 = vunpack.c.0.s8 %v1765_v29 }
 0x36c   : > { %v1417_v43 = vrot.slane %v1410_v39, %v2631_v28  ;;  %v1773_v33 = vunpack.c.0.s8 %v1772_v31  ;;  %v1769_v34 = vsub.s32 %v1766_v32, %v2628_v22  ;;  %v2180_v31 = vld [vmem:[%s2909_s25] ss:$0 sm:$0xff] }
 0x36e   : > { %v1419_v45 = vpack.c.bf16 %v1417_v43, %v1417_v43 }
 0x370   : > { %2298 = vmatmul.mubr.msk.bf16.vlgmr.msra.gmra.mrb[16].mxu1 %vm862_vm2, %v1419_v45  ;;  %v2401_v45 = vld [vmem:[%s2906_s22] sm:$0xff]  }
 0x371   : > { %2302 = vmatpush3.bf16.msra.mxu1 %v2395_v44  ;;  %2307 = vmatprep.mubr.msk.bf16.mxu1 %vm2433_vm1, %v2432_v1 }
 0x372   : > { %2303 = vmatprep.subr.bf16.mxu1 %v2432_v1 }
 0x375   : > { %2304 = vmatpush3.bf16.msra.mxu1 %v2396_v47  ;;  %v1899_v47 = vsel %vm866_vm0, %v2403_v46, 0 }
 0x376   : > { %2305 = vmatprep.subr.bf16.mxu1 %v2432_v1 }
 0x379   : > { %2306 = vmatpush3.bf16.msra.mxu1 %v1522_v50  ;;  %v2406_v50 = vld [vmem:[%s2908_s24 + $0x10] sm:$0xff]  }
 0x37a   : > { %2317 = vmatprep.subr.bf16.mxu1 %v2432_v1  ;;  %2342 = vmatpush3.bf16.msra.mxu0 %v2406_v50 }
 0x37b   : > { %2343 = vmatprep.subr.bf16.mxu0 %v2432_v1 }
 0x37c   : > { %2308 = vmatmul.mubr.msk.bf16.vlgmr.msra.gmra.mrb[16].mxu1 %vm862_vm2, %v1502_v52 }
 0x37d   : > { %2323 = vmatprep.mubr.msk.bf16.mxu1 %vm2433_vm1, %v2432_v1  ;;  %2318 = vmatpush3.bf16.msra.mxu1 %v2398_v53 }
 0x37e   : > { %2319 = vmatprep.subr.bf16.mxu1 %v2432_v1 }
 0x381   : > { %2320 = vmatpush3.bf16.msra.mxu1 %v2399_v54  ;;  %v2173_v54 = vld [vmem:[%s2904_s20] ss:$0 sm:$0xff] }
 0x382   : > { %2321 = vmatprep.subr.bf16.mxu1 %v2432_v1 }
 0x385   : > { %2322 = vmatpush3.bf16.msra.mxu1 %v1690_v56  ;;  %v1832_v56 = vrot.slane %v2173_v54, %v2631_v28 }
 0x386   : > { %2327 = vmatprep.subr.bf16.mxu1 %v2432_v1 }
 0x3df   : > { %v1613_v57 = vpop.f32.mrb[16].mxu0 }
 0x3e0   : > { %1620 = vrot.lane.b32.xlu0 %v1613_v57, %s2442_s5  ;;  %v2315_v58 = vpop.f32.mrb[17].mxu0  ;;  %s791_s5 = scalar_lea.vmem %s2910_s26, %s2192_s10 }
 0x3e1   : > { %v1616_v59 = vpop.f32.mrb[18].mxu0 }
 0x3e2   : > { %v2316_v60 = vpop.f32.mrb[19].mxu0  ;;  %v1833_v59 = vcombine.high %v1832_v56, %v1832_v56 }
 0x452   : > { %v1621_v2 = vpop.permute.xlu0 %1620 }
 0x453   : > { %v1623_v4 = vcombine.low %v1613_v57, %v1621_v2  ;;  %v1850_v57 = vrot.slane %v2174_v55, %v2631_v28 }
 0x455   : > { %v1630_v5 = vrot.slane %v1623_v4, %v1629_v0  ;;  %v1851_v0 = vcombine.high %v1850_v57, %v1850_v57 }
 0x457   : > { %v1631_v6 = vcombine.high %v1630_v5, %v2432_v1  ;;  %v1652_v10 = vadd.f32 %v1646_v3, %v1630_v5 }
 0x459   : > { %v1653_v11 = vadd.f32 %v1650_v9, %v1631_v6 }
 0x45b   : > { %v1656_v12 = vcombine.low %v1652_v10, %v1653_v11  ;;  %v2407_v11 = vld [vmem:[%s2908_s24 + $0x18] sm:$0xff]  }
 0x45c   : > { %2344 = vmatpush3.bf16.msra.mxu0 %v2407_v11 }
 0x45d   : > { %v1663_v13 = vrot.slane %v1656_v12, %v2631_v28  ;;  %2345 = vmatprep.subr.bf16.mxu0 %v2432_v1  ;;  %v2408_v12 = vld [vmem:[%s2908_s24 + $0x20] sm:$0xff]  }
 0x45f   : > { %v1665_v14 = vpack.c.bf16 %v1663_v13, %v1663_v13  ;;  %v2409_v13 = vld [vmem:[%s2908_s24 + $0x28] sm:$0xff]  }
 0x460   : > { %2346 = vmatpush3.bf16.msra.mxu0 %v2408_v12 }
 0x461   : > { %2324 = vmatmul.mubr.msk.bf16.vlgmr.msra.gmra.mrb[16].mxu1 %vm862_vm2, %v1665_v14  ;;  %2347 = vmatprep.subr.bf16.mxu0 %v2432_v1  ;;  %v2410_v14 = vld [vmem:[%s2908_s24 + $0x30] sm:$0xff]  }
 0x462   : > { %2333 = vmatprep.mubr.msk.bf16.mxu1 %vm2433_vm1, %v2432_v1  ;;  %2328 = vmatpush3.bf16.msra.mxu1 %v2401_v45 }
 0x463   : > { %2329 = vmatprep.subr.bf16.mxu1 %v2432_v1 }
 0x464   : > { %2348 = vmatpush3.bf16.msra.mxu0 %v2409_v13 }
 0x465   : > { %2349 = vmatprep.subr.bf16.mxu0 %v2432_v1 }
 0x468   : > { %2350 = vmatpush3.bf16.msra.mxu0 %v2410_v14 }
 0x469   : > { %2351 = vmatprep.subr.bf16.mxu0 %v2432_v1 }
 0x534   : > { %v1726_v15 = vpop.f32.mrb[16].mxu1 }
 0x535   : > { %v1740_v16 = vrot.slane %v1726_v15, %v2631_v28  ;;  %v2325_v17 = vpop.f32.mrb[17].mxu1  ;;  %v2411_v15 = vld [vmem:[%s2908_s24 + $0x38] ss:$0 sps:$4 sm:$0xff]  }
 0x536   : > { %v1729_v18 = vpop.f32.mrb[18].mxu1  ;;  %v2175_v17 = vld [vmem:[%s2907_s23] ss:$0 sm:$0xff] }
 0x537   : > { %v1741_v19 = vcombine.high %v1740_v16, %v1740_v16  ;;  %v2326_v20 = vpop.f32.mrb[19].mxu1  ;;  %v1744_v21 = vadd.f32 %v1740_v16, %v2621_v7  ;;  %v1776_v7 = vsub.s32 %v1773_v33, %v2628_v22  ;;  %v2402_v22 = vld [vmem:[%s2906_s22 + $0x8] sm:$0xff]   ;;  %v2019_v16 = vsel %vm866_vm0, %v2411_v15, 0 }
 0x538   : > { %2330 = vmatpush3.bf16.msra.mxu1 %v2402_v22  ;;  %2352 = vmatpush3.bf16.msra.mxu0 %v2019_v16 }
 0x539   : > { %v1745_v23 = vadd.f32 %v1741_v19, %v2623_v8  ;;  %2331 = vmatprep.subr.bf16.mxu1 %v2432_v1 }
 0x53b   : > { %v1748_v24 = vcombine.low %v1744_v21, %v1745_v23 }
 0x53c   : > { %2332 = vmatpush3.bf16.msra.mxu1 %v1899_v47 }
 0x53d   : > { %v2806_v25 = vrot.slane %v1748_v24, %v2631_v28 }
 0x53f   : > { %v1758_v26 = vsel %vm1757_vm6, %v2806_v25, 0.0 }
 0x540   : > { %1759 = vadd.xlane.f32.xlu1 %v1758_v26 }
 0x5cd   : > { %v1760_v8 = vpop.xlane.xlu1 %1759 }
 0x5ce   : > { %v1762_v35 = vmul.f32 0.025, %v1760_v8 }
 0x5d0   : > { %v1770_v36 = vrot.slane %v1762_v35, %v1769_v34  ;;  %v1777_v37 = vrot.slane %v1762_v35, %v1776_v7 }
 0x5d2   : > { %v1780_v38 = vsub.f32 %v1744_v21, %v1770_v36  ;;  %v1781_v39 = vsub.f32 %v1745_v23, %v1777_v37 }
 0x5d4   : > { %v1782_v40 = vmul.f32 %v1780_v38, %v1780_v38  ;;  %v1783_v41 = vmul.f32 %v1781_v39, %v1781_v39 }
 0x5d6   : > { %v1786_v42 = vcombine.low %v1782_v40, %v1783_v41 }
 0x5d8   : > { %v1793_v43 = vrot.slane %v1786_v42, %v2631_v28 }
 0x5da   : > { %v1795_v44 = vsel %vm1757_vm6, %v1793_v43, 0.0 }
 0x5db   : > { %1796 = vadd.xlane.f32.xlu0 %v1795_v44 }
 0x668   : > { %v1797_v51 = vpop.xlane.xlu0 %1796 }
 0x669   : > { %v1798_v52 = vmul.f32 0.025, %v1797_v51 }
 0x66b   : > { %v1799_v53 = vadd.f32 1e-05, %v1798_v52 }
 0x66d   : > { %2420 = vrsqrt.f32 %v1799_v53 }
 0x677   : > { %v2421_v58 = vpop.eup %2420 }
 0x678   : > { %v1808_v60 = vrot.slane %v2421_v58, %v1769_v34  ;;  %v1815_v61 = vrot.slane %v2421_v58, %v1776_v7 }
 0x67a   : > { %v1818_v62 = vmul.f32 %v1808_v60, %v1780_v38  ;;  %v1819_v63 = vmul.f32 %v1815_v61, %v1781_v39 }
 0x67c   : > { %v1836_v2 = vmul.f32 %v1832_v56, %v1818_v62  ;;  %v1837_v3 = vmul.f32 %v1833_v59, %v1819_v63 }
 0x67e   : > { %v1854_v4 = vadd.f32 %v1850_v57, %v1836_v2  ;;  %v1855_v5 = vadd.f32 %v1851_v0, %v1837_v3 }
 0x680   : > { %v1858_v6 = vcombine.low %v1854_v4, %v1855_v5 }
 0x682   : > { %v1865_v9 = vrot.slane %v1858_v6, %v2631_v28 }
 0x684   : > { %v1867_v10 = vpack.c.bf16 %v1865_v9, %v1865_v9 }
 0x686   : > { %2334 = vmatmul.mubr.msk.bf16.vlgmr.msra.gmra.mrb[20].mxu1 %vm862_vm2, %v1867_v10 }
 0x759   : > { %v1935_v18 = vpop.f32.mrb[20].mxu1 }
 0x75a   : > { %v1936_v19 = vadd.f32 %v2175_v17, %v1935_v18  ;;  %v2335_v20 = vpop.f32.mrb[21].mxu1 }
 0x75b   : > { %v1938_v21 = vpop.f32.mrb[22].mxu1 }
 0x75c   : > { %v1942_v23 = vmul.f32 0.70710677, %v1936_v19  ;;  %v2336_v24 = vpop.f32.mrb[23].mxu1  ;;  %v1941_v26 = vmul.f32 0.5, %v1936_v19 }
 0x75e   : > { %2422 = verf.f32 %v1942_v23 }
 0x768   : > { %v2423_v1 = vpop.eup %2422 }
 0x769   : > { %v1944_v27 = vadd.f32 1.0, %v2423_v1 }
 0x76b   : > { %v1945_v29 = vmul.f32 %v1944_v27, %v1941_v26 }
 0x76d   : > { %v1946_v30 = vpack.c.bf16 %v1945_v29, %v1945_v29 }
 0x76f   : > { %2354 = vmatmul.mubr.msk.bf16.vlgmr.msra.gmra.mrb[20].mxu0 %vm2014_vm7, %v1946_v30 }
 0x842   : > { %v2055_v32 = vpop.f32.mrb[20].mxu0 }
 0x843   : > { %v2056_v33 = vadd.f32 %v2180_v31, %v2055_v32  ;;  %v2355_v34 = vpop.f32.mrb[21].mxu0 }
 0x844   : > { %v2058_v7 = vpop.f32.mrb[22].mxu0 }
 0x845   : > { %v2061_v8 = vadd.f32 %v2056_v33, %v2806_v25  ;;  %v2356_v35 = vpop.f32.mrb[23].mxu0 }
 0x847   : > { %v2069_v36 = vrot.slane %v2061_v8, %v2631_v28 }
 0x849   : > { %v2070_v37 = vcombine.high %v2069_v36, %v2069_v36  ;;  %2074 = vst.msk [vmem:[%s791_s5] sm:$0x3] %vm2073_vm8, %v2069_v36 }
 0x84b   : > { %2075 = vst.msk [vmem:[%s791_s5 + $0x2] sm:$0x3] %vm2073_vm8, %v2070_v37 }
 0x84c PF: > { %s36_s27 = sadd.s32 1, %s2430_s27  }
 0x84d   : > { %p33_p4 = scmp.ge.s32.totalorder %s36_s27, 4  }
 0x84f   :  { %35 = sbr.rel (!%p33_p4) target bundleno = 12 (0xc), region = 154 }

</bundles_post_ra>
